<compile_context>
chip_gen: v7x
topology: tpu7x:2x2x1
jax: 0.10.0
libtpu: 0.0.40
codegen_flags: <defaults>
</compile_context>

<pallas_src>
import jax
import jax.numpy as jnp
from jax.experimental import pallas as pl
from jax.experimental.pallas import tpu as pltpu

# ----------------------------- hyper-parameters ----------------------------------
SEQ_LEN = 8            # args.seq_len
BATCH = 32             # one timestep == one aligned (32,128) tile (4 sublane tiles)
INPUT_SIZE = 4         # pixelMNIST would be 1; 4 keeps fc0 non-trivial
HIDDEN = 32            # args.hidden_size (logical model width)
H_PAD = 128            # lane-padded hidden width used inside the kernel
NUM_CLASSES = 10
NC_PAD = H_PAD         # classifier output lane-padded to 128 (sliced outside)
NUM_BLOCKS = 2         # args.num_blocks
MAG = 2.0              # args.MAG
U_BOUND = float(MAG ** (1.0 / SEQ_LEN))
U_LOWBOUND = float((1.0 / MAG) ** (1.0 / SEQ_LEN))
BN_EPS = 1e-5
TB = SEQ_LEN * BATCH

NUM_VECS = 1 + 8 * NUM_BLOCKS + 4    # fc0_b | per block: g1,b1,u1,fb1,g2,b2,u2,fb2 | last g,b,u | cls_b
NUM_MATS = 1 + 2 * NUM_BLOCKS + 1    # fc0_w | per block: fc1_w, fc2_w | cls_w

_VMEM = pl.BlockSpec(memory_space=pltpu.MemorySpace.VMEM)


# -------------------------------- fused kernel ------------------------------------
def _fused_forward_kernel(x_ref, wmat_ref, vec_ref, out_ref):
    """Entire ResidualNet forward on a (T*B, H_PAD) slab held in VMEM/vregs."""

    vecs = vec_ref[...]                            # one full-tile load, sliced as values
    inv_tb = 1.0 / TB

    def vrow(i):                                   # (1, H_PAD) packed per-channel vec
        return vecs[i:i + 1, :]

    # ---- fc0: Linear_overtime(input_size -> hidden), on the MXU ----
    # x_ref is lane-dense (TB, 128) with real data in lanes [0, INPUT_SIZE).
    h = jnp.dot(x_ref[...], wmat_ref[0], preferred_element_type=jnp.float32) + vrow(0)

    # ---- BatchNorm (training-mode stats over T*B) + IndRNN, all in registers ----
    def bn_indrnn(hin, gamma, beta, u, need_slab=True):
        # One-pass stats: the two reductions are independent and overlap on the XLU.
        s1 = jnp.sum(hin, axis=0, keepdims=True)                  # (1, H_PAD)
        s2 = jnp.sum(hin * hin, axis=0, keepdims=True)            # (1, H_PAD)
        mean = s1 * inv_tb
        var = s2 * inv_tb - mean * mean
        scale = gamma * jax.lax.rsqrt(var + BN_EPS)               # (1, H_PAD)
        shift = beta - mean * scale                               # (1, H_PAD)
        # Hoist broadcasts out of the unrolled loop (no CSE of broadcast_in_dim).
        scale_b = jnp.broadcast_to(scale, (BATCH, H_PAD))
        shift_b = jnp.broadcast_to(shift, (BATCH, H_PAD))
        u_b = jnp.broadcast_to(u, (BATCH, H_PAD))
        # t = 0: h_{-1} == 0, skip the u*ht mul+add on the critical path.
        ht = jnp.maximum(hin[0:BATCH, :] * scale_b + shift_b, 0.0)
        outs = [ht] if need_slab else None
        for t in range(1, SEQ_LEN):                # fully unrolled, state in vregs
            xt = hin[t * BATCH:(t + 1) * BATCH, :] * scale_b + shift_b
            ht = jnp.maximum(xt + u_b * ht, 0.0)
            if need_slab:
                outs.append(ht)
        return jnp.concatenate(outs, axis=0) if need_slab else ht

    # ---- pre-activation residual blocks ----
    v = 1
    for i in range(NUM_BLOCKS):
        res = h
        y = bn_indrnn(h, vrow(v), vrow(v + 1), vrow(v + 2))
        y = jnp.dot(y, wmat_ref[1 + 2 * i], preferred_element_type=jnp.float32) + vrow(v + 3)
        y = bn_indrnn(y, vrow(v + 4), vrow(v + 5), vrow(v + 6))
        y = jnp.dot(y, wmat_ref[2 + 2 * i], preferred_element_type=jnp.float32) + vrow(v + 7)
        h = res + y
        v += 8

    # ---- IndRNNwithBN_last: only the final timestep feeds the classifier ----
    last = bn_indrnn(h, vrow(v), vrow(v + 1), vrow(v + 2), need_slab=False)  # (B, H_PAD)

    # ---- classifier, fused; output is lane-dense (B, 128), sliced to 10 outside ----
    out_ref[...] = (
        jnp.dot(last, wmat_ref[1 + 2 * NUM_BLOCKS], preferred_element_type=jnp.float32)
        + vrow(v + 3)
    )


# --------------------------------- wrapper ----------------------------------------
@jax.jit
def residual_net_forward(x, wmats, vecs):
    """x: (SEQ_LEN, BATCH, INPUT_SIZE) time-major -> logits (BATCH, NUM_CLASSES)."""
    x2d = x.reshape(TB, INPUT_SIZE)
    # Lane-dense (TB, 128) input tile so fc0 is one unmasked load + one matmul.
    x_padded = jnp.zeros((TB, H_PAD), jnp.float32).at[:, :INPUT_SIZE].set(x2d)
    out_padded = pl.pallas_call(
        _fused_forward_kernel,
        out_shape=jax.ShapeDtypeStruct((BATCH, NC_PAD), jnp.float32),
        in_specs=[_VMEM, _VMEM, _VMEM],
        out_specs=_VMEM,
    )(x_padded, wmats, vecs)
    return out_padded[:, :NUM_CLASSES]


# ----------------------------- parameter handling ----------------------------------
def _kaiming_uniform(key, fan_in, shape, a=8.0):
    bound = (6.0 / ((1.0 + a * a) * fan_in)) ** 0.5
    return jax.random.uniform(key, shape, jnp.float32, -bound, bound)


def init_params(key):
    keys = jax.random.split(key, 3 + NUM_BLOCKS)
    p = {
        "fc0_w": _kaiming_uniform(keys[0], INPUT_SIZE, (INPUT_SIZE, HIDDEN)),
        "fc0_b": jnp.zeros((HIDDEN,), jnp.float32),
        "blocks": [],
        "bn_last_g": jnp.ones((HIDDEN,), jnp.float32),
        "bn_last_b": jnp.zeros((HIDDEN,), jnp.float32),
        # u_lastlayer_ini: uniform(U_lowbound, U_bound)
        "u_last": jax.random.uniform(keys[1], (HIDDEN,), jnp.float32, U_LOWBOUND, U_BOUND),
        # classifier: kaiming_normal (fan_in), zero bias
        "cls_w": jax.random.normal(keys[2], (HIDDEN, NUM_CLASSES), jnp.float32)
                 * (2.0 / HIDDEN) ** 0.5,
        "cls_b": jnp.zeros((NUM_CLASSES,), jnp.float32),
    }
    for i in range(NUM_BLOCKS):
        bk = jax.random.split(keys[3 + i], 4)
        p["blocks"].append({
            "bn1_g": jnp.ones((HIDDEN,), jnp.float32),
            "bn1_b": jnp.zeros((HIDDEN,), jnp.float32),
            "u1": jax.random.uniform(bk[0], (HIDDEN,), jnp.float32, 0.0, U_BOUND),
            "fc1_w": _kaiming_uniform(bk[1], HIDDEN, (HIDDEN, HIDDEN)),
            "fc1_b": jnp.zeros((HIDDEN,), jnp.float32),
            "bn2_g": jnp.ones((HIDDEN,), jnp.float32),
            "bn2_b": jnp.zeros((HIDDEN,), jnp.float32),
            "u2": jax.random.uniform(bk[2], (HIDDEN,), jnp.float32, 0.0, U_BOUND),
            "fc2_w": _kaiming_uniform(bk[3], HIDDEN, (HIDDEN, HIDDEN)),
            "fc2_b": jnp.zeros((HIDDEN,), jnp.float32),
        })
    return p


def _pad_vec(v):
    # NOTE: padded lanes MUST be exactly zero (gamma/u/bias = 0 keeps padded
    # lanes identically zero through BN/IndRNN/matmul inside the kernel).
    return jnp.zeros((H_PAD,), jnp.float32).at[: v.shape[0]].set(v)


def _pad_mat(m):
    # NOTE: padded rows/columns MUST be exactly zero so padded lanes can't leak
    # into real lanes through the MXU matmuls.
    return jnp.zeros((H_PAD, H_PAD), jnp.float32).at[: m.shape[0], : m.shape[1]].set(m)


def pack_params(p):
    """Zero-pad HIDDEN->128 (semantically a no-op) and pack into 2 dense arrays."""
    vec_rows = [p["fc0_b"]]
    mats = [p["fc0_w"]]                                               # (4, 32) -> padded 128x128
    for blk in p["blocks"]:
        vec_rows += [blk["bn1_g"], blk["bn1_b"], blk["u1"], blk["fc1_b"],
                     blk["bn2_g"], blk["bn2_b"], blk["u2"], blk["fc2_b"]]
        mats += [blk["fc1_w"], blk["fc2_w"]]
    vec_rows += [p["bn_last_g"], p["bn_last_b"], p["u_last"], p["cls_b"]]
    mats += [p["cls_w"]]
    assert len(vec_rows) == NUM_VECS and len(mats) == NUM_MATS
    vecs = jnp.stack([_pad_vec(r) for r in vec_rows])                 # (NUM_VECS, 128)
    wmats = jnp.stack([_pad_mat(m) for m in mats])                    # (NUM_MATS, 128, 128)
    return wmats, vecs


# ------------------------------ pure-JAX reference ---------------------------------
def reference_forward(x, p):
    hp = jax.lax.Precision.HIGHEST

    def bn_indrnn(h, g, b, u):
        mean = jnp.mean(h, axis=0, keepdims=True)
        var = jnp.mean(jnp.square(h - mean), axis=0, keepdims=True)
        xn = (h - mean) * jax.lax.rsqrt(var + BN_EPS) * g + b
        ht = jnp.zeros((BATCH, HIDDEN), jnp.float32)
        outs = []
        for t in range(SEQ_LEN):
            ht = jnp.maximum(xn[t * BATCH:(t + 1) * BATCH] + u * ht, 0.0)
            outs.append(ht)
        return jnp.concatenate(outs, axis=0)

    h = jnp.dot(x.reshape(TB, INPUT_SIZE), p["fc0_w"], precision=hp) + p["fc0_b"]
    for blk in p["blocks"]:
        res = h
        y = bn_indrnn(h, blk["bn1_g"], blk["bn1_b"], blk["u1"])
        y = jnp.dot(y, blk["fc1_w"], precision=hp) + blk["fc1_b"]
        y = bn_indrnn(y, blk["bn2_g"], blk["bn2_b"], blk["u2"])
        y = jnp.dot(y, blk["fc2_w"], precision=hp) + blk["fc2_b"]
        h = res + y
    h = bn_indrnn(h, p["bn_last_g"], p["bn_last_b"], p["u_last"])
    return jnp.dot(h[(SEQ_LEN - 1) * BATCH:], p["cls_w"], precision=hp) + p["cls_b"]


# ------------------------------------- main -----------------------------------------
if __name__ == "__main__":
    key = jax.random.PRNGKey(0)
    k_x, k_p = jax.random.split(key)
    x = jax.random.normal(k_x, (SEQ_LEN, BATCH, INPUT_SIZE), jnp.float32)
    params = init_params(k_p)
    wmats, vecs = pack_params(params)

    # Guard the padding invariant (padded lanes must be exactly zero).
    assert bool(jnp.all(vecs[:, HIDDEN:] == 0.0))
    assert bool(jnp.all(wmats[:, HIDDEN:, :] == 0.0))
    assert bool(jnp.all(wmats[:, :, HIDDEN:] == 0.0))

    out = residual_net_forward(x, wmats, vecs)
    out = jax.block_until_ready(out)
    assert out.shape == (BATCH, NUM_CLASSES) and out.dtype == jnp.float32
    assert bool(jnp.all(jnp.isfinite(out)))

    # Correctness vs. a pure-JAX reference on the unpadded parameters.
    # Loose tolerance: catches wiring / packing / padding errors, not MXU ULPs
    # or the one-pass-variance drift.
    ref = reference_forward(x, params)
    assert bool(jnp.allclose(out, ref, atol=5e-2, rtol=5e-2)), float(
        jnp.max(jnp.abs(out - ref)))

    print("KERNEL_OK")
</pallas_src>

<mosaic_0001>
module attributes {stable_mosaic.version = 11 : i64} {
  func.func @_fused_forward_kernel(%arg0: memref<256x128xf32, #tpu.memory_space<vmem>>, %arg1: memref<6x128x128xf32, #tpu.memory_space<vmem>>, %arg2: memref<21x128xf32, #tpu.memory_space<vmem>>, %arg3: memref<32x128xf32, #tpu.memory_space<vmem>>) attributes {dimension_semantics = [], scalar_prefetch = 0 : i64, scratch_operands = 0 : i64, tpu.core_type = #tpu.core_type<tc>} {
    %c0 = arith.constant 0 : index
    %c0_0 = arith.constant 0 : index
    %0 = vector.load %arg2[%c0, %c0_0] : memref<21x128xf32, #tpu.memory_space<vmem>>, vector<21x128xf32>
    %c0_1 = arith.constant 0 : index
    %c0_2 = arith.constant 0 : index
    %1 = vector.load %arg0[%c0_1, %c0_2] : memref<256x128xf32, #tpu.memory_space<vmem>>, vector<256x128xf32>
    %c0_3 = arith.constant 0 : index
    %c0_4 = arith.constant 0 : index
    %c0_5 = arith.constant 0 : index
    %2 = vector.load %arg1[%c0_3, %c0_4, %c0_5] : memref<6x128x128xf32, #tpu.memory_space<vmem>>, vector<1x128x128xf32>
    %3 = vector.shape_cast %2 : vector<1x128x128xf32> to vector<128x128xf32>
    %cst = arith.constant dense<0.000000e+00> : vector<256x128xf32>
    %4 = tpu.matmul %1, %3, %cst {dimension_numbers = #tpu.dot_dimension_numbers<[1], [0], [0], [1], [0, 0, 1, 1], [], []>} : vector<256x128xf32>, vector<128x128xf32>, vector<256x128xf32> -> vector<256x128xf32>
    %5 = vector.extract_strided_slice %0 {offsets = [0, 0], sizes = [1, 128], strides = [1, 1]} : vector<21x128xf32> to vector<1x128xf32>
    %6 = vector.broadcast %5 : vector<1x128xf32> to vector<256x128xf32>
    %7 = arith.addf %4, %6 : vector<256x128xf32>
    %8 = vector.extract_strided_slice %0 {offsets = [1, 0], sizes = [1, 128], strides = [1, 1]} : vector<21x128xf32> to vector<1x128xf32>
    %9 = vector.extract_strided_slice %0 {offsets = [2, 0], sizes = [1, 128], strides = [1, 1]} : vector<21x128xf32> to vector<1x128xf32>
    %10 = vector.extract_strided_slice %0 {offsets = [3, 0], sizes = [1, 128], strides = [1, 1]} : vector<21x128xf32> to vector<1x128xf32>
    %cst_6 = arith.constant dense<0.000000e+00> : vector<128xf32>
    %11 = vector.multi_reduction <add>, %7, %cst_6 [0] : vector<256x128xf32> to vector<128xf32>
    %12 = vector.shape_cast %11 : vector<128xf32> to vector<1x128xf32>
    %13 = arith.mulf %7, %7 : vector<256x128xf32>
    %cst_7 = arith.constant dense<0.000000e+00> : vector<128xf32>
    %14 = vector.multi_reduction <add>, %13, %cst_7 [0] : vector<256x128xf32> to vector<128xf32>
    %15 = vector.shape_cast %14 : vector<128xf32> to vector<1x128xf32>
    %cst_8 = arith.constant 3.906250e-03 : f32
    %16 = vector.broadcast %cst_8 : f32 to vector<1x128xf32>
    %17 = arith.mulf %12, %16 : vector<1x128xf32>
    %cst_9 = arith.constant 3.906250e-03 : f32
    %18 = vector.broadcast %cst_9 : f32 to vector<1x128xf32>
    %19 = arith.mulf %15, %18 : vector<1x128xf32>
    %20 = arith.mulf %17, %17 : vector<1x128xf32>
    %21 = arith.subf %19, %20 : vector<1x128xf32>
    %cst_10 = arith.constant 9.99999974E-6 : f32
    %22 = vector.broadcast %cst_10 : f32 to vector<1x128xf32>
    %23 = arith.addf %21, %22 : vector<1x128xf32>
    %24 = math.rsqrt %23 : vector<1x128xf32>
    %25 = arith.mulf %8, %24 : vector<1x128xf32>
    %26 = arith.mulf %17, %25 : vector<1x128xf32>
    %27 = arith.subf %9, %26 : vector<1x128xf32>
    %28 = vector.shape_cast %25 : vector<1x128xf32> to vector<1x128xf32>
    %29 = vector.broadcast %28 : vector<1x128xf32> to vector<32x128xf32>
    %30 = vector.shape_cast %27 : vector<1x128xf32> to vector<1x128xf32>
    %31 = vector.broadcast %30 : vector<1x128xf32> to vector<32x128xf32>
    %32 = vector.shape_cast %10 : vector<1x128xf32> to vector<1x128xf32>
    %33 = vector.broadcast %32 : vector<1x128xf32> to vector<32x128xf32>
    %34 = vector.extract_strided_slice %7 {offsets = [0, 0], sizes = [32, 128], strides = [1, 1]} : vector<256x128xf32> to vector<32x128xf32>
    %35 = arith.mulf %34, %29 : vector<32x128xf32>
    %36 = arith.addf %35, %31 : vector<32x128xf32>
    %cst_11 = arith.constant 0.000000e+00 : f32
    %37 = vector.broadcast %cst_11 : f32 to vector<32x128xf32>
    %38 = arith.maximumf %36, %37 : vector<32x128xf32>
    %39 = vector.extract_strided_slice %7 {offsets = [32, 0], sizes = [32, 128], strides = [1, 1]} : vector<256x128xf32> to vector<32x128xf32>
    %40 = arith.mulf %39, %29 : vector<32x128xf32>
    %41 = arith.addf %40, %31 : vector<32x128xf32>
    %42 = arith.mulf %33, %38 : vector<32x128xf32>
    %43 = arith.addf %41, %42 : vector<32x128xf32>
    %cst_12 = arith.constant 0.000000e+00 : f32
    %44 = vector.broadcast %cst_12 : f32 to vector<32x128xf32>
    %45 = arith.maximumf %43, %44 : vector<32x128xf32>
    %46 = vector.extract_strided_slice %7 {offsets = [64, 0], sizes = [32, 128], strides = [1, 1]} : vector<256x128xf32> to vector<32x128xf32>
    %47 = arith.mulf %46, %29 : vector<32x128xf32>
    %48 = arith.addf %47, %31 : vector<32x128xf32>
    %49 = arith.mulf %33, %45 : vector<32x128xf32>
    %50 = arith.addf %48, %49 : vector<32x128xf32>
    %cst_13 = arith.constant 0.000000e+00 : f32
    %51 = vector.broadcast %cst_13 : f32 to vector<32x128xf32>
    %52 = arith.maximumf %50, %51 : vector<32x128xf32>
    %53 = vector.extract_strided_slice %7 {offsets = [96, 0], sizes = [32, 128], strides = [1, 1]} : vector<256x128xf32> to vector<32x128xf32>
    %54 = arith.mulf %53, %29 : vector<32x128xf32>
    %55 = arith.addf %54, %31 : vector<32x128xf32>
    %56 = arith.mulf %33, %52 : vector<32x128xf32>
    %57 = arith.addf %55, %56 : vector<32x128xf32>
    %cst_14 = arith.constant 0.000000e+00 : f32
    %58 = vector.broadcast %cst_14 : f32 to vector<32x128xf32>
    %59 = arith.maximumf %57, %58 : vector<32x128xf32>
    %60 = vector.extract_strided_slice %7 {offsets = [128, 0], sizes = [32, 128], strides = [1, 1]} : vector<256x128xf32> to vector<32x128xf32>
    %61 = arith.mulf %60, %29 : vector<32x128xf32>
    %62 = arith.addf %61, %31 : vector<32x128xf32>
    %63 = arith.mulf %33, %59 : vector<32x128xf32>
    %64 = arith.addf %62, %63 : vector<32x128xf32>
    %cst_15 = arith.constant 0.000000e+00 : f32
    %65 = vector.broadcast %cst_15 : f32 to vector<32x128xf32>
    %66 = arith.maximumf %64, %65 : vector<32x128xf32>
    %67 = vector.extract_strided_slice %7 {offsets = [160, 0], sizes = [32, 128], strides = [1, 1]} : vector<256x128xf32> to vector<32x128xf32>
    %68 = arith.mulf %67, %29 : vector<32x128xf32>
    %69 = arith.addf %68, %31 : vector<32x128xf32>
    %70 = arith.mulf %33, %66 : vector<32x128xf32>
    %71 = arith.addf %69, %70 : vector<32x128xf32>
    %cst_16 = arith.constant 0.000000e+00 : f32
    %72 = vector.broadcast %cst_16 : f32 to vector<32x128xf32>
    %73 = arith.maximumf %71, %72 : vector<32x128xf32>
    %74 = vector.extract_strided_slice %7 {offsets = [192, 0], sizes = [32, 128], strides = [1, 1]} : vector<256x128xf32> to vector<32x128xf32>
    %75 = arith.mulf %74, %29 : vector<32x128xf32>
    %76 = arith.addf %75, %31 : vector<32x128xf32>
    %77 = arith.mulf %33, %73 : vector<32x128xf32>
    %78 = arith.addf %76, %77 : vector<32x128xf32>
    %cst_17 = arith.constant 0.000000e+00 : f32
    %79 = vector.broadcast %cst_17 : f32 to vector<32x128xf32>
    %80 = arith.maximumf %78, %79 : vector<32x128xf32>
    %81 = vector.extract_strided_slice %7 {offsets = [224, 0], sizes = [32, 128], strides = [1, 1]} : vector<256x128xf32> to vector<32x128xf32>
    %82 = arith.mulf %81, %29 : vector<32x128xf32>
    %83 = arith.addf %82, %31 : vector<32x128xf32>
    %84 = arith.mulf %33, %80 : vector<32x128xf32>
    %85 = arith.addf %83, %84 : vector<32x128xf32>
    %cst_18 = arith.constant 0.000000e+00 : f32
    %86 = vector.broadcast %cst_18 : f32 to vector<32x128xf32>
    %87 = arith.maximumf %85, %86 : vector<32x128xf32>
    %88 = tpu.concatenate %38, %45, %52, %59, %66, %73, %80, %87 in 0 : vector<32x128xf32>, vector<32x128xf32>, vector<32x128xf32>, vector<32x128xf32>, vector<32x128xf32>, vector<32x128xf32>, vector<32x128xf32>, vector<32x128xf32> -> vector<256x128xf32>
    %c1 = arith.constant 1 : index
    %c0_19 = arith.constant 0 : index
    %c0_20 = arith.constant 0 : index
    %89 = vector.load %arg1[%c1, %c0_19, %c0_20] : memref<6x128x128xf32, #tpu.memory_space<vmem>>, vector<1x128x128xf32>
    %90 = vector.shape_cast %89 : vector<1x128x128xf32> to vector<128x128xf32>
    %cst_21 = arith.constant dense<0.000000e+00> : vector<256x128xf32>
    %91 = tpu.matmul %88, %90, %cst_21 {dimension_numbers = #tpu.dot_dimension_numbers<[1], [0], [0], [1], [0, 0, 1, 1], [], []>} : vector<256x128xf32>, vector<128x128xf32>, vector<256x128xf32> -> vector<256x128xf32>
    %92 = vector.extract_strided_slice %0 {offsets = [4, 0], sizes = [1, 128], strides = [1, 1]} : vector<21x128xf32> to vector<1x128xf32>
    %93 = vector.broadcast %92 : vector<1x128xf32> to vector<256x128xf32>
    %94 = arith.addf %91, %93 : vector<256x128xf32>
    %95 = vector.extract_strided_slice %0 {offsets = [5, 0], sizes = [1, 128], strides = [1, 1]} : vector<21x128xf32> to vector<1x128xf32>
    %96 = vector.extract_strided_slice %0 {offsets = [6, 0], sizes = [1, 128], strides = [1, 1]} : vector<21x128xf32> to vector<1x128xf32>
    %97 = vector.extract_strided_slice %0 {offsets = [7, 0], sizes = [1, 128], strides = [1, 1]} : vector<21x128xf32> to vector<1x128xf32>
    %cst_22 = arith.constant dense<0.000000e+00> : vector<128xf32>
    %98 = vector.multi_reduction <add>, %94, %cst_22 [0] : vector<256x128xf32> to vector<128xf32>
    %99 = vector.shape_cast %98 : vector<128xf32> to vector<1x128xf32>
    %100 = arith.mulf %94, %94 : vector<256x128xf32>
    %cst_23 = arith.constant dense<0.000000e+00> : vector<128xf32>
    %101 = vector.multi_reduction <add>, %100, %cst_23 [0] : vector<256x128xf32> to vector<128xf32>
    %102 = vector.shape_cast %101 : vector<128xf32> to vector<1x128xf32>
    %cst_24 = arith.constant 3.906250e-03 : f32
    %103 = vector.broadcast %cst_24 : f32 to vector<1x128xf32>
    %104 = arith.mulf %99, %103 : vector<1x128xf32>
    %cst_25 = arith.constant 3.906250e-03 : f32
    %105 = vector.broadcast %cst_25 : f32 to vector<1x128xf32>
    %106 = arith.mulf %102, %105 : vector<1x128xf32>
    %107 = arith.mulf %104, %104 : vector<1x128xf32>
    %108 = arith.subf %106, %107 : vector<1x128xf32>
    %cst_26 = arith.constant 9.99999974E-6 : f32
    %109 = vector.broadcast %cst_26 : f32 to vector<1x128xf32>
    %110 = arith.addf %108, %109 : vector<1x128xf32>
    %111 = math.rsqrt %110 : vector<1x128xf32>
    %112 = arith.mulf %95, %111 : vector<1x128xf32>
    %113 = arith.mulf %104, %112 : vector<1x128xf32>
    %114 = arith.subf %96, %113 : vector<1x128xf32>
    %115 = vector.shape_cast %112 : vector<1x128xf32> to vector<1x128xf32>
    %116 = vector.broadcast %115 : vector<1x128xf32> to vector<32x128xf32>
    %117 = vector.shape_cast %114 : vector<1x128xf32> to vector<1x128xf32>
    %118 = vector.broadcast %117 : vector<1x128xf32> to vector<32x128xf32>
    %119 = vector.shape_cast %97 : vector<1x128xf32> to vector<1x128xf32>
    %120 = vector.broadcast %119 : vector<1x128xf32> to vector<32x128xf32>
    %121 = vector.extract_strided_slice %94 {offsets = [0, 0], sizes = [32, 128], strides = [1, 1]} : vector<256x128xf32> to vector<32x128xf32>
    %122 = arith.mulf %121, %116 : vector<32x128xf32>
    %123 = arith.addf %122, %118 : vector<32x128xf32>
    %cst_27 = arith.constant 0.000000e+00 : f32
    %124 = vector.broadcast %cst_27 : f32 to vector<32x128xf32>
    %125 = arith.maximumf %123, %124 : vector<32x128xf32>
    %126 = vector.extract_strided_slice %94 {offsets = [32, 0], sizes = [32, 128], strides = [1, 1]} : vector<256x128xf32> to vector<32x128xf32>
    %127 = arith.mulf %126, %116 : vector<32x128xf32>
    %128 = arith.addf %127, %118 : vector<32x128xf32>
    %129 = arith.mulf %120, %125 : vector<32x128xf32>
    %130 = arith.addf %128, %129 : vector<32x128xf32>
    %cst_28 = arith.constant 0.000000e+00 : f32
    %131 = vector.broadcast %cst_28 : f32 to vector<32x128xf32>
    %132 = arith.maximumf %130, %131 : vector<32x128xf32>
    %133 = vector.extract_strided_slice %94 {offsets = [64, 0], sizes = [32, 128], strides = [1, 1]} : vector<256x128xf32> to vector<32x128xf32>
    %134 = arith.mulf %133, %116 : vector<32x128xf32>
    %135 = arith.addf %134, %118 : vector<32x128xf32>
    %136 = arith.mulf %120, %132 : vector<32x128xf32>
    %137 = arith.addf %135, %136 : vector<32x128xf32>
    %cst_29 = arith.constant 0.000000e+00 : f32
    %138 = vector.broadcast %cst_29 : f32 to vector<32x128xf32>
    %139 = arith.maximumf %137, %138 : vector<32x128xf32>
    %140 = vector.extract_strided_slice %94 {offsets = [96, 0], sizes = [32, 128], strides = [1, 1]} : vector<256x128xf32> to vector<32x128xf32>
    %141 = arith.mulf %140, %116 : vector<32x128xf32>
    %142 = arith.addf %141, %118 : vector<32x128xf32>
    %143 = arith.mulf %120, %139 : vector<32x128xf32>
    %144 = arith.addf %142, %143 : vector<32x128xf32>
    %cst_30 = arith.constant 0.000000e+00 : f32
    %145 = vector.broadcast %cst_30 : f32 to vector<32x128xf32>
    %146 = arith.maximumf %144, %145 : vector<32x128xf32>
    %147 = vector.extract_strided_slice %94 {offsets = [128, 0], sizes = [32, 128], strides = [1, 1]} : vector<256x128xf32> to vector<32x128xf32>
    %148 = arith.mulf %147, %116 : vector<32x128xf32>
    %149 = arith.addf %148, %118 : vector<32x128xf32>
    %150 = arith.mulf %120, %146 : vector<32x128xf32>
    %151 = arith.addf %149, %150 : vector<32x128xf32>
    %cst_31 = arith.constant 0.000000e+00 : f32
    %152 = vector.broadcast %cst_31 : f32 to vector<32x128xf32>
    %153 = arith.maximumf %151, %152 : vector<32x128xf32>
    %154 = vector.extract_strided_slice %94 {offsets = [160, 0], sizes = [32, 128], strides = [1, 1]} : vector<256x128xf32> to vector<32x128xf32>
    %155 = arith.mulf %154, %116 : vector<32x128xf32>
    %156 = arith.addf %155, %118 : vector<32x128xf32>
    %157 = arith.mulf %120, %153 : vector<32x128xf32>
    %158 = arith.addf %156, %157 : vector<32x128xf32>
    %cst_32 = arith.constant 0.000000e+00 : f32
    %159 = vector.broadcast %cst_32 : f32 to vector<32x128xf32>
    %160 = arith.maximumf %158, %159 : vector<32x128xf32>
    %161 = vector.extract_strided_slice %94 {offsets = [192, 0], sizes = [32, 128], strides = [1, 1]} : vector<256x128xf32> to vector<32x128xf32>
    %162 = arith.mulf %161, %116 : vector<32x128xf32>
    %163 = arith.addf %162, %118 : vector<32x128xf32>
    %164 = arith.mulf %120, %160 : vector<32x128xf32>
    %165 = arith.addf %163, %164 : vector<32x128xf32>
    %cst_33 = arith.constant 0.000000e+00 : f32
    %166 = vector.broadcast %cst_33 : f32 to vector<32x128xf32>
    %167 = arith.maximumf %165, %166 : vector<32x128xf32>
    %168 = vector.extract_strided_slice %94 {offsets = [224, 0], sizes = [32, 128], strides = [1, 1]} : vector<256x128xf32> to vector<32x128xf32>
    %169 = arith.mulf %168, %116 : vector<32x128xf32>
    %170 = arith.addf %169, %118 : vector<32x128xf32>
    %171 = arith.mulf %120, %167 : vector<32x128xf32>
    %172 = arith.addf %170, %171 : vector<32x128xf32>
    %cst_34 = arith.constant 0.000000e+00 : f32
    %173 = vector.broadcast %cst_34 : f32 to vector<32x128xf32>
    %174 = arith.maximumf %172, %173 : vector<32x128xf32>
    %175 = tpu.concatenate %125, %132, %139, %146, %153, %160, %167, %174 in 0 : vector<32x128xf32>, vector<32x128xf32>, vector<32x128xf32>, vector<32x128xf32>, vector<32x128xf32>, vector<32x128xf32>, vector<32x128xf32>, vector<32x128xf32> -> vector<256x128xf32>
    %c2 = arith.constant 2 : index
    %c0_35 = arith.constant 0 : index
    %c0_36 = arith.constant 0 : index
    %176 = vector.load %arg1[%c2, %c0_35, %c0_36] : memref<6x128x128xf32, #tpu.memory_space<vmem>>, vector<1x128x128xf32>
    %177 = vector.shape_cast %176 : vector<1x128x128xf32> to vector<128x128xf32>
    %cst_37 = arith.constant dense<0.000000e+00> : vector<256x128xf32>
    %178 = tpu.matmul %175, %177, %cst_37 {dimension_numbers = #tpu.dot_dimension_numbers<[1], [0], [0], [1], [0, 0, 1, 1], [], []>} : vector<256x128xf32>, vector<128x128xf32>, vector<256x128xf32> -> vector<256x128xf32>
    %179 = vector.extract_strided_slice %0 {offsets = [8, 0], sizes = [1, 128], strides = [1, 1]} : vector<21x128xf32> to vector<1x128xf32>
    %180 = vector.broadcast %179 : vector<1x128xf32> to vector<256x128xf32>
    %181 = arith.addf %178, %180 : vector<256x128xf32>
    %182 = arith.addf %7, %181 : vector<256x128xf32>
    %183 = vector.extract_strided_slice %0 {offsets = [9, 0], sizes = [1, 128], strides = [1, 1]} : vector<21x128xf32> to vector<1x128xf32>
    %184 = vector.extract_strided_slice %0 {offsets = [10, 0], sizes = [1, 128], strides = [1, 1]} : vector<21x128xf32> to vector<1x128xf32>
    %185 = vector.extract_strided_slice %0 {offsets = [11, 0], sizes = [1, 128], strides = [1, 1]} : vector<21x128xf32> to vector<1x128xf32>
    %cst_38 = arith.constant dense<0.000000e+00> : vector<128xf32>
    %186 = vector.multi_reduction <add>, %182, %cst_38 [0] : vector<256x128xf32> to vector<128xf32>
    %187 = vector.shape_cast %186 : vector<128xf32> to vector<1x128xf32>
    %188 = arith.mulf %182, %182 : vector<256x128xf32>
    %cst_39 = arith.constant dense<0.000000e+00> : vector<128xf32>
    %189 = vector.multi_reduction <add>, %188, %cst_39 [0] : vector<256x128xf32> to vector<128xf32>
    %190 = vector.shape_cast %189 : vector<128xf32> to vector<1x128xf32>
    %cst_40 = arith.constant 3.906250e-03 : f32
    %191 = vector.broadcast %cst_40 : f32 to vector<1x128xf32>
    %192 = arith.mulf %187, %191 : vector<1x128xf32>
    %cst_41 = arith.constant 3.906250e-03 : f32
    %193 = vector.broadcast %cst_41 : f32 to vector<1x128xf32>
    %194 = arith.mulf %190, %193 : vector<1x128xf32>
    %195 = arith.mulf %192, %192 : vector<1x128xf32>
    %196 = arith.subf %194, %195 : vector<1x128xf32>
    %cst_42 = arith.constant 9.99999974E-6 : f32
    %197 = vector.broadcast %cst_42 : f32 to vector<1x128xf32>
    %198 = arith.addf %196, %197 : vector<1x128xf32>
    %199 = math.rsqrt %198 : vector<1x128xf32>
    %200 = arith.mulf %183, %199 : vector<1x128xf32>
    %201 = arith.mulf %192, %200 : vector<1x128xf32>
    %202 = arith.subf %184, %201 : vector<1x128xf32>
    %203 = vector.shape_cast %200 : vector<1x128xf32> to vector<1x128xf32>
    %204 = vector.broadcast %203 : vector<1x128xf32> to vector<32x128xf32>
    %205 = vector.shape_cast %202 : vector<1x128xf32> to vector<1x128xf32>
    %206 = vector.broadcast %205 : vector<1x128xf32> to vector<32x128xf32>
    %207 = vector.shape_cast %185 : vector<1x128xf32> to vector<1x128xf32>
    %208 = vector.broadcast %207 : vector<1x128xf32> to vector<32x128xf32>
    %209 = vector.extract_strided_slice %182 {offsets = [0, 0], sizes = [32, 128], strides = [1, 1]} : vector<256x128xf32> to vector<32x128xf32>
    %210 = arith.mulf %209, %204 : vector<32x128xf32>
    %211 = arith.addf %210, %206 : vector<32x128xf32>
    %cst_43 = arith.constant 0.000000e+00 : f32
    %212 = vector.broadcast %cst_43 : f32 to vector<32x128xf32>
    %213 = arith.maximumf %211, %212 : vector<32x128xf32>
    %214 = vector.extract_strided_slice %182 {offsets = [32, 0], sizes = [32, 128], strides = [1, 1]} : vector<256x128xf32> to vector<32x128xf32>
    %215 = arith.mulf %214, %204 : vector<32x128xf32>
    %216 = arith.addf %215, %206 : vector<32x128xf32>
    %217 = arith.mulf %208, %213 : vector<32x128xf32>
    %218 = arith.addf %216, %217 : vector<32x128xf32>
    %cst_44 = arith.constant 0.000000e+00 : f32
    %219 = vector.broadcast %cst_44 : f32 to vector<32x128xf32>
    %220 = arith.maximumf %218, %219 : vector<32x128xf32>
    %221 = vector.extract_strided_slice %182 {offsets = [64, 0], sizes = [32, 128], strides = [1, 1]} : vector<256x128xf32> to vector<32x128xf32>
    %222 = arith.mulf %221, %204 : vector<32x128xf32>
    %223 = arith.addf %222, %206 : vector<32x128xf32>
    %224 = arith.mulf %208, %220 : vector<32x128xf32>
    %225 = arith.addf %223, %224 : vector<32x128xf32>
    %cst_45 = arith.constant 0.000000e+00 : f32
    %226 = vector.broadcast %cst_45 : f32 to vector<32x128xf32>
    %227 = arith.maximumf %225, %226 : vector<32x128xf32>
    %228 = vector.extract_strided_slice %182 {offsets = [96, 0], sizes = [32, 128], strides = [1, 1]} : vector<256x128xf32> to vector<32x128xf32>
    %229 = arith.mulf %228, %204 : vector<32x128xf32>
    %230 = arith.addf %229, %206 : vector<32x128xf32>
    %231 = arith.mulf %208, %227 : vector<32x128xf32>
    %232 = arith.addf %230, %231 : vector<32x128xf32>
    %cst_46 = arith.constant 0.000000e+00 : f32
    %233 = vector.broadcast %cst_46 : f32 to vector<32x128xf32>
    %234 = arith.maximumf %232, %233 : vector<32x128xf32>
    %235 = vector.extract_strided_slice %182 {offsets = [128, 0], sizes = [32, 128], strides = [1, 1]} : vector<256x128xf32> to vector<32x128xf32>
    %236 = arith.mulf %235, %204 : vector<32x128xf32>
    %237 = arith.addf %236, %206 : vector<32x128xf32>
    %238 = arith.mulf %208, %234 : vector<32x128xf32>
    %239 = arith.addf %237, %238 : vector<32x128xf32>
    %cst_47 = arith.constant 0.000000e+00 : f32
    %240 = vector.broadcast %cst_47 : f32 to vector<32x128xf32>
    %241 = arith.maximumf %239, %240 : vector<32x128xf32>
    %242 = vector.extract_strided_slice %182 {offsets = [160, 0], sizes = [32, 128], strides = [1, 1]} : vector<256x128xf32> to vector<32x128xf32>
    %243 = arith.mulf %242, %204 : vector<32x128xf32>
    %244 = arith.addf %243, %206 : vector<32x128xf32>
    %245 = arith.mulf %208, %241 : vector<32x128xf32>
    %246 = arith.addf %244, %245 : vector<32x128xf32>
    %cst_48 = arith.constant 0.000000e+00 : f32
    %247 = vector.broadcast %cst_48 : f32 to vector<32x128xf32>
    %248 = arith.maximumf %246, %247 : vector<32x128xf32>
    %249 = vector.extract_strided_slice %182 {offsets = [192, 0], sizes = [32, 128], strides = [1, 1]} : vector<256x128xf32> to vector<32x128xf32>
    %250 = arith.mulf %249, %204 : vector<32x128xf32>
    %251 = arith.addf %250, %206 : vector<32x128xf32>
    %252 = arith.mulf %208, %248 : vector<32x128xf32>
    %253 = arith.addf %251, %252 : vector<32x128xf32>
    %cst_49 = arith.constant 0.000000e+00 : f32
    %254 = vector.broadcast %cst_49 : f32 to vector<32x128xf32>
    %255 = arith.maximumf %253, %254 : vector<32x128xf32>
    %256 = vector.extract_strided_slice %182 {offsets = [224, 0], sizes = [32, 128], strides = [1, 1]} : vector<256x128xf32> to vector<32x128xf32>
    %257 = arith.mulf %256, %204 : vector<32x128xf32>
    %258 = arith.addf %257, %206 : vector<32x128xf32>
    %259 = arith.mulf %208, %255 : vector<32x128xf32>
    %260 = arith.addf %258, %259 : vector<32x128xf32>
    %cst_50 = arith.constant 0.000000e+00 : f32
    %261 = vector.broadcast %cst_50 : f32 to vector<32x128xf32>
    %262 = arith.maximumf %260, %261 : vector<32x128xf32>
    %263 = tpu.concatenate %213, %220, %227, %234, %241, %248, %255, %262 in 0 : vector<32x128xf32>, vector<32x128xf32>, vector<32x128xf32>, vector<32x128xf32>, vector<32x128xf32>, vector<32x128xf32>, vector<32x128xf32>, vector<32x128xf32> -> vector<256x128xf32>
    %c3 = arith.constant 3 : index
    %c0_51 = arith.constant 0 : index
    %c0_52 = arith.constant 0 : index
    %264 = vector.load %arg1[%c3, %c0_51, %c0_52] : memref<6x128x128xf32, #tpu.memory_space<vmem>>, vector<1x128x128xf32>
    %265 = vector.shape_cast %264 : vector<1x128x128xf32> to vector<128x128xf32>
    %cst_53 = arith.constant dense<0.000000e+00> : vector<256x128xf32>
    %266 = tpu.matmul %263, %265, %cst_53 {dimension_numbers = #tpu.dot_dimension_numbers<[1], [0], [0], [1], [0, 0, 1, 1], [], []>} : vector<256x128xf32>, vector<128x128xf32>, vector<256x128xf32> -> vector<256x128xf32>
    %267 = vector.extract_strided_slice %0 {offsets = [12, 0], sizes = [1, 128], strides = [1, 1]} : vector<21x128xf32> to vector<1x128xf32>
    %268 = vector.broadcast %267 : vector<1x128xf32> to vector<256x128xf32>
    %269 = arith.addf %266, %268 : vector<256x128xf32>
    %270 = vector.extract_strided_slice %0 {offsets = [13, 0], sizes = [1, 128], strides = [1, 1]} : vector<21x128xf32> to vector<1x128xf32>
    %271 = vector.extract_strided_slice %0 {offsets = [14, 0], sizes = [1, 128], strides = [1, 1]} : vector<21x128xf32> to vector<1x128xf32>
    %272 = vector.extract_strided_slice %0 {offsets = [15, 0], sizes = [1, 128], strides = [1, 1]} : vector<21x128xf32> to vector<1x128xf32>
    %cst_54 = arith.constant dense<0.000000e+00> : vector<128xf32>
    %273 = vector.multi_reduction <add>, %269, %cst_54 [0] : vector<256x128xf32> to vector<128xf32>
    %274 = vector.shape_cast %273 : vector<128xf32> to vector<1x128xf32>
    %275 = arith.mulf %269, %269 : vector<256x128xf32>
    %cst_55 = arith.constant dense<0.000000e+00> : vector<128xf32>
    %276 = vector.multi_reduction <add>, %275, %cst_55 [0] : vector<256x128xf32> to vector<128xf32>
    %277 = vector.shape_cast %276 : vector<128xf32> to vector<1x128xf32>
    %cst_56 = arith.constant 3.906250e-03 : f32
    %278 = vector.broadcast %cst_56 : f32 to vector<1x128xf32>
    %279 = arith.mulf %274, %278 : vector<1x128xf32>
    %cst_57 = arith.constant 3.906250e-03 : f32
    %280 = vector.broadcast %cst_57 : f32 to vector<1x128xf32>
    %281 = arith.mulf %277, %280 : vector<1x128xf32>
    %282 = arith.mulf %279, %279 : vector<1x128xf32>
    %283 = arith.subf %281, %282 : vector<1x128xf32>
    %cst_58 = arith.constant 9.99999974E-6 : f32
    %284 = vector.broadcast %cst_58 : f32 to vector<1x128xf32>
    %285 = arith.addf %283, %284 : vector<1x128xf32>
    %286 = math.rsqrt %285 : vector<1x128xf32>
    %287 = arith.mulf %270, %286 : vector<1x128xf32>
    %288 = arith.mulf %279, %287 : vector<1x128xf32>
    %289 = arith.subf %271, %288 : vector<1x128xf32>
    %290 = vector.shape_cast %287 : vector<1x128xf32> to vector<1x128xf32>
    %291 = vector.broadcast %290 : vector<1x128xf32> to vector<32x128xf32>
    %292 = vector.shape_cast %289 : vector<1x128xf32> to vector<1x128xf32>
    %293 = vector.broadcast %292 : vector<1x128xf32> to vector<32x128xf32>
    %294 = vector.shape_cast %272 : vector<1x128xf32> to vector<1x128xf32>
    %295 = vector.broadcast %294 : vector<1x128xf32> to vector<32x128xf32>
    %296 = vector.extract_strided_slice %269 {offsets = [0, 0], sizes = [32, 128], strides = [1, 1]} : vector<256x128xf32> to vector<32x128xf32>
    %297 = arith.mulf %296, %291 : vector<32x128xf32>
    %298 = arith.addf %297, %293 : vector<32x128xf32>
    %cst_59 = arith.constant 0.000000e+00 : f32
    %299 = vector.broadcast %cst_59 : f32 to vector<32x128xf32>
    %300 = arith.maximumf %298, %299 : vector<32x128xf32>
    %301 = vector.extract_strided_slice %269 {offsets = [32, 0], sizes = [32, 128], strides = [1, 1]} : vector<256x128xf32> to vector<32x128xf32>
    %302 = arith.mulf %301, %291 : vector<32x128xf32>
    %303 = arith.addf %302, %293 : vector<32x128xf32>
    %304 = arith.mulf %295, %300 : vector<32x128xf32>
    %305 = arith.addf %303, %304 : vector<32x128xf32>
    %cst_60 = arith.constant 0.000000e+00 : f32
    %306 = vector.broadcast %cst_60 : f32 to vector<32x128xf32>
    %307 = arith.maximumf %305, %306 : vector<32x128xf32>
    %308 = vector.extract_strided_slice %269 {offsets = [64, 0], sizes = [32, 128], strides = [1, 1]} : vector<256x128xf32> to vector<32x128xf32>
    %309 = arith.mulf %308, %291 : vector<32x128xf32>
    %310 = arith.addf %309, %293 : vector<32x128xf32>
    %311 = arith.mulf %295, %307 : vector<32x128xf32>
    %312 = arith.addf %310, %311 : vector<32x128xf32>
    %cst_61 = arith.constant 0.000000e+00 : f32
    %313 = vector.broadcast %cst_61 : f32 to vector<32x128xf32>
    %314 = arith.maximumf %312, %313 : vector<32x128xf32>
    %315 = vector.extract_strided_slice %269 {offsets = [96, 0], sizes = [32, 128], strides = [1, 1]} : vector<256x128xf32> to vector<32x128xf32>
    %316 = arith.mulf %315, %291 : vector<32x128xf32>
    %317 = arith.addf %316, %293 : vector<32x128xf32>
    %318 = arith.mulf %295, %314 : vector<32x128xf32>
    %319 = arith.addf %317, %318 : vector<32x128xf32>
    %cst_62 = arith.constant 0.000000e+00 : f32
    %320 = vector.broadcast %cst_62 : f32 to vector<32x128xf32>
    %321 = arith.maximumf %319, %320 : vector<32x128xf32>
    %322 = vector.extract_strided_slice %269 {offsets = [128, 0], sizes = [32, 128], strides = [1, 1]} : vector<256x128xf32> to vector<32x128xf32>
    %323 = arith.mulf %322, %291 : vector<32x128xf32>
    %324 = arith.addf %323, %293 : vector<32x128xf32>
    %325 = arith.mulf %295, %321 : vector<32x128xf32>
    %326 = arith.addf %324, %325 : vector<32x128xf32>
    %cst_63 = arith.constant 0.000000e+00 : f32
    %327 = vector.broadcast %cst_63 : f32 to vector<32x128xf32>
    %328 = arith.maximumf %326, %327 : vector<32x128xf32>
    %329 = vector.extract_strided_slice %269 {offsets = [160, 0], sizes = [32, 128], strides = [1, 1]} : vector<256x128xf32> to vector<32x128xf32>
    %330 = arith.mulf %329, %291 : vector<32x128xf32>
    %331 = arith.addf %330, %293 : vector<32x128xf32>
    %332 = arith.mulf %295, %328 : vector<32x128xf32>
    %333 = arith.addf %331, %332 : vector<32x128xf32>
    %cst_64 = arith.constant 0.000000e+00 : f32
    %334 = vector.broadcast %cst_64 : f32 to vector<32x128xf32>
    %335 = arith.maximumf %333, %334 : vector<32x128xf32>
    %336 = vector.extract_strided_slice %269 {offsets = [192, 0], sizes = [32, 128], strides = [1, 1]} : vector<256x128xf32> to vector<32x128xf32>
    %337 = arith.mulf %336, %291 : vector<32x128xf32>
    %338 = arith.addf %337, %293 : vector<32x128xf32>
    %339 = arith.mulf %295, %335 : vector<32x128xf32>
    %340 = arith.addf %338, %339 : vector<32x128xf32>
    %cst_65 = arith.constant 0.000000e+00 : f32
    %341 = vector.broadcast %cst_65 : f32 to vector<32x128xf32>
    %342 = arith.maximumf %340, %341 : vector<32x128xf32>
    %343 = vector.extract_strided_slice %269 {offsets = [224, 0], sizes = [32, 128], strides = [1, 1]} : vector<256x128xf32> to vector<32x128xf32>
    %344 = arith.mulf %343, %291 : vector<32x128xf32>
    %345 = arith.addf %344, %293 : vector<32x128xf32>
    %346 = arith.mulf %295, %342 : vector<32x128xf32>
    %347 = arith.addf %345, %346 : vector<32x128xf32>
    %cst_66 = arith.constant 0.000000e+00 : f32
    %348 = vector.broadcast %cst_66 : f32 to vector<32x128xf32>
    %349 = arith.maximumf %347, %348 : vector<32x128xf32>
    %350 = tpu.concatenate %300, %307, %314, %321, %328, %335, %342, %349 in 0 : vector<32x128xf32>, vector<32x128xf32>, vector<32x128xf32>, vector<32x128xf32>, vector<32x128xf32>, vector<32x128xf32>, vector<32x128xf32>, vector<32x128xf32> -> vector<256x128xf32>
    %c4 = arith.constant 4 : index
    %c0_67 = arith.constant 0 : index
    %c0_68 = arith.constant 0 : index
    %351 = vector.load %arg1[%c4, %c0_67, %c0_68] : memref<6x128x128xf32, #tpu.memory_space<vmem>>, vector<1x128x128xf32>
    %352 = vector.shape_cast %351 : vector<1x128x128xf32> to vector<128x128xf32>
    %cst_69 = arith.constant dense<0.000000e+00> : vector<256x128xf32>
    %353 = tpu.matmul %350, %352, %cst_69 {dimension_numbers = #tpu.dot_dimension_numbers<[1], [0], [0], [1], [0, 0, 1, 1], [], []>} : vector<256x128xf32>, vector<128x128xf32>, vector<256x128xf32> -> vector<256x128xf32>
    %354 = vector.extract_strided_slice %0 {offsets = [16, 0], sizes = [1, 128], strides = [1, 1]} : vector<21x128xf32> to vector<1x128xf32>
    %355 = vector.broadcast %354 : vector<1x128xf32> to vector<256x128xf32>
    %356 = arith.addf %353, %355 : vector<256x128xf32>
    %357 = arith.addf %182, %356 : vector<256x128xf32>
    %358 = vector.extract_strided_slice %0 {offsets = [17, 0], sizes = [1, 128], strides = [1, 1]} : vector<21x128xf32> to vector<1x128xf32>
    %359 = vector.extract_strided_slice %0 {offsets = [18, 0], sizes = [1, 128], strides = [1, 1]} : vector<21x128xf32> to vector<1x128xf32>
    %360 = vector.extract_strided_slice %0 {offsets = [19, 0], sizes = [1, 128], strides = [1, 1]} : vector<21x128xf32> to vector<1x128xf32>
    %cst_70 = arith.constant dense<0.000000e+00> : vector<128xf32>
    %361 = vector.multi_reduction <add>, %357, %cst_70 [0] : vector<256x128xf32> to vector<128xf32>
    %362 = vector.shape_cast %361 : vector<128xf32> to vector<1x128xf32>
    %363 = arith.mulf %357, %357 : vector<256x128xf32>
    %cst_71 = arith.constant dense<0.000000e+00> : vector<128xf32>
    %364 = vector.multi_reduction <add>, %363, %cst_71 [0] : vector<256x128xf32> to vector<128xf32>
    %365 = vector.shape_cast %364 : vector<128xf32> to vector<1x128xf32>
    %cst_72 = arith.constant 3.906250e-03 : f32
    %366 = vector.broadcast %cst_72 : f32 to vector<1x128xf32>
    %367 = arith.mulf %362, %366 : vector<1x128xf32>
    %cst_73 = arith.constant 3.906250e-03 : f32
    %368 = vector.broadcast %cst_73 : f32 to vector<1x128xf32>
    %369 = arith.mulf %365, %368 : vector<1x128xf32>
    %370 = arith.mulf %367, %367 : vector<1x128xf32>
    %371 = arith.subf %369, %370 : vector<1x128xf32>
    %cst_74 = arith.constant 9.99999974E-6 : f32
    %372 = vector.broadcast %cst_74 : f32 to vector<1x128xf32>
    %373 = arith.addf %371, %372 : vector<1x128xf32>
    %374 = math.rsqrt %373 : vector<1x128xf32>
    %375 = arith.mulf %358, %374 : vector<1x128xf32>
    %376 = arith.mulf %367, %375 : vector<1x128xf32>
    %377 = arith.subf %359, %376 : vector<1x128xf32>
    %378 = vector.shape_cast %375 : vector<1x128xf32> to vector<1x128xf32>
    %379 = vector.broadcast %378 : vector<1x128xf32> to vector<32x128xf32>
    %380 = vector.shape_cast %377 : vector<1x128xf32> to vector<1x128xf32>
    %381 = vector.broadcast %380 : vector<1x128xf32> to vector<32x128xf32>
    %382 = vector.shape_cast %360 : vector<1x128xf32> to vector<1x128xf32>
    %383 = vector.broadcast %382 : vector<1x128xf32> to vector<32x128xf32>
    %384 = vector.extract_strided_slice %357 {offsets = [0, 0], sizes = [32, 128], strides = [1, 1]} : vector<256x128xf32> to vector<32x128xf32>
    %385 = arith.mulf %384, %379 : vector<32x128xf32>
    %386 = arith.addf %385, %381 : vector<32x128xf32>
    %cst_75 = arith.constant 0.000000e+00 : f32
    %387 = vector.broadcast %cst_75 : f32 to vector<32x128xf32>
    %388 = arith.maximumf %386, %387 : vector<32x128xf32>
    %389 = vector.extract_strided_slice %357 {offsets = [32, 0], sizes = [32, 128], strides = [1, 1]} : vector<256x128xf32> to vector<32x128xf32>
    %390 = arith.mulf %389, %379 : vector<32x128xf32>
    %391 = arith.addf %390, %381 : vector<32x128xf32>
    %392 = arith.mulf %383, %388 : vector<32x128xf32>
    %393 = arith.addf %391, %392 : vector<32x128xf32>
    %cst_76 = arith.constant 0.000000e+00 : f32
    %394 = vector.broadcast %cst_76 : f32 to vector<32x128xf32>
    %395 = arith.maximumf %393, %394 : vector<32x128xf32>
    %396 = vector.extract_strided_slice %357 {offsets = [64, 0], sizes = [32, 128], strides = [1, 1]} : vector<256x128xf32> to vector<32x128xf32>
    %397 = arith.mulf %396, %379 : vector<32x128xf32>
    %398 = arith.addf %397, %381 : vector<32x128xf32>
    %399 = arith.mulf %383, %395 : vector<32x128xf32>
    %400 = arith.addf %398, %399 : vector<32x128xf32>
    %cst_77 = arith.constant 0.000000e+00 : f32
    %401 = vector.broadcast %cst_77 : f32 to vector<32x128xf32>
    %402 = arith.maximumf %400, %401 : vector<32x128xf32>
    %403 = vector.extract_strided_slice %357 {offsets = [96, 0], sizes = [32, 128], strides = [1, 1]} : vector<256x128xf32> to vector<32x128xf32>
    %404 = arith.mulf %403, %379 : vector<32x128xf32>
    %405 = arith.addf %404, %381 : vector<32x128xf32>
    %406 = arith.mulf %383, %402 : vector<32x128xf32>
    %407 = arith.addf %405, %406 : vector<32x128xf32>
    %cst_78 = arith.constant 0.000000e+00 : f32
    %408 = vector.broadcast %cst_78 : f32 to vector<32x128xf32>
    %409 = arith.maximumf %407, %408 : vector<32x128xf32>
    %410 = vector.extract_strided_slice %357 {offsets = [128, 0], sizes = [32, 128], strides = [1, 1]} : vector<256x128xf32> to vector<32x128xf32>
    %411 = arith.mulf %410, %379 : vector<32x128xf32>
    %412 = arith.addf %411, %381 : vector<32x128xf32>
    %413 = arith.mulf %383, %409 : vector<32x128xf32>
    %414 = arith.addf %412, %413 : vector<32x128xf32>
    %cst_79 = arith.constant 0.000000e+00 : f32
    %415 = vector.broadcast %cst_79 : f32 to vector<32x128xf32>
    %416 = arith.maximumf %414, %415 : vector<32x128xf32>
    %417 = vector.extract_strided_slice %357 {offsets = [160, 0], sizes = [32, 128], strides = [1, 1]} : vector<256x128xf32> to vector<32x128xf32>
    %418 = arith.mulf %417, %379 : vector<32x128xf32>
    %419 = arith.addf %418, %381 : vector<32x128xf32>
    %420 = arith.mulf %383, %416 : vector<32x128xf32>
    %421 = arith.addf %419, %420 : vector<32x128xf32>
    %cst_80 = arith.constant 0.000000e+00 : f32
    %422 = vector.broadcast %cst_80 : f32 to vector<32x128xf32>
    %423 = arith.maximumf %421, %422 : vector<32x128xf32>
    %424 = vector.extract_strided_slice %357 {offsets = [192, 0], sizes = [32, 128], strides = [1, 1]} : vector<256x128xf32> to vector<32x128xf32>
    %425 = arith.mulf %424, %379 : vector<32x128xf32>
    %426 = arith.addf %425, %381 : vector<32x128xf32>
    %427 = arith.mulf %383, %423 : vector<32x128xf32>
    %428 = arith.addf %426, %427 : vector<32x128xf32>
    %cst_81 = arith.constant 0.000000e+00 : f32
    %429 = vector.broadcast %cst_81 : f32 to vector<32x128xf32>
    %430 = arith.maximumf %428, %429 : vector<32x128xf32>
    %431 = vector.extract_strided_slice %357 {offsets = [224, 0], sizes = [32, 128], strides = [1, 1]} : vector<256x128xf32> to vector<32x128xf32>
    %432 = arith.mulf %431, %379 : vector<32x128xf32>
    %433 = arith.addf %432, %381 : vector<32x128xf32>
    %434 = arith.mulf %383, %430 : vector<32x128xf32>
    %435 = arith.addf %433, %434 : vector<32x128xf32>
    %cst_82 = arith.constant 0.000000e+00 : f32
    %436 = vector.broadcast %cst_82 : f32 to vector<32x128xf32>
    %437 = arith.maximumf %435, %436 : vector<32x128xf32>
    %c5 = arith.constant 5 : index
    %c0_83 = arith.constant 0 : index
    %c0_84 = arith.constant 0 : index
    %438 = vector.load %arg1[%c5, %c0_83, %c0_84] : memref<6x128x128xf32, #tpu.memory_space<vmem>>, vector<1x128x128xf32>
    %439 = vector.shape_cast %438 : vector<1x128x128xf32> to vector<128x128xf32>
    %cst_85 = arith.constant dense<0.000000e+00> : vector<32x128xf32>
    %440 = tpu.matmul %437, %439, %cst_85 {dimension_numbers = #tpu.dot_dimension_numbers<[1], [0], [0], [1], [0, 0, 1, 1], [], []>} : vector<32x128xf32>, vector<128x128xf32>, vector<32x128xf32> -> vector<32x128xf32>
    %441 = vector.extract_strided_slice %0 {offsets = [20, 0], sizes = [1, 128], strides = [1, 1]} : vector<21x128xf32> to vector<1x128xf32>
    %442 = vector.broadcast %441 : vector<1x128xf32> to vector<32x128xf32>
    %443 = arith.addf %440, %442 : vector<32x128xf32>
    %c0_86 = arith.constant 0 : index
    %c0_87 = arith.constant 0 : index
    %444 = vector.load %arg3[%c0_86, %c0_87] : memref<32x128xf32, #tpu.memory_space<vmem>>, vector<32x128xf32>
    tpu.vector_store %arg3[%c0_86, %c0_87], %443 {strides = array<i32>} : memref<32x128xf32, #tpu.memory_space<vmem>>, vector<32x128xf32>,
    return
  }
}

</mosaic_0001>

<bundles_post_ra>
// kernel: residual_net_forward.1
= control target key start
LH: loop header
LB: loop body
LE: loop exit
PB: predicated region body
PF: predicated region fallthrough
CT: control target
= control target key end

     0   :  { %s6057_s1 = inlined_call_operand.vmem [shape: f32[6,128,128], index: 1, kind: input, shape index: {}]   ;;  %s6058_s0 = inlined_call_operand.vmem [shape: f32[256,128], index: 0, kind: input, shape index: {}]   ;;  %s6059_s2 = inlined_call_operand.vmem [shape: f32[21,128], index: 2, kind: input, shape index: {}]   ;;  %s6060_s3 = inlined_call_operand.vmem [shape: f32[32,128], index: 3, kind: output, shape index: {}]  }
   0x1   :  { %v49_v0 = vld [vmem:[%s6057_s1] sm:$0xff]  ;;  %v50_v1 = vld [vmem:[%s6057_s1 + $0x8] sm:$0xff]  ;;  %v51_v2 = vld [vmem:[%s6057_s1 + $0x10] sm:$0xff] }
   0x2   :  { %v3644_v3 = vpack.c.bf16 %v50_v1, %v49_v0  ;;  %v52_v4 = vld [vmem:[%s6057_s1 + $0x18] sm:$0xff]  ;;  %v53_v6 = vld [vmem:[%s6057_s1 + $0x20] sm:$0xff]  ;;  %v54_v7 = vld [vmem:[%s6057_s1 + $0x28] sm:$0xff] }
   0x3   :  { %v3648_v5 = vpack.c.bf16 %v52_v4, %v51_v2  ;;  %v3652_v8 = vpack.c.bf16 %v54_v7, %v53_v6  ;;  %v17_v9 = vld [vmem:[%s6058_s0] sm:$0xff]  ;;  %v55_v10 = vld [vmem:[%s6057_s1 + $0x30] sm:$0xff]  ;;  %v56_v11 = vld [vmem:[%s6057_s1 + $0x38] sm:$0xff] }
   0x4   :  { %3645 = vmatprep.subr.bf16.mxu0 %v3644_v3  ;;  %3836 = vmatprep.subr.bf16.mxu1 %v3644_v3  ;;  %v3656_v12 = vpack.c.bf16 %v56_v11, %v55_v10  ;;  %v57_v13 = vld [vmem:[%s6057_s1 + $0x40] sm:$0xff]  ;;  %v58_v14 = vld [vmem:[%s6057_s1 + $0x48] sm:$0xff]  ;;  %v59_v17 = vld [vmem:[%s6057_s1 + $0x50] sm:$0xff] }
   0x5   :  { %3647 = vmatpush3.bf16.msra.mxu0 %v3644_v3  ;;  %3844 = vmatpush3.bf16.msra.mxu1 %v3644_v3  ;;  %v33_v15 = vld [vmem:[%s6058_s0 + $0x80] sm:$0xff]  ;;  %v3660_v16 = vpack.c.bf16 %v58_v14, %v57_v13  ;;  %v60_v18 = vld [vmem:[%s6057_s1 + $0x58] sm:$0xff]  ;;  %v62_v21 = vld [vmem:[%s6057_s1 + $0x68] sm:$0xff] }
   0x6   :  { %3649 = vmatprep.subr.bf16.mxu0 %v3648_v5  ;;  %3837 = vmatprep.subr.bf16.mxu1 %v3648_v5  ;;  %v3664_v19 = vpack.c.bf16 %v60_v18, %v59_v17  ;;  %v61_v20 = vld [vmem:[%s6057_s1 + $0x60] sm:$0xff]  ;;  %v63_v23 = vld [vmem:[%s6057_s1 + $0x70] sm:$0xff]  ;;  %v64_v24 = vld [vmem:[%s6057_s1 + $0x78] sm:$0xff] }
   0x7   :  { %3238 = vmatprep.mubr.f32.mxu0 %v17_v9  ;;  %3262 = vmatprep.mubr.f32.mxu1 %v33_v15  ;;  %v3668_v22 = vpack.c.bf16 %v62_v21, %v61_v20  ;;  %v3672_v25 = vpack.c.bf16 %v64_v24, %v63_v23  ;;  %v18_v26 = vld [vmem:[%s6058_s0 + $0x8] sm:$0xff]  ;;  %v19_v28 = vld [vmem:[%s6058_s0 + $0x10] sm:$0xff]  ;;  %v20_v30 = vld [vmem:[%s6058_s0 + $0x18] sm:$0xff] }
   0x8   :  { %v34_v27 = vld [vmem:[%s6058_s0 + $0x88] sm:$0xff]  ;;  %v35_v29 = vld [vmem:[%s6058_s0 + $0x90] sm:$0xff]  ;;  %v36_v31 = vld [vmem:[%s6058_s0 + $0x98] sm:$0xff] }
   0x9   :  { %3651 = vmatpush3.bf16.msra.mxu0 %v3648_v5  ;;  %3845 = vmatpush3.bf16.msra.mxu1 %v3648_v5  ;;  %v21_v32 = vld [vmem:[%s6058_s0 + $0x20] sm:$0xff]  ;;  %v22_v34 = vld [vmem:[%s6058_s0 + $0x28] sm:$0xff]  ;;  %v23_v36 = vld [vmem:[%s6058_s0 + $0x30] sm:$0xff] }
   0xa   :  { %3653 = vmatprep.subr.bf16.mxu0 %v3652_v8  ;;  %3838 = vmatprep.subr.bf16.mxu1 %v3652_v8  ;;  %v37_v33 = vld [vmem:[%s6058_s0 + $0xa0] sm:$0xff]  ;;  %v38_v35 = vld [vmem:[%s6058_s0 + $0xa8] sm:$0xff]  ;;  %v39_v37 = vld [vmem:[%s6058_s0 + $0xb0] sm:$0xff] }
   0xb   :  { %v24_v38 = vld [vmem:[%s6058_s0 + $0x38] sm:$0xff]  ;;  %v25_v40 = vld [vmem:[%s6058_s0 + $0x40] sm:$0xff]  ;;  %v26_v42 = vld [vmem:[%s6058_s0 + $0x48] sm:$0xff] }
   0xc   :  { %v40_v39 = vld [vmem:[%s6058_s0 + $0xb8] sm:$0xff]  ;;  %v41_v41 = vld [vmem:[%s6058_s0 + $0xc0] sm:$0xff]  ;;  %v42_v43 = vld [vmem:[%s6058_s0 + $0xc8] sm:$0xff] }
   0xd   :  { %3655 = vmatpush3.bf16.msra.mxu0 %v3652_v8  ;;  %3846 = vmatpush3.bf16.msra.mxu1 %v3652_v8  ;;  %v27_v44 = vld [vmem:[%s6058_s0 + $0x50] sm:$0xff]  ;;  %v28_v46 = vld [vmem:[%s6058_s0 + $0x58] sm:$0xff]  ;;  %v29_v48 = vld [vmem:[%s6058_s0 + $0x60] sm:$0xff] }
   0xe   :  { %3657 = vmatprep.subr.bf16.mxu0 %v3656_v12  ;;  %3839 = vmatprep.subr.bf16.mxu1 %v3656_v12  ;;  %v43_v45 = vld [vmem:[%s6058_s0 + $0xd0] sm:$0xff]  ;;  %v44_v47 = vld [vmem:[%s6058_s0 + $0xd8] sm:$0xff]  ;;  %v45_v49 = vld [vmem:[%s6058_s0 + $0xe0] sm:$0xff] }
   0xf   :  { %v30_v50 = vld [vmem:[%s6058_s0 + $0x68] sm:$0xff]  ;;  %v31_v52 = vld [vmem:[%s6058_s0 + $0x70] sm:$0xff]  ;;  %v32_v54 = vld [vmem:[%s6058_s0 + $0x78] sm:$0xff] }
  0x10   :  { %v46_v51 = vld [vmem:[%s6058_s0 + $0xe8] sm:$0xff]  ;;  %v47_v53 = vld [vmem:[%s6058_s0 + $0xf0] sm:$0xff]  ;;  %v48_v55 = vld [vmem:[%s6058_s0 + $0xf8] sm:$0xff] }
  0x11   :  { %3659 = vmatpush3.bf16.msra.mxu0 %v3656_v12  ;;  %3847 = vmatpush3.bf16.msra.mxu1 %v3656_v12  ;;  %v2866_v56 = vld [vmem:[%s6057_s1 + $0x80] sm:$0xff]  ;;  %v2867_v57 = vld [vmem:[%s6057_s1 + $0x88] sm:$0xff]  ;;  %v2868_v59 = vld [vmem:[%s6057_s1 + $0x90] sm:$0xff] }
  0x12   :  { %3661 = vmatprep.subr.bf16.mxu0 %v3660_v16  ;;  %3840 = vmatprep.subr.bf16.mxu1 %v3660_v16  ;;  %v3676_v58 = vpack.c.bf16 %v2867_v57, %v2866_v56  ;;  %v2869_v60 = vld [vmem:[%s6057_s1 + $0x98] sm:$0xff]  ;;  %v2870_v62 = vld [vmem:[%s6057_s1 + $0xa0] sm:$0xff]  ;;  %v2871_v63 = vld [vmem:[%s6057_s1 + $0xa8] sm:$0xff] }
  0x13   :  { %v3680_v61 = vpack.c.bf16 %v2869_v60, %v2868_v59  ;;  %v3684_v0 = vpack.c.bf16 %v2871_v63, %v2870_v62  ;;  %v2872_v1 = vld [vmem:[%s6057_s1 + $0xb0] sm:$0xff]  ;;  %v2873_v2 = vld [vmem:[%s6057_s1 + $0xb8] sm:$0xff]  ;;  %v2874_v4 = vld [vmem:[%s6057_s1 + $0xc0] sm:$0xff] }
  0x14   :  { %v3688_v3 = vpack.c.bf16 %v2873_v2, %v2872_v1  ;;  %v2875_v5 = vld [vmem:[%s6057_s1 + $0xc8] sm:$0xff]  ;;  %v2876_v7 = vld [vmem:[%s6057_s1 + $0xd0] sm:$0xff]  ;;  %v2877_v8 = vld [vmem:[%s6057_s1 + $0xd8] sm:$0xff] }
  0x15   :  { %3663 = vmatpush3.bf16.msra.mxu0 %v3660_v16  ;;  %3848 = vmatpush3.bf16.msra.mxu1 %v3660_v16  ;;  %v3692_v6 = vpack.c.bf16 %v2875_v5, %v2874_v4  ;;  %v3696_v9 = vpack.c.bf16 %v2877_v8, %v2876_v7  ;;  %v2878_v10 = vld [vmem:[%s6057_s1 + $0xe0] sm:$0xff]  ;;  %v2879_v11 = vld [vmem:[%s6057_s1 + $0xe8] sm:$0xff]  ;;  %v2880_v13 = vld [vmem:[%s6057_s1 + $0xf0] sm:$0xff]  ;;  %v65_v16 = vlaneseq }
  0x16   :  { %3665 = vmatprep.subr.bf16.mxu0 %v3664_v19  ;;  %3841 = vmatprep.subr.bf16.mxu1 %v3664_v19  ;;  %v3700_v12 = vpack.c.bf16 %v2879_v11, %v2878_v10  ;;  %v2881_v14 = vld [vmem:[%s6057_s1 + $0xf8] sm:$0xff] }
  0x17   :  { %v3704_v15 = vpack.c.bf16 %v2881_v14, %v2880_v13  ;;  %v4092_v17 = vshrl.u32 %v65_v16, 7 }
  0x19   :  { %3667 = vmatpush3.bf16.msra.mxu0 %v3664_v19  ;;  %3849 = vmatpush3.bf16.msra.mxu1 %v3664_v19  ;;  %v4095_v18 = vsub.s32 0, %v4092_v17  ;;  %v4100_v19 = vld [vmem:[%s6059_s2] sm:$0xff] }
  0x1a   :  { %3669 = vmatprep.subr.bf16.mxu0 %v3668_v22  ;;  %3842 = vmatprep.subr.bf16.mxu1 %v3668_v22 }
  0x1b   :  { %v4104_v20 = vrot.slane %v4100_v19, %v4095_v18 }
  0x1d   :  { %3671 = vmatpush3.bf16.msra.mxu0 %v3668_v22  ;;  %3850 = vmatpush3.bf16.msra.mxu1 %v3668_v22 }
  0x1e   :  { %3673 = vmatprep.subr.bf16.mxu0 %v3672_v25  ;;  %3843 = vmatprep.subr.bf16.mxu1 %v3672_v25 }
  0x21   :  { %3675 = vmatpush3.bf16.msra.mxu0 %v3672_v25  ;;  %3851 = vmatpush3.bf16.msra.mxu1 %v3672_v25 }
  0x22   :  { %3677 = vmatprep.subr.bf16.mxu1 %v3676_v58 }
  0x24   :  { %3239 = vmatmul.mubr.f32.vlgmr.msra.gmra.mrb[0].mxu0 %v18_v26  ;;  %3263 = vmatmul.mubr.f32.vlgmr.msra.gmra.mrb[0].mxu1 %v34_v27 }
  0x25   :  { %3241 = vmatprep.mubr.f32.mxu0 %v19_v28  ;;  %3265 = vmatprep.mubr.f32.mxu1 %v35_v29 }
  0x26   :  { %3679 = vmatpush3.bf16.msra.mxu1 %v3676_v58 }
  0x27   :  { %3681 = vmatprep.subr.bf16.mxu1 %v3680_v61 }
  0x28   :  { %3242 = vmatmul.mubr.f32.gmra.mrb[2].mxu0 %v20_v30  ;;  %3266 = vmatmul.mubr.f32.gmra.mrb[2].mxu1 %v36_v31 }
  0x29   :  { %3244 = vmatprep.mubr.f32.mxu0 %v21_v32  ;;  %3268 = vmatprep.mubr.f32.mxu1 %v37_v33 }
  0x2a   :  { %3683 = vmatpush3.bf16.msra.mxu1 %v3680_v61 }
  0x2b   :  { %3685 = vmatprep.subr.bf16.mxu1 %v3684_v0 }
  0x2c   :  { %3245 = vmatmul.mubr.f32.gmra.mrb[4].mxu0 %v22_v34  ;;  %3269 = vmatmul.mubr.f32.gmra.mrb[4].mxu1 %v38_v35 }
  0x2d   :  { %3247 = vmatprep.mubr.f32.mxu0 %v23_v36  ;;  %3271 = vmatprep.mubr.f32.mxu1 %v39_v37 }
  0x2e   :  { %3687 = vmatpush3.bf16.msra.mxu1 %v3684_v0 }
  0x2f   :  { %3689 = vmatprep.subr.bf16.mxu1 %v3688_v3 }
  0x30   :  { %3248 = vmatmul.mubr.f32.gmra.mrb[6].mxu0 %v24_v38  ;;  %3272 = vmatmul.mubr.f32.gmra.mrb[6].mxu1 %v40_v39 }
  0x31   :  { %3250 = vmatprep.mubr.f32.mxu0 %v25_v40  ;;  %3274 = vmatprep.mubr.f32.mxu1 %v41_v41 }
  0x32   :  { %3691 = vmatpush3.bf16.msra.mxu1 %v3688_v3 }
  0x33   :  { %3693 = vmatprep.subr.bf16.mxu1 %v3692_v6 }
  0x34   :  { %3251 = vmatmul.mubr.f32.gmra.mrb[8].mxu0 %v26_v42  ;;  %3275 = vmatmul.mubr.f32.gmra.mrb[8].mxu1 %v42_v43 }
  0x35   :  { %3253 = vmatprep.mubr.f32.mxu0 %v27_v44  ;;  %3277 = vmatprep.mubr.f32.mxu1 %v43_v45 }
  0x36   :  { %3695 = vmatpush3.bf16.msra.mxu1 %v3692_v6 }
  0x37   :  { %3697 = vmatprep.subr.bf16.mxu1 %v3696_v9 }
  0x38   :  { %3254 = vmatmul.mubr.f32.gmra.mrb[10].mxu0 %v28_v46  ;;  %3278 = vmatmul.mubr.f32.gmra.mrb[10].mxu1 %v44_v47 }
  0x39   :  { %3256 = vmatprep.mubr.f32.mxu0 %v29_v48  ;;  %3280 = vmatprep.mubr.f32.mxu1 %v45_v49 }
  0x3a   :  { %3699 = vmatpush3.bf16.msra.mxu1 %v3696_v9 }
  0x3b   :  { %3701 = vmatprep.subr.bf16.mxu1 %v3700_v12 }
  0x3c   :  { %3257 = vmatmul.mubr.f32.gmra.mrb[12].mxu0 %v30_v50  ;;  %3281 = vmatmul.mubr.f32.gmra.mrb[12].mxu1 %v46_v51 }
  0x3d   :  { %3259 = vmatprep.mubr.f32.mxu0 %v31_v52  ;;  %3283 = vmatprep.mubr.f32.mxu1 %v47_v53 }
  0x3e   :  { %3703 = vmatpush3.bf16.msra.mxu1 %v3700_v12 }
  0x3f   :  { %3705 = vmatprep.subr.bf16.mxu1 %v3704_v15 }
  0x40   :  { %3260 = vmatmul.mubr.f32.gmra.mrb[14].mxu0 %v32_v54  ;;  %3284 = vmatmul.mubr.f32.gmra.mrb[14].mxu1 %v48_v55 }
  0x42   :  { %3707 = vmatpush3.bf16.msra.mxu1 %v3704_v15 }
  0xf7   :  { %v3240_v21 = vpop.f32.mrb[0].mxu0  ;;  %v4106_v22 = vpop.f32.mrb[0].mxu1 }
  0xf8   :  { %v4109_v23 = vadd.f32 %v3240_v21, %v4104_v20  ;;  %v135_v24 = vpop.f32.mrb[1].mxu0  ;;  %v4111_v25 = vpop.f32.mrb[1].mxu1 }
  0xf9   :  { %v4114_v26 = vadd.f32 %v135_v24, %v4104_v20 }
  0xfa   :  { %v332_v27 = vmul.f32 %v4109_v23, %v4109_v23 }
  0xfb   :  { %v331_v28 = vmul.f32 %v4114_v26, %v4114_v26  ;;  %v3243_v29 = vpop.f32.mrb[2].mxu0  ;;  %v4120_v30 = vpop.f32.mrb[2].mxu1  ;;  %v294_v33 = vadd.f32 %v4109_v23, %v4114_v26 }
  0xfc   :  { %v145_v31 = vpop.f32.mrb[3].mxu0  ;;  %v4122_v32 = vpop.f32.mrb[3].mxu1  ;;  %v4127_v34 = vadd.f32 %v3243_v29, %v4104_v20 }
  0xfd   :  { %v4130_v35 = vadd.f32 %v145_v31, %v4104_v20  ;;  %v363_v36 = vadd.f32 %v332_v27, %v331_v28 }
  0xfe   :  { %v334_v44 = vmul.f32 %v4127_v34, %v4127_v34 }
  0xff   :  { %v295_v37 = vadd.f32 %v294_v33, %v4130_v35  ;;  %v333_v38 = vmul.f32 %v4130_v35, %v4130_v35  ;;  %v3246_v39 = vpop.f32.mrb[4].mxu0  ;;  %v4135_v40 = vpop.f32.mrb[4].mxu1 }
 0x100   :  { %v4138_v41 = vadd.f32 %v3246_v39, %v4104_v20  ;;  %v155_v42 = vpop.f32.mrb[5].mxu0  ;;  %v4140_v43 = vpop.f32.mrb[5].mxu1 }
 0x101   :  { %v364_v45 = vadd.f32 %v363_v36, %v333_v38  ;;  %v4145_v46 = vadd.f32 %v155_v42, %v4104_v20  ;;  %v296_v47 = vadd.f32 %v295_v37, %v4127_v34 }
 0x102   :  { %v336_v53 = vmul.f32 %v4138_v41, %v4138_v41 }
 0x103   :  { %v297_v48 = vadd.f32 %v296_v47, %v4145_v46  ;;  %v335_v49 = vmul.f32 %v4145_v46, %v4145_v46  ;;  %v365_v50 = vadd.f32 %v364_v45, %v334_v44  ;;  %v3249_v51 = vpop.f32.mrb[6].mxu0  ;;  %v4151_v52 = vpop.f32.mrb[6].mxu1 }
 0x104   :  { %v165_v54 = vpop.f32.mrb[7].mxu0  ;;  %v4155_v55 = vpop.f32.mrb[7].mxu1  ;;  %v4158_v57 = vadd.f32 %v3249_v51, %v4104_v20 }
 0x105   :  { %v366_v56 = vadd.f32 %v365_v50, %v335_v49  ;;  %v4161_v58 = vadd.f32 %v165_v54, %v4104_v20  ;;  %v298_v59 = vadd.f32 %v297_v48, %v4138_v41 }
 0x106   :  { %6124 = vst [vmem:[#allocation2_spill] sm:$0xff] %v4158_v57  ;;  %v338_v4 = vmul.f32 %v4158_v57, %v4158_v57 }
 0x107   :  { %6125 = vst [vmem:[#allocation3_spill] sm:$0xff] %v4161_v58  ;;  %v299_v60 = vadd.f32 %v298_v59, %v4161_v58  ;;  %v337_v61 = vmul.f32 %v4161_v58, %v4161_v58  ;;  %v367_v62 = vadd.f32 %v366_v56, %v336_v53  ;;  %v3252_v63 = vpop.f32.mrb[8].mxu0  ;;  %v4167_v0 = vpop.f32.mrb[8].mxu1  ;;  %v4221_v59 = vadd.f32 %v4111_v25, %v4104_v20 }
 0x108   :  { %v4170_v1 = vadd.f32 %v3252_v63, %v4104_v20  ;;  %v175_v2 = vpop.f32.mrb[9].mxu0  ;;  %v4172_v3 = vpop.f32.mrb[9].mxu1  ;;  %v4235_v25 = vadd.f32 %v4106_v22, %v4104_v20 }
 0x109   :  { %v368_v5 = vadd.f32 %v367_v62, %v337_v61  ;;  %v4177_v6 = vadd.f32 %v175_v2, %v4104_v20  ;;  %v300_v7 = vadd.f32 %v299_v60, %v4158_v57  ;;  %6132 = vst [vmem:[#allocation10_spill] sm:$0xff] %v4221_v59 }
 0x10a   :  { %6126 = vst [vmem:[#allocation4_spill] sm:$0xff] %v4170_v1  ;;  %v340_v13 = vmul.f32 %v4170_v1, %v4170_v1  ;;  %6135 = vst [vmem:[#allocation13_spill] sm:$0xff] %v4235_v25  ;;  %v348_v22 = vmul.f32 %v4235_v25, %v4235_v25 }
 0x10b   :  { %6127 = vst [vmem:[#allocation5_spill] sm:$0xff] %v4177_v6  ;;  %v301_v8 = vadd.f32 %v300_v7, %v4177_v6  ;;  %v339_v9 = vmul.f32 %v4177_v6, %v4177_v6  ;;  %v369_v10 = vadd.f32 %v368_v5, %v338_v4  ;;  %v3255_v11 = vpop.f32.mrb[10].mxu0  ;;  %v4183_v12 = vpop.f32.mrb[10].mxu1 }
 0x10c   :  { %v185_v14 = vpop.f32.mrb[11].mxu0  ;;  %v4187_v15 = vpop.f32.mrb[11].mxu1  ;;  %v4190_v21 = vadd.f32 %v3255_v11, %v4104_v20 }
 0x10d   :  { %v370_v16 = vadd.f32 %v369_v10, %v339_v9  ;;  %v4193_v24 = vadd.f32 %v185_v14, %v4104_v20  ;;  %v302_v27 = vadd.f32 %v301_v8, %v4170_v1  ;;  %v347_v8 = vmul.f32 %v4221_v59, %v4221_v59 }
 0x10e   :  { %6128 = vst [vmem:[#allocation6_spill] sm:$0xff] %v4190_v21  ;;  %v342_v42 = vmul.f32 %v4190_v21, %v4190_v21 }
 0x10f   :  { %6129 = vst [vmem:[#allocation7_spill] sm:$0xff] %v4193_v24  ;;  %v303_v28 = vadd.f32 %v302_v27, %v4193_v24  ;;  %v341_v29 = vmul.f32 %v4193_v24, %v4193_v24  ;;  %v371_v31 = vadd.f32 %v370_v16, %v340_v13  ;;  %v3258_v33 = vpop.f32.mrb[12].mxu0  ;;  %v4199_v36 = vpop.f32.mrb[12].mxu1  ;;  %v4244_v13 = vadd.f32 %v4122_v32, %v4104_v20 }
 0x110   :  { %v4202_v37 = vadd.f32 %v3258_v33, %v4104_v20  ;;  %v195_v38 = vpop.f32.mrb[13].mxu0  ;;  %v4204_v39 = vpop.f32.mrb[13].mxu1  ;;  %v4251_v27 = vadd.f32 %v4120_v30, %v4104_v20  ;;  %v4258_v32 = vadd.f32 %v4140_v43, %v4104_v20  ;;  %v4265_v30 = vadd.f32 %v4135_v40, %v4104_v20 }
 0x111   :  { %v372_v44 = vadd.f32 %v371_v31, %v341_v29  ;;  %v4209_v45 = vadd.f32 %v195_v38, %v4104_v20  ;;  %v304_v47 = vadd.f32 %v303_v28, %v4190_v21  ;;  %6136 = vst [vmem:[#allocation14_spill] sm:$0xff] %v4244_v13  ;;  %v349_v31 = vmul.f32 %v4244_v13, %v4244_v13 }
 0x112   :  { %6130 = vst [vmem:[#allocation8_spill] sm:$0xff] %v4202_v37  ;;  %v344_v54 = vmul.f32 %v4202_v37, %v4202_v37  ;;  %6137 = vst [vmem:[#allocation15_spill] sm:$0xff] %v4251_v27  ;;  %v4272_v43 = vadd.f32 %v4155_v55, %v4104_v20  ;;  %v4279_v40 = vadd.f32 %v4151_v52, %v4104_v20 }
 0x113   :  { %6131 = vst [vmem:[#allocation9_spill] sm:$0xff] %v4209_v45  ;;  %v305_v48 = vadd.f32 %v304_v47, %v4209_v45  ;;  %v343_v49 = vmul.f32 %v4209_v45, %v4209_v45  ;;  %v373_v50 = vadd.f32 %v372_v44, %v342_v42  ;;  %v3261_v51 = vpop.f32.mrb[14].mxu0  ;;  %v4215_v53 = vpop.f32.mrb[14].mxu1  ;;  %6138 = vst [vmem:[#allocation16_spill] sm:$0xff] %v4258_v32 }
 0x114   :  { %v205_v56 = vpop.f32.mrb[15].mxu0  ;;  %v285_v60 = vpop.f32.mrb[15].mxu1  ;;  %v4224_v62 = vadd.f32 %v3261_v51, %v4104_v20  ;;  %v350_v42 = vmul.f32 %v4251_v27, %v4251_v27  ;;  %6139 = vst [vmem:[#allocation17_spill] sm:$0xff] %v4265_v30  ;;  %6140 = vst [vmem:[#allocation18_spill] sm:$0xff] %v4272_v43  ;;  %v352_v51 = vmul.f32 %v4265_v30, %v4265_v30 }
 0x115   :  { %v374_v61 = vadd.f32 %v373_v50, %v343_v49  ;;  %v4227_v63 = vadd.f32 %v205_v56, %v4104_v20  ;;  %v306_v2 = vadd.f32 %v305_v48, %v4202_v37  ;;  %v351_v48 = vmul.f32 %v4258_v32, %v4258_v32  ;;  %6141 = vst [vmem:[#allocation19_spill] sm:$0xff] %v4279_v40 }
 0x116   :  { %6133 = vst [vmem:[#allocation11_spill] sm:$0xff] %v4224_v62  ;;  %v346_v9 = vmul.f32 %v4224_v62, %v4224_v62  ;;  %v4286_v55 = vadd.f32 %v4172_v3, %v4104_v20  ;;  %v4293_v52 = vadd.f32 %v4167_v0, %v4104_v20  ;;  %v4300_v3 = vadd.f32 %v4187_v15, %v4104_v20 }
 0x117   :  { %6134 = vst [vmem:[#allocation12_spill] sm:$0xff] %v4227_v63  ;;  %v307_v4 = vadd.f32 %v306_v2, %v4227_v63  ;;  %v345_v5 = vmul.f32 %v4227_v63, %v4227_v63  ;;  %v375_v7 = vadd.f32 %v374_v61, %v344_v54  ;;  %v353_v61 = vmul.f32 %v4272_v43, %v4272_v43 }
 0x118   :  { %6142 = vst [vmem:[#allocation20_spill] sm:$0xff] %v4286_v55  ;;  %6143 = vst [vmem:[#allocation21_spill] sm:$0xff] %v4293_v52  ;;  %v4307_v0 = vadd.f32 %v4183_v12, %v4104_v20  ;;  %v4314_v15 = vadd.f32 %v4204_v39, %v4104_v20  ;;  %v4321_v12 = vadd.f32 %v4199_v36, %v4104_v20 }
 0x119   :  { %v376_v10 = vadd.f32 %v375_v7, %v345_v5  ;;  %v308_v11 = vadd.f32 %v307_v4, %v4224_v62  ;;  %v354_v5 = vmul.f32 %v4279_v40, %v4279_v40  ;;  %6144 = vst [vmem:[#allocation22_spill] sm:$0xff] %v4300_v3  ;;  %v4334_v36 = vadd.f32 %v4215_v53, %v4104_v20 }
 0x11a   :  { %6145 = vst [vmem:[#allocation23_spill] sm:$0xff] %v4307_v0  ;;  %6146 = vst [vmem:[#allocation24_spill] sm:$0xff] %v4314_v15 }
 0x11b   :  { %v309_v14 = vadd.f32 %v308_v11, %v4221_v59  ;;  %v377_v16 = vadd.f32 %v376_v10, %v346_v9  ;;  %v355_v9 = vmul.f32 %v4286_v55, %v4286_v55  ;;  %6147 = vst [vmem:[#allocation25_spill] sm:$0xff] %v4321_v12  ;;  %6149 = vst [vmem:[#allocation27_spill] sm:$0xff] %v4334_v36 }
 0x11d   :  { %v378_v28 = vadd.f32 %v377_v16, %v347_v8  ;;  %v310_v29 = vadd.f32 %v309_v14, %v4235_v25  ;;  %v356_v14 = vmul.f32 %v4293_v52, %v4293_v52 }
 0x11f   :  { %v311_v33 = vadd.f32 %v310_v29, %v4244_v13  ;;  %v379_v38 = vadd.f32 %v378_v28, %v348_v22  ;;  %v357_v28 = vmul.f32 %v4300_v3, %v4300_v3 }
 0x121   :  { %v380_v44 = vadd.f32 %v379_v38, %v349_v31  ;;  %v312_v47 = vadd.f32 %v311_v33, %v4251_v27  ;;  %v358_v33 = vmul.f32 %v4307_v0, %v4307_v0 }
 0x123   :  { %v313_v49 = vadd.f32 %v312_v47, %v4258_v32  ;;  %v381_v50 = vadd.f32 %v380_v44, %v350_v42  ;;  %v359_v44 = vmul.f32 %v4314_v15, %v4314_v15  ;;  %v4327_v47 = vadd.f32 %v285_v60, %v4104_v20 }
 0x125   :  { %v382_v54 = vadd.f32 %v381_v50, %v351_v48  ;;  %v314_v56 = vadd.f32 %v313_v49, %v4265_v30  ;;  %6148 = vst [vmem:[#allocation26_spill] sm:$0xff] %v4327_v47  ;;  %v360_v49 = vmul.f32 %v4321_v12, %v4321_v12 }
 0x127   :  { %v315_v2 = vadd.f32 %v314_v56, %v4272_v43  ;;  %v383_v4 = vadd.f32 %v382_v54, %v352_v51  ;;  %v361_v54 = vmul.f32 %v4327_v47, %v4327_v47 }
 0x129   :  { %v384_v7 = vadd.f32 %v383_v4, %v353_v61  ;;  %v316_v8 = vadd.f32 %v315_v2, %v4279_v40  ;;  %v362_v61 = vmul.f32 %v4334_v36, %v4334_v36 }
 0x12b   :  { %v317_v10 = vadd.f32 %v316_v8, %v4286_v55  ;;  %v385_v11 = vadd.f32 %v384_v7, %v354_v5 }
 0x12d   :  { %v386_v16 = vadd.f32 %v385_v11, %v355_v9  ;;  %v318_v22 = vadd.f32 %v317_v10, %v4293_v52 }
 0x12f   :  { %v319_v29 = vadd.f32 %v318_v22, %v4300_v3  ;;  %v387_v31 = vadd.f32 %v386_v16, %v356_v14 }
 0x131   :  { %v388_v38 = vadd.f32 %v387_v31, %v357_v28  ;;  %v320_v42 = vadd.f32 %v319_v29, %v4307_v0 }
 0x133   :  { %v321_v39 = vadd.f32 %v320_v42, %v4314_v15  ;;  %v389_v48 = vadd.f32 %v388_v38, %v358_v33 }
 0x135   :  { %v390_v50 = vadd.f32 %v389_v48, %v359_v44  ;;  %v322_v51 = vadd.f32 %v321_v39, %v4321_v12  ;;  %v4344_v48 = vsub.s32 1, %v4092_v17 }
 0x137   :  { %v323_v56 = vadd.f32 %v322_v51, %v4327_v47  ;;  %v391_v60 = vadd.f32 %v390_v50, %v360_v49  ;;  %6150 = vst [vmem:[#allocation28_spill] sm:$0xff] %v4344_v48 }
 0x139   :  { %v324_v2 = vadd.f32 %v323_v56, %v4334_v36  ;;  %v392_v4 = vadd.f32 %v391_v60, %v361_v54  ;;  %v4351_v56 = vsub.s32 2, %v4092_v17  ;;  %v4354_v60 = vsub.s32 3, %v4092_v17 }
 0x13b   :  { %v325_v5 = vrot.slane %v324_v2, 4  ;;  %v393_v7 = vadd.f32 %v392_v4, %v362_v61  ;;  %6151 = vst [vmem:[#allocation29_spill] sm:$0xff] %v4351_v56  ;;  %6152 = vst [vmem:[#allocation30_spill] sm:$0xff] %v4354_v60 }
 0x13d   :  { %v326_v8 = vadd.f32 %v325_v5, %v324_v2  ;;  %v394_v9 = vrot.slane %v393_v7, 4 }
 0x13f   :  { %v327_v20 = vrot.slane %v326_v8, 2  ;;  %v395_v53 = vadd.f32 %v394_v9, %v393_v7  ;;  %v4370_v9 = vrot.slane %v4100_v19, %v4354_v60 }
 0x141   :  { %v328_v10 = vadd.f32 %v327_v20, %v326_v8  ;;  %v396_v11 = vrot.slane %v395_v53, 2 }
 0x143   :  { %v329_v14 = vrot.slane %v328_v10, 1  ;;  %v397_v16 = vadd.f32 %v396_v11, %v395_v53 }
 0x145   :  { %v330_v22 = vadd.f32 %v329_v14, %v328_v10  ;;  %v398_v28 = vrot.slane %v397_v16, 1 }
 0x147   :  { %v399_v29 = vadd.f32 %v398_v28, %v397_v16  ;;  %v400_v31 = vmul.f32 0.00390625, %v330_v22 }
 0x149   :  { %v401_v33 = vmul.f32 0.00390625, %v399_v29  ;;  %v402_v38 = vmul.f32 %v400_v31, %v400_v31 }
 0x14b   :  { %v403_v42 = vsub.f32 %v401_v33, %v402_v38 }
 0x14d   :  { %v404_v44 = vadd.f32 1e-05, %v403_v42 }
 0x14f   :  { %3868 = vrsqrt.f32 %v404_v44 }
 0x159   :  { %v3869_v39 = vpop.eup %3868 }
 0x15a   :  { %v406_v49 = vmul.f32 %v3869_v39, %v4100_v19 }
 0x15c   :  { %v407_v50 = vmul.f32 %v406_v49, %v400_v31  ;;  %v4348_v51 = vrot.slane %v406_v49, %v4344_v48 }
 0x15e   :  { %v409_v54 = vrot.slane %v407_v50, 7  ;;  %v425_v2 = vmul.f32 %v4348_v51, %v4109_v23  ;;  %v424_v5 = vmul.f32 %v4348_v51, %v4114_v26  ;;  %v426_v7 = vmul.f32 %v4348_v51, %v4130_v35 }
 0x15f   :  { %v427_v8 = vmul.f32 %v4348_v51, %v4127_v34  ;;  %v436_v14 = vmul.f32 %v4348_v51, %v4145_v46  ;;  %v437_v16 = vmul.f32 %v4348_v51, %v4138_v41  ;;  %v438_v22 = vmul.f32 %v4348_v51, %v4161_v58 }
 0x160   :  { %v411_v61 = vsub.f32 %v4100_v19, %v409_v54  ;;  %v439_v28 = vmul.f32 %v4348_v51, %v4158_v57  ;;  %v517_v60 = vmul.f32 %v4348_v51, %v4265_v30 }
 0x162   :  { %v4360_v4 = vrot.slane %v411_v61, %v4351_v56 }
 0x164   :  { %v429_v20 = vadd.f32 %v425_v2, %v4360_v4  ;;  %v428_v53 = vadd.f32 %v424_v5, %v4360_v4  ;;  %v430_v10 = vadd.f32 %v426_v7, %v4360_v4  ;;  %v431_v11 = vadd.f32 %v427_v8, %v4360_v4 }
 0x165   :  { %v440_v42 = vadd.f32 %v436_v14, %v4360_v4  ;;  %v441_v44 = vadd.f32 %v437_v16, %v4360_v4  ;;  %v442_v39 = vadd.f32 %v438_v22, %v4360_v4  ;;  %v443_v49 = vadd.f32 %v439_v28, %v4360_v4 }
 0x166   :  { %v433_v29 = vmax.f32 %v429_v20, 0.0  ;;  %v432_v31 = vmax.f32 %v428_v53, 0.0  ;;  %v434_v33 = vmax.f32 %v430_v10, 0.0  ;;  %v435_v38 = vmax.f32 %v431_v11, 0.0 }
 0x167   :  { %v456_v53 = vmul.f32 %v4348_v51, %v4177_v6  ;;  %v457_v10 = vmul.f32 %v4348_v51, %v4170_v1  ;;  %v458_v11 = vmul.f32 %v4348_v51, %v4193_v24  ;;  %v459_v14 = vmul.f32 %v4348_v51, %v4190_v21 }
 0x168   :  { %v444_v50 = vmul.f32 %v432_v31, %v4370_v9  ;;  %3318 = vmatprep.mubr.f32.mxu1 %v432_v31  ;;  %v446_v54 = vmul.f32 %v434_v33, %v4370_v9  ;;  %v447_v61 = vmul.f32 %v435_v38, %v4370_v9  ;;  %v445_v2 = vmul.f32 %v433_v29, %v4370_v9 }
 0x169   :  { %3319 = vmatmul.mubr.f32.vlgmr.msra.gmra.mrb[16].mxu1 %v433_v29  ;;  %v460_v31 = vadd.f32 %v456_v53, %v4360_v4  ;;  %v479_v53 = vmul.f32 %v4348_v51, %v4224_v62 }
 0x16a   :  { %3321 = vmatprep.mubr.f32.mxu1 %v434_v33  ;;  %v448_v5 = vadd.f32 %v444_v50, %v440_v42  ;;  %v449_v7 = vadd.f32 %v445_v2, %v441_v44  ;;  %v450_v8 = vadd.f32 %v446_v54, %v442_v39  ;;  %v451_v20 = vadd.f32 %v447_v61, %v443_v49 }
 0x16b   :  { %v461_v33 = vadd.f32 %v457_v10, %v4360_v4  ;;  %v462_v42 = vadd.f32 %v458_v11, %v4360_v4  ;;  %v463_v44 = vadd.f32 %v459_v14, %v4360_v4 }
 0x16c   :  { %v452_v16 = vmax.f32 %v448_v5, 0.0  ;;  %v453_v22 = vmax.f32 %v449_v7, 0.0  ;;  %v454_v28 = vmax.f32 %v450_v8, 0.0  ;;  %v455_v29 = vmax.f32 %v451_v20, 0.0 }
 0x16d   :  { %3322 = vmatmul.mubr.f32.gmra.mrb[18].mxu1 %v435_v38  ;;  %v476_v7 = vmul.f32 %v4348_v51, %v4209_v45  ;;  %v477_v8 = vmul.f32 %v4348_v51, %v4202_v37  ;;  %v478_v20 = vmul.f32 %v4348_v51, %v4227_v63 }
 0x16e   :  { %v464_v39 = vmul.f32 %v452_v16, %v4370_v9  ;;  %3324 = vmatprep.mubr.f32.mxu1 %v452_v16  ;;  %v465_v49 = vmul.f32 %v453_v22, %v4370_v9  ;;  %v466_v50 = vmul.f32 %v454_v28, %v4370_v9  ;;  %v467_v54 = vmul.f32 %v455_v29, %v4370_v9 }
 0x170   :  { %v468_v61 = vadd.f32 %v464_v39, %v460_v31  ;;  %v469_v2 = vadd.f32 %v465_v49, %v461_v33  ;;  %v470_v38 = vadd.f32 %v466_v50, %v462_v42  ;;  %v471_v5 = vadd.f32 %v467_v54, %v463_v44 }
 0x171   :  { %3325 = vmatmul.mubr.f32.gmra.mrb[20].mxu1 %v453_v22  ;;  %v480_v31 = vadd.f32 %v476_v7, %v4360_v4  ;;  %v481_v22 = vadd.f32 %v477_v8, %v4360_v4  ;;  %v482_v33 = vadd.f32 %v478_v20, %v4360_v4  ;;  %v483_v42 = vadd.f32 %v479_v53, %v4360_v4 }
 0x172   :  { %3327 = vmatprep.mubr.f32.mxu1 %v454_v28  ;;  %v472_v10 = vmax.f32 %v468_v61, 0.0  ;;  %v473_v11 = vmax.f32 %v469_v2, 0.0  ;;  %v474_v14 = vmax.f32 %v470_v38, 0.0  ;;  %v475_v16 = vmax.f32 %v471_v5, 0.0 }
 0x173   :  { %v496_v38 = vmul.f32 %v4348_v51, %v4221_v59  ;;  %v497_v5 = vmul.f32 %v4348_v51, %v4235_v25  ;;  %v498_v7 = vmul.f32 %v4348_v51, %v4244_v13  ;;  %v499_v8 = vmul.f32 %v4348_v51, %v4251_v27 }
 0x174   :  { %v484_v44 = vmul.f32 %v472_v10, %v4370_v9  ;;  %v485_v39 = vmul.f32 %v473_v11, %v4370_v9  ;;  %v486_v49 = vmul.f32 %v474_v14, %v4370_v9  ;;  %v487_v28 = vmul.f32 %v475_v16, %v4370_v9 }
 0x175   :  { %3328 = vmatmul.mubr.f32.gmra.mrb[22].mxu1 %v455_v29 }
 0x176   :  { %3330 = vmatprep.mubr.f32.mxu1 %v472_v10  ;;  %v488_v50 = vadd.f32 %v484_v44, %v480_v31  ;;  %v489_v54 = vadd.f32 %v485_v39, %v481_v22  ;;  %v490_v61 = vadd.f32 %v486_v49, %v482_v33  ;;  %v491_v2 = vadd.f32 %v487_v28, %v483_v42 }
 0x177   :  { %v500_v31 = vadd.f32 %v496_v38, %v4360_v4  ;;  %v501_v22 = vadd.f32 %v497_v5, %v4360_v4  ;;  %v502_v33 = vadd.f32 %v498_v7, %v4360_v4  ;;  %v503_v42 = vadd.f32 %v499_v8, %v4360_v4 }
 0x178   :  { %v492_v20 = vmax.f32 %v488_v50, 0.0  ;;  %v493_v53 = vmax.f32 %v489_v54, 0.0  ;;  %v494_v29 = vmax.f32 %v490_v61, 0.0  ;;  %v495_v10 = vmax.f32 %v491_v2, 0.0 }
 0x179   :  { %3331 = vmatmul.mubr.f32.gmra.mrb[24].mxu1 %v473_v11  ;;  %v516_v2 = vmul.f32 %v4348_v51, %v4258_v32 }
 0x17a   :  { %3333 = vmatprep.mubr.f32.mxu1 %v474_v14  ;;  %v504_v44 = vmul.f32 %v492_v20, %v4370_v9  ;;  %v505_v39 = vmul.f32 %v493_v53, %v4370_v9  ;;  %v506_v49 = vmul.f32 %v494_v29, %v4370_v9  ;;  %v507_v28 = vmul.f32 %v495_v10, %v4370_v9 }
 0x17b   :  { %v520_v8 = vadd.f32 %v516_v2, %v4360_v4 }
 0x17c   :  { %v508_v50 = vadd.f32 %v504_v44, %v500_v31  ;;  %v509_v54 = vadd.f32 %v505_v39, %v501_v22  ;;  %v510_v11 = vadd.f32 %v506_v49, %v502_v33  ;;  %v511_v61 = vadd.f32 %v507_v28, %v503_v42 }
 0x17d   :  { %3334 = vmatmul.mubr.f32.gmra.mrb[26].mxu1 %v475_v16  ;;  %v518_v16 = vmul.f32 %v4348_v51, %v4272_v43  ;;  %v519_v49 = vmul.f32 %v4348_v51, %v4279_v40 }
 0x17e   :  { %3336 = vmatprep.mubr.f32.mxu1 %v492_v20  ;;  %v512_v38 = vmax.f32 %v508_v50, 0.0  ;;  %v513_v5 = vmax.f32 %v509_v54, 0.0  ;;  %v514_v14 = vmax.f32 %v510_v11, 0.0  ;;  %v515_v7 = vmax.f32 %v511_v61, 0.0 }
 0x17f   :  { %v521_v20 = vadd.f32 %v517_v60, %v4360_v4  ;;  %v522_v42 = vadd.f32 %v518_v16, %v4360_v4  ;;  %v523_v54 = vadd.f32 %v519_v49, %v4360_v4 }
 0x180   :  { %v524_v56 = vmul.f32 %v512_v38, %v4370_v9  ;;  %v525_v31 = vmul.f32 %v513_v5, %v4370_v9  ;;  %v526_v22 = vmul.f32 %v514_v14, %v4370_v9  ;;  %v527_v44 = vmul.f32 %v515_v7, %v4370_v9 }
 0x181   :  { %3337 = vmatmul.mubr.f32.gmra.mrb[28].mxu1 %v493_v53 }
 0x182   :  { %3339 = vmatprep.mubr.f32.mxu1 %v494_v29  ;;  %v528_v33 = vadd.f32 %v524_v56, %v520_v8  ;;  %v529_v39 = vadd.f32 %v525_v31, %v521_v20  ;;  %v530_v50 = vadd.f32 %v526_v22, %v522_v42  ;;  %v531_v53 = vadd.f32 %v527_v44, %v523_v54 }
 0x183   :  { %v536_v56 = vmul.f32 %v4348_v51, %v4286_v55  ;;  %v538_v22 = vmul.f32 %v4348_v51, %v4300_v3 }
 0x184   :  { %v532_v28 = vmax.f32 %v528_v33, 0.0  ;;  %v533_v11 = vmax.f32 %v529_v39, 0.0  ;;  %v534_v29 = vmax.f32 %v530_v50, 0.0  ;;  %v535_v8 = vmax.f32 %v531_v53, 0.0 }
 0x185   :  { %3340 = vmatmul.mubr.f32.gmra.mrb[30].mxu1 %v495_v10  ;;  %v540_v61 = vadd.f32 %v536_v56, %v4360_v4  ;;  %v537_v10 = vmul.f32 %v4348_v51, %v4293_v52  ;;  %v539_v33 = vmul.f32 %v4348_v51, %v4307_v0 }
 0x186   :  { %3342 = vmatprep.mubr.f32.mxu1 %v512_v38  ;;  %v544_v60 = vmul.f32 %v532_v28, %v4370_v9  ;;  %v545_v2 = vmul.f32 %v533_v11, %v4370_v9  ;;  %v546_v38 = vmul.f32 %v534_v29, %v4370_v9 }
 0x187   :  { %v541_v16 = vadd.f32 %v537_v10, %v4360_v4  ;;  %v543_v39 = vadd.f32 %v539_v33, %v4360_v4 }
 0x188   :  { %v548_v31 = vadd.f32 %v544_v60, %v540_v61 }
 0x189   :  { %3343 = vmatmul.mubr.f32.gmra.mrb[32].mxu1 %v513_v5  ;;  %v542_v5 = vadd.f32 %v538_v22, %v4360_v4  ;;  %v549_v20 = vadd.f32 %v545_v2, %v541_v16  ;;  %v558_v2 = vmul.f32 %v4348_v51, %v4327_v47  ;;  %v559_v22 = vmul.f32 %v4348_v51, %v4334_v36 }
 0x18a   :  { %3345 = vmatprep.mubr.f32.mxu1 %v514_v14  ;;  %v547_v14 = vmul.f32 %v535_v8, %v4370_v9  ;;  %v552_v42 = vmax.f32 %v548_v31, 0.0 }
 0x18b   :  { %v550_v44 = vadd.f32 %v546_v38, %v542_v5  ;;  %v553_v49 = vmax.f32 %v549_v20, 0.0 }
 0x18c   :  { %v551_v50 = vadd.f32 %v547_v14, %v543_v39  ;;  %v563_v14 = vadd.f32 %v559_v22, %v4360_v4  ;;  %v4531_v22 = vsub.s32 4, %v4092_v17 }
 0x18d   :  { %3346 = vmatmul.mubr.f32.gmra.mrb[34].mxu1 %v515_v7  ;;  %v564_v7 = vmul.f32 %v552_v42, %v4370_v9  ;;  %v554_v54 = vmax.f32 %v550_v44, 0.0  ;;  %v565_v60 = vmul.f32 %v553_v49, %v4370_v9 }
 0x18e   :  { %3348 = vmatprep.mubr.f32.mxu1 %v532_v28  ;;  %v556_v28 = vmul.f32 %v4348_v51, %v4314_v15  ;;  %v555_v56 = vmax.f32 %v551_v50, 0.0  ;;  %6153 = vst [vmem:[#allocation31_spill] sm:$0xff] %v4531_v22 }
 0x190   :  { %v560_v53 = vadd.f32 %v556_v28, %v4360_v4  ;;  %v567_v38 = vmul.f32 %v555_v56, %v4370_v9 }
 0x191   :  { %3349 = vmatmul.mubr.f32.gmra.mrb[36].mxu1 %v533_v11  ;;  %v557_v11 = vmul.f32 %v4348_v51, %v4321_v12  ;;  %v2883_v51 = vld [vmem:[%s6057_s1 + $0x108] sm:$0xff] }
 0x192   :  { %3351 = vmatprep.mubr.f32.mxu1 %v534_v29  ;;  %v566_v29 = vmul.f32 %v554_v54, %v4370_v9  ;;  %v568_v61 = vadd.f32 %v564_v7, %v560_v53  ;;  %v571_v33 = vadd.f32 %v567_v38, %v563_v14  ;;  %v2882_v9 = vld [vmem:[%s6057_s1 + $0x100] sm:$0xff]  ;;  %v2888_v53 = vld [vmem:[%s6057_s1 + $0x130] sm:$0xff]  ;;  %v2897_v14 = vld [vmem:[%s6057_s1 + $0x178] sm:$0xff] }
 0x193   :  { %v561_v10 = vadd.f32 %v557_v11, %v4360_v4  ;;  %v3708_v39 = vpack.c.bf16 %v2883_v51, %v2882_v9  ;;  %v2886_v7 = vld [vmem:[%s6057_s1 + $0x120] sm:$0xff] }
 0x194   :  { %v572_v16 = vmax.f32 %v568_v61, 0.0  ;;  %v575_v44 = vmax.f32 %v571_v33, 0.0  ;;  %v2894_v38 = vld [vmem:[%s6057_s1 + $0x160] sm:$0xff] }
 0x195   :  { %3352 = vmatmul.mubr.f32.gmra.mrb[38].mxu1 %v535_v8  ;;  %v562_v8 = vadd.f32 %v558_v2, %v4360_v4  ;;  %v569_v31 = vadd.f32 %v565_v60, %v561_v10  ;;  %3709 = vmatprep.subr.bf16.mxu0 %v3708_v39  ;;  %v2884_v4 = vld [vmem:[%s6057_s1 + $0x110] sm:$0xff]  ;;  %v2889_v60 = vld [vmem:[%s6057_s1 + $0x138] sm:$0xff] }
 0x196   :  { %3354 = vmatprep.mubr.f32.mxu1 %v552_v42  ;;  %3711 = vmatpush3.bf16.msra.mxu0 %v3708_v39  ;;  %v3720_v11 = vpack.c.bf16 %v2889_v60, %v2888_v53  ;;  %v2892_v2 = vld [vmem:[%s6057_s1 + $0x150] sm:$0xff]  ;;  %v2893_v10 = vld [vmem:[%s6057_s1 + $0x158] sm:$0xff] }
 0x197   :  { %v570_v5 = vadd.f32 %v566_v29, %v562_v8  ;;  %v573_v20 = vmax.f32 %v569_v31, 0.0  ;;  %v2891_v29 = vld [vmem:[%s6057_s1 + $0x148] sm:$0xff]  ;;  %v3728_v8 = vpack.c.bf16 %v2893_v10, %v2892_v2 }
 0x198   :  { %v2895_v31 = vld [vmem:[%s6057_s1 + $0x168] sm:$0xff] }
 0x199   :  { %3355 = vmatmul.mubr.f32.gmra.mrb[40].mxu1 %v553_v49  ;;  %v574_v42 = vmax.f32 %v570_v5, 0.0  ;;  %v2885_v49 = vld [vmem:[%s6057_s1 + $0x118] sm:$0xff]  ;;  %v2896_v5 = vld [vmem:[%s6057_s1 + $0x170] sm:$0xff] }
 0x19a   :  { %3357 = vmatprep.mubr.f32.mxu1 %v554_v54  ;;  %v3712_v50 = vpack.c.bf16 %v2885_v49, %v2884_v4  ;;  %v2887_v54 = vld [vmem:[%s6057_s1 + $0x128] sm:$0xff]  ;;  %v3736_v33 = vpack.c.bf16 %v2897_v14, %v2896_v5 }
 0x19b   :  { %v3716_v28 = vpack.c.bf16 %v2887_v54, %v2886_v7 }
 0x19c   :  { %3713 = vmatprep.subr.bf16.mxu0 %v3712_v50 }
 0x19d   :  { %3358 = vmatmul.mubr.f32.gmra.mrb[42].mxu1 %v555_v56  ;;  %3715 = vmatpush3.bf16.msra.mxu0 %v3712_v50  ;;  %v2890_v56 = vld [vmem:[%s6057_s1 + $0x140] sm:$0xff] }
 0x19e   :  { %3360 = vmatprep.mubr.f32.mxu1 %v572_v16  ;;  %3717 = vmatprep.subr.bf16.mxu0 %v3716_v28  ;;  %v3724_v61 = vpack.c.bf16 %v2891_v29, %v2890_v56  ;;  %v3732_v16 = vpack.c.bf16 %v2895_v31, %v2894_v38 }
 0x1a1   :  { %3361 = vmatmul.mubr.f32.gmra.mrb[44].mxu1 %v573_v20  ;;  %3719 = vmatpush3.bf16.msra.mxu0 %v3716_v28  ;;  %v4541_v20 = vrot.slane %v4100_v19, %v4531_v22 }
 0x1a2   :  { %3363 = vmatprep.mubr.f32.mxu1 %v574_v42  ;;  %3721 = vmatprep.subr.bf16.mxu0 %v3720_v11 }
 0x1a5   :  { %3364 = vmatmul.mubr.f32.gmra.mrb[46].mxu1 %v575_v44  ;;  %3723 = vmatpush3.bf16.msra.mxu0 %v3720_v11 }
 0x1a6   :  { %3725 = vmatprep.subr.bf16.mxu0 %v3724_v61 }
 0x1a9   :  { %3727 = vmatpush3.bf16.msra.mxu0 %v3724_v61 }
 0x1aa   :  { %3729 = vmatprep.subr.bf16.mxu0 %v3728_v8 }
 0x1ad   :  { %3731 = vmatpush3.bf16.msra.mxu0 %v3728_v8 }
 0x1ae   :  { %3733 = vmatprep.subr.bf16.mxu0 %v3732_v16 }
 0x1b1   :  { %3735 = vmatpush3.bf16.msra.mxu0 %v3732_v16 }
 0x1b2   :  { %3737 = vmatprep.subr.bf16.mxu0 %v3736_v33 }
 0x1b5   :  { %3739 = vmatpush3.bf16.msra.mxu0 %v3736_v33 }
 0x23c   :  { %v3320_v42 = vpop.f32.mrb[16].mxu1 }
 0x23d   :  { %v4544_v44 = vadd.f32 %v3320_v42, %v4541_v20  ;;  %v663_v9 = vpop.f32.mrb[17].mxu1 }
 0x23e   :  { %v4547_v51 = vadd.f32 %v663_v9, %v4541_v20 }
 0x23f   :  { %v860_v39 = vmul.f32 %v4544_v44, %v4544_v44 }
 0x240   :  { %v859_v19 = vmul.f32 %v4547_v51, %v4547_v51  ;;  %v3323_v4 = vpop.f32.mrb[18].mxu1  ;;  %v822_v50 = vadd.f32 %v4544_v44, %v4547_v51 }
 0x241   :  { %v673_v49 = vpop.f32.mrb[19].mxu1  ;;  %v4556_v7 = vadd.f32 %v3323_v4, %v4541_v20 }
 0x242   :  { %v4559_v54 = vadd.f32 %v673_v49, %v4541_v20  ;;  %v891_v28 = vadd.f32 %v860_v39, %v859_v19 }
 0x243   :  { %v862_v61 = vmul.f32 %v4556_v7, %v4556_v7 }
 0x244   :  { %v823_v53 = vadd.f32 %v822_v50, %v4559_v54  ;;  %v861_v60 = vmul.f32 %v4559_v54, %v4559_v54  ;;  %v3326_v56 = vpop.f32.mrb[20].mxu1 }
 0x245   :  { %v4565_v11 = vadd.f32 %v3326_v56, %v4541_v20  ;;  %v683_v29 = vpop.f32.mrb[21].mxu1 }
 0x246   :  { %v892_v2 = vadd.f32 %v891_v28, %v861_v60  ;;  %v4570_v10 = vadd.f32 %v683_v29, %v4541_v20  ;;  %v824_v8 = vadd.f32 %v823_v53, %v4556_v7 }
 0x247   :  { %v864_v14 = vmul.f32 %v4565_v11, %v4565_v11 }
 0x248   :  { %v825_v38 = vadd.f32 %v824_v8, %v4570_v10  ;;  %v863_v31 = vmul.f32 %v4570_v10, %v4570_v10  ;;  %v893_v16 = vadd.f32 %v892_v2, %v862_v61  ;;  %v3329_v5 = vpop.f32.mrb[22].mxu1 }
 0x249   :  { %v693_v33 = vpop.f32.mrb[23].mxu1  ;;  %v4579_v9 = vadd.f32 %v3329_v5, %v4541_v20 }
 0x24a   :  { %v894_v42 = vadd.f32 %v893_v16, %v863_v31  ;;  %v4582_v39 = vadd.f32 %v693_v33, %v4541_v20  ;;  %v826_v19 = vadd.f32 %v825_v38, %v4565_v11 }
 0x24b   :  { %v866_v56 = vmul.f32 %v4579_v9, %v4579_v9 }
 0x24c   :  { %v827_v4 = vadd.f32 %v826_v19, %v4582_v39  ;;  %v865_v49 = vmul.f32 %v4582_v39, %v4582_v39  ;;  %v895_v50 = vadd.f32 %v894_v42, %v864_v14  ;;  %v3332_v28 = vpop.f32.mrb[24].mxu1 }
 0x24d   :  { %v4589_v53 = vadd.f32 %v3332_v28, %v4541_v20  ;;  %v703_v60 = vpop.f32.mrb[25].mxu1 }
 0x24e   :  { %v896_v29 = vadd.f32 %v895_v50, %v865_v49  ;;  %v4594_v61 = vadd.f32 %v703_v60, %v4541_v20  ;;  %v828_v2 = vadd.f32 %v827_v4, %v4579_v9 }
 0x24f   :  { %v868_v5 = vmul.f32 %v4589_v53, %v4589_v53 }
 0x250   :  { %v829_v8 = vadd.f32 %v828_v2, %v4594_v61  ;;  %v867_v38 = vmul.f32 %v4594_v61, %v4594_v61  ;;  %v897_v31 = vadd.f32 %v896_v29, %v866_v56  ;;  %v3335_v16 = vpop.f32.mrb[26].mxu1 }
 0x251   :  { %v713_v14 = vpop.f32.mrb[27].mxu1  ;;  %v4603_v42 = vadd.f32 %v3335_v16, %v4541_v20 }
 0x252   :  { %v898_v33 = vadd.f32 %v897_v31, %v867_v38  ;;  %v4606_v19 = vadd.f32 %v713_v14, %v4541_v20  ;;  %v830_v4 = vadd.f32 %v829_v8, %v4589_v53 }
 0x253   :  { %v870_v2 = vmul.f32 %v4603_v42, %v4603_v42 }
 0x254   :  { %v831_v49 = vadd.f32 %v830_v4, %v4606_v19  ;;  %v869_v50 = vmul.f32 %v4606_v19, %v4606_v19  ;;  %v899_v28 = vadd.f32 %v898_v33, %v868_v5  ;;  %v3338_v60 = vpop.f32.mrb[28].mxu1 }
 0x255   :  { %v4613_v56 = vadd.f32 %v3338_v60, %v4541_v20  ;;  %v723_v29 = vpop.f32.mrb[29].mxu1 }
 0x256   :  { %v900_v38 = vadd.f32 %v899_v28, %v869_v50  ;;  %v4618_v31 = vadd.f32 %v723_v29, %v4541_v20  ;;  %v832_v8 = vadd.f32 %v831_v49, %v4603_v42 }
 0x257   :  { %v872_v4 = vmul.f32 %v4613_v56, %v4613_v56 }
 0x258   :  { %v833_v16 = vadd.f32 %v832_v8, %v4618_v31  ;;  %v871_v14 = vmul.f32 %v4618_v31, %v4618_v31  ;;  %v901_v5 = vadd.f32 %v900_v38, %v870_v2  ;;  %v3341_v33 = vpop.f32.mrb[30].mxu1 }
 0x259   :  { %v733_v60 = vpop.f32.mrb[31].mxu1  ;;  %v4627_v48 = vadd.f32 %v3341_v33, %v4541_v20 }
 0x25a   :  { %v902_v22 = vadd.f32 %v901_v5, %v871_v14  ;;  %v4630_v50 = vadd.f32 %v733_v60, %v4541_v20  ;;  %v834_v49 = vadd.f32 %v833_v16, %v4613_v56 }
 0x25b   :  { %v874_v14 = vmul.f32 %v4627_v48, %v4627_v48 }
 0x25c   :  { %v835_v28 = vadd.f32 %v834_v49, %v4630_v50  ;;  %v873_v29 = vmul.f32 %v4630_v50, %v4630_v50  ;;  %v903_v2 = vadd.f32 %v902_v22, %v872_v4  ;;  %v3344_v38 = vpop.f32.mrb[32].mxu1 }
 0x25d   :  { %v4637_v8 = vadd.f32 %v3344_v38, %v4541_v20  ;;  %v743_v47 = vpop.f32.mrb[33].mxu1 }
 0x25e   :  { %v904_v5 = vadd.f32 %v903_v2, %v873_v29  ;;  %v4642_v33 = vadd.f32 %v743_v47, %v4541_v20  ;;  %v836_v16 = vadd.f32 %v835_v28, %v4627_v48 }
 0x25f   :  { %v876_v38 = vmul.f32 %v4637_v8, %v4637_v8 }
 0x260   :  { %v837_v60 = vadd.f32 %v836_v16, %v4642_v33  ;;  %v875_v49 = vmul.f32 %v4642_v33, %v4642_v33  ;;  %v905_v22 = vadd.f32 %v904_v5, %v874_v14  ;;  %v3347_v4 = vpop.f32.mrb[34].mxu1 }
 0x261   :  { %v753_v36 = vpop.f32.mrb[35].mxu1  ;;  %v4651_v12 = vadd.f32 %v3347_v4, %v4541_v20 }
 0x262   :  { %v906_v15 = vadd.f32 %v905_v22, %v875_v49  ;;  %v4654_v47 = vadd.f32 %v753_v36, %v4541_v20  ;;  %v838_v28 = vadd.f32 %v837_v60, %v4637_v8 }
 0x263   :  { %v878_v49 = vmul.f32 %v4651_v12, %v4651_v12 }
 0x264   :  { %v839_v29 = vadd.f32 %v838_v28, %v4654_v47  ;;  %v877_v2 = vmul.f32 %v4654_v47, %v4654_v47  ;;  %v907_v14 = vadd.f32 %v906_v15, %v876_v38  ;;  %v3350_v5 = vpop.f32.mrb[36].mxu1 }
 0x265   :  { %v4661_v16 = vadd.f32 %v3350_v5, %v4541_v20  ;;  %v763_v3 = vpop.f32.mrb[37].mxu1 }
 0x266   :  { %v908_v22 = vadd.f32 %v907_v14, %v877_v2  ;;  %v4666_v36 = vadd.f32 %v763_v3, %v4541_v20  ;;  %v840_v60 = vadd.f32 %v839_v29, %v4651_v12 }
 0x267   :  { %v880_v5 = vmul.f32 %v4661_v16, %v4661_v16 }
 0x268   :  { %v841_v4 = vadd.f32 %v840_v60, %v4666_v36  ;;  %v879_v28 = vmul.f32 %v4666_v36, %v4666_v36  ;;  %v909_v15 = vadd.f32 %v908_v22, %v878_v49  ;;  %v3353_v38 = vpop.f32.mrb[38].mxu1 }
 0x269   :  { %v773_v0 = vpop.f32.mrb[39].mxu1  ;;  %v4675_v52 = vadd.f32 %v3353_v38, %v4541_v20 }
 0x26a   :  { %v910_v55 = vadd.f32 %v909_v15, %v879_v28  ;;  %v4678_v3 = vadd.f32 %v773_v0, %v4541_v20  ;;  %v842_v29 = vadd.f32 %v841_v4, %v4661_v16 }
 0x26b   :  { %v882_v28 = vmul.f32 %v4675_v52, %v4675_v52 }
 0x26c   :  { %v843_v2 = vadd.f32 %v842_v29, %v4678_v3  ;;  %v881_v14 = vmul.f32 %v4678_v3, %v4678_v3  ;;  %v911_v49 = vadd.f32 %v910_v55, %v880_v5  ;;  %v3356_v22 = vpop.f32.mrb[40].mxu1 }
 0x26d   :  { %v4685_v60 = vadd.f32 %v3356_v22, %v4541_v20  ;;  %v783_v43 = vpop.f32.mrb[41].mxu1 }
 0x26e   :  { %v912_v15 = vadd.f32 %v911_v49, %v881_v14  ;;  %v4690_v0 = vadd.f32 %v783_v43, %v4541_v20  ;;  %v844_v4 = vadd.f32 %v843_v2, %v4675_v52 }
 0x26f   :  { %v884_v22 = vmul.f32 %v4685_v60, %v4685_v60 }
 0x270   :  { %v845_v38 = vadd.f32 %v844_v4, %v4690_v0  ;;  %v883_v29 = vmul.f32 %v4690_v0, %v4690_v0  ;;  %v913_v55 = vadd.f32 %v912_v15, %v882_v28  ;;  %v3359_v5 = vpop.f32.mrb[42].mxu1 }
 0x271   :  { %v793_v40 = vpop.f32.mrb[43].mxu1  ;;  %v4699_v30 = vadd.f32 %v3359_v5, %v4541_v20 }
 0x272   :  { %v914_v32 = vadd.f32 %v913_v55, %v883_v29  ;;  %v4702_v43 = vadd.f32 %v793_v40, %v4541_v20  ;;  %v846_v2 = vadd.f32 %v845_v38, %v4685_v60 }
 0x273   :  { %v886_v29 = vmul.f32 %v4699_v30, %v4699_v30 }
 0x274   :  { %v847_v14 = vadd.f32 %v846_v2, %v4702_v43  ;;  %v885_v49 = vmul.f32 %v4702_v43, %v4702_v43  ;;  %v915_v28 = vadd.f32 %v914_v32, %v884_v22  ;;  %v3362_v15 = vpop.f32.mrb[44].mxu1 }
 0x275   :  { %v4709_v4 = vadd.f32 %v3362_v15, %v4541_v20  ;;  %v803_v13 = vpop.f32.mrb[45].mxu1 }
 0x276   :  { %v916_v55 = vadd.f32 %v915_v28, %v885_v49  ;;  %v4714_v40 = vadd.f32 %v803_v13, %v4541_v20  ;;  %v848_v38 = vadd.f32 %v847_v14, %v4699_v30 }
 0x277   :  { %v888_v15 = vmul.f32 %v4709_v4, %v4709_v4 }
 0x278   :  { %v849_v5 = vadd.f32 %v848_v38, %v4714_v40  ;;  %v887_v2 = vmul.f32 %v4714_v40, %v4714_v40  ;;  %v917_v32 = vadd.f32 %v916_v55, %v886_v29  ;;  %v3365_v22 = vpop.f32.mrb[46].mxu1 }
 0x279   :  { %v813_v27 = vpop.f32.mrb[47].mxu1  ;;  %v4723_v25 = vadd.f32 %v3365_v22, %v4541_v20 }
 0x27a   :  { %v918_v59 = vadd.f32 %v917_v32, %v887_v2  ;;  %v814_v13 = vadd.f32 %v813_v27, %v4541_v20  ;;  %v850_v49 = vadd.f32 %v849_v5, %v4709_v4 }
 0x27b   :  { %v890_v63 = vmul.f32 %v4723_v25, %v4723_v25 }
 0x27c   :  { %v851_v14 = vadd.f32 %v850_v49, %v814_v13  ;;  %v889_v28 = vmul.f32 %v814_v13, %v814_v13  ;;  %v919_v38 = vadd.f32 %v918_v59, %v888_v15 }
 0x27e   :  { %v852_v29 = vadd.f32 %v851_v14, %v4723_v25  ;;  %v920_v55 = vadd.f32 %v919_v38, %v889_v28  ;;  %v6097_v14 = vsub.s32 5, %v4092_v17 }
 0x280   :  { %v853_v62 = vrot.slane %v852_v29, 4  ;;  %v921_v45 = vadd.f32 %v920_v55, %v890_v63 }
 0x282   :  { %v854_v37 = vadd.f32 %v853_v62, %v852_v29  ;;  %v922_v2 = vrot.slane %v921_v45, 4  ;;  %v6096_v62 = vsub.s32 7, %v4092_v17 }
 0x284   :  { %v855_v32 = vrot.slane %v854_v37, 2  ;;  %v923_v22 = vadd.f32 %v922_v2, %v921_v45 }
 0x286   :  { %v856_v24 = vadd.f32 %v855_v32, %v854_v37  ;;  %v924_v21 = vrot.slane %v923_v22, 2  ;;  %v3878_v37 = vld [vmem:[%s6059_s2] sm:$0xff] }
 0x288   :  { %v857_v27 = vrot.slane %v856_v24, 1  ;;  %v925_v20 = vadd.f32 %v924_v21, %v923_v22 }
 0x28a   :  { %v858_v5 = vadd.f32 %v857_v27, %v856_v24  ;;  %v926_v49 = vrot.slane %v925_v20, 1 }
 0x28c   :  { %v927_v6 = vadd.f32 %v926_v49, %v925_v20  ;;  %v928_v59 = vmul.f32 0.00390625, %v858_v5 }
 0x28e   :  { %v929_v15 = vmul.f32 0.00390625, %v927_v6  ;;  %v930_v1 = vmul.f32 %v928_v59, %v928_v59  ;;  %v4739_v6 = vrot.slane %v3878_v37, %v6096_v62 }
 0x290   :  { %v931_v58 = vsub.f32 %v929_v15, %v930_v1 }
 0x292   :  { %v932_v57 = vadd.f32 1e-05, %v931_v58 }
 0x294   :  { %3870 = vrsqrt.f32 %v932_v57  ;;  %v6095_v57 = vsub.s32 6, %v4092_v17 }
 0x29e   :  { %v3871_v63 = vpop.eup %3870 }
 0x29f   :  { %v934_v45 = vmul.f32 %v3878_v37, %v3871_v63 }
 0x2a1   :  { %v935_v21 = vmul.f32 %v934_v45, %v928_v59  ;;  %v943_v24 = vrot.slane %v934_v45, %v6097_v14 }
 0x2a3   :  { %v937_v58 = vrot.slane %v935_v21, 7  ;;  %v4742_v1 = vmul.f32 %v943_v24, %v814_v13  ;;  %v952_v28 = vmul.f32 %v943_v24, %v4547_v51  ;;  %v953_v38 = vmul.f32 %v943_v24, %v4544_v44 }
 0x2a4   :  { %v954_v29 = vmul.f32 %v943_v24, %v4559_v54  ;;  %v955_v55 = vmul.f32 %v943_v24, %v4556_v7  ;;  %v964_v2 = vmul.f32 %v943_v24, %v4570_v10  ;;  %v965_v32 = vmul.f32 %v943_v24, %v4565_v11 }
 0x2a5   :  { %v939_v22 = vsub.f32 %v3878_v37, %v937_v58  ;;  %v966_v27 = vmul.f32 %v943_v24, %v4582_v39  ;;  %v967_v20 = vmul.f32 %v943_v24, %v4579_v9  ;;  %v984_v13 = vmul.f32 %v943_v24, %v4594_v61 }
 0x2a6   :  { %v985_v5 = vmul.f32 %v943_v24, %v4589_v53  ;;  %v986_v51 = vmul.f32 %v943_v24, %v4606_v19  ;;  %v987_v44 = vmul.f32 %v943_v24, %v4603_v42  ;;  %v1004_v54 = vmul.f32 %v943_v24, %v4618_v31 }
 0x2a7   :  { %v4759_v7 = vrot.slane %v939_v22, %v6095_v57  ;;  %v1005_v11 = vmul.f32 %v943_v24, %v4613_v56  ;;  %v1006_v10 = vmul.f32 %v943_v24, %v4630_v50  ;;  %v1007_v9 = vmul.f32 %v943_v24, %v4627_v48 }
 0x2a8   :  { %v1024_v39 = vmul.f32 %v943_v24, %v4642_v33  ;;  %v1025_v53 = vmul.f32 %v943_v24, %v4637_v8  ;;  %v1026_v61 = vmul.f32 %v943_v24, %v4654_v47  ;;  %v1027_v42 = vmul.f32 %v943_v24, %v4651_v12 }
 0x2a9   :  { %v1044_v19 = vmul.f32 %v943_v24, %v4666_v36  ;;  %v1045_v31 = vmul.f32 %v943_v24, %v4661_v16  ;;  %v1046_v49 = vmul.f32 %v943_v24, %v4678_v3  ;;  %v1047_v56 = vmul.f32 %v943_v24, %v4675_v52 }
 0x2aa   :  { %v1064_v50 = vmul.f32 %v943_v24, %v4690_v0  ;;  %v1065_v48 = vmul.f32 %v943_v24, %v4685_v60  ;;  %v1066_v33 = vmul.f32 %v943_v24, %v4702_v43  ;;  %v1067_v8 = vmul.f32 %v943_v24, %v4699_v30 }
 0x2ab   :  { %v1084_v47 = vmul.f32 %v943_v24, %v4714_v40  ;;  %v1085_v12 = vmul.f32 %v943_v24, %v4709_v4  ;;  %v4779_v36 = vmul.f32 %v943_v24, %v4723_v25  ;;  %v957_v16 = vadd.f32 %v953_v38, %v4759_v7 }
 0x2ac   :  { %v956_v3 = vadd.f32 %v952_v28, %v4759_v7  ;;  %v958_v52 = vadd.f32 %v954_v29, %v4759_v7  ;;  %v959_v0 = vadd.f32 %v955_v55, %v4759_v7  ;;  %v968_v60 = vadd.f32 %v964_v2, %v4759_v7 }
 0x2ad   :  { %v961_v43 = vmax.f32 %v957_v16, 0.0  ;;  %v969_v30 = vadd.f32 %v965_v32, %v4759_v7  ;;  %v970_v40 = vadd.f32 %v966_v27, %v4759_v7  ;;  %v971_v4 = vadd.f32 %v967_v20, %v4759_v7 }
 0x2ae   :  { %v960_v59 = vmax.f32 %v956_v3, 0.0  ;;  %v962_v25 = vmax.f32 %v958_v52, 0.0  ;;  %v963_v15 = vmax.f32 %v959_v0, 0.0  ;;  %v988_v63 = vadd.f32 %v984_v13, %v4759_v7 }
 0x2af   :  { %v973_v37 = vmul.f32 %v961_v43, %v4739_v6  ;;  %v989_v45 = vadd.f32 %v985_v5, %v4759_v7  ;;  %v990_v21 = vadd.f32 %v986_v51, %v4759_v7  ;;  %v991_v24 = vadd.f32 %v987_v44, %v4759_v7 }
 0x2b0   :  { %v972_v58 = vmul.f32 %v960_v59, %v4739_v6  ;;  %3398 = vmatprep.mubr.f32.mxu0 %v960_v59  ;;  %v974_v28 = vmul.f32 %v962_v25, %v4739_v6  ;;  %v975_v38 = vmul.f32 %v963_v15, %v4739_v6  ;;  %v1008_v29 = vadd.f32 %v1004_v54, %v4759_v7 }
 0x2b1   :  { %3399 = vmatmul.mubr.f32.vlgmr.msra.gmra.mrb[16].mxu0 %v961_v43  ;;  %v977_v55 = vadd.f32 %v973_v37, %v969_v30  ;;  %v1009_v2 = vadd.f32 %v1005_v11, %v4759_v7  ;;  %v1010_v32 = vadd.f32 %v1006_v10, %v4759_v7  ;;  %v1011_v22 = vadd.f32 %v1007_v9, %v4759_v7 }
 0x2b2   :  { %3401 = vmatprep.mubr.f32.mxu0 %v962_v25  ;;  %v976_v27 = vadd.f32 %v972_v58, %v968_v60  ;;  %v978_v20 = vadd.f32 %v974_v28, %v970_v40  ;;  %v979_v13 = vadd.f32 %v975_v38, %v971_v4  ;;  %v1028_v5 = vadd.f32 %v1024_v39, %v4759_v7 }
 0x2b3   :  { %v981_v51 = vmax.f32 %v977_v55, 0.0  ;;  %v1029_v44 = vadd.f32 %v1025_v53, %v4759_v7  ;;  %v1030_v16 = vadd.f32 %v1026_v61, %v4759_v7  ;;  %v1031_v54 = vadd.f32 %v1027_v42, %v4759_v7 }
 0x2b4   :  { %v980_v3 = vmax.f32 %v976_v27, 0.0  ;;  %v982_v52 = vmax.f32 %v978_v20, 0.0  ;;  %v983_v11 = vmax.f32 %v979_v13, 0.0  ;;  %v4806_v10 = vadd.f32 %v1044_v19, %v4759_v7 }
 0x2b5   :  { %3402 = vmatmul.mubr.f32.gmra.mrb[18].mxu0 %v963_v15  ;;  %v993_v9 = vmul.f32 %v981_v51, %v4739_v6  ;;  %v1049_v0 = vadd.f32 %v1045_v31, %v4759_v7  ;;  %v1050_v39 = vadd.f32 %v1046_v49, %v4759_v7  ;;  %v1051_v60 = vadd.f32 %v1047_v56, %v4759_v7 }
 0x2b6   :  { %v992_v53 = vmul.f32 %v980_v3, %v4739_v6  ;;  %3404 = vmatprep.mubr.f32.mxu0 %v980_v3  ;;  %v994_v61 = vmul.f32 %v982_v52, %v4739_v6  ;;  %v995_v42 = vmul.f32 %v983_v11, %v4739_v6  ;;  %v4816_v43 = vadd.f32 %v1064_v50, %v4759_v7 }
 0x2b7   :  { %v997_v19 = vadd.f32 %v993_v9, %v989_v45  ;;  %v4819_v30 = vadd.f32 %v1065_v48, %v4759_v7  ;;  %v4822_v31 = vadd.f32 %v1066_v33, %v4759_v7  ;;  %v4825_v49 = vadd.f32 %v1067_v8, %v4759_v7 }
 0x2b8   :  { %v996_v56 = vadd.f32 %v992_v53, %v988_v63  ;;  %v998_v40 = vadd.f32 %v994_v61, %v990_v21  ;;  %v999_v4 = vadd.f32 %v995_v42, %v991_v24  ;;  %v4828_v59 = vadd.f32 %v1084_v47, %v4759_v7 }
 0x2b9   :  { %3405 = vmatmul.mubr.f32.gmra.mrb[20].mxu0 %v981_v51  ;;  %v1001_v25 = vmax.f32 %v997_v19, 0.0  ;;  %v4831_v50 = vadd.f32 %v1085_v12, %v4759_v7  ;;  %v4835_v48 = vadd.f32 %v4742_v1, %v4759_v7  ;;  %v4839_v33 = vadd.f32 %v4779_v36, %v4759_v7 }
 0x2ba   :  { %3407 = vmatprep.mubr.f32.mxu0 %v982_v52  ;;  %v1000_v8 = vmax.f32 %v996_v56, 0.0  ;;  %v1002_v15 = vmax.f32 %v998_v40, 0.0  ;;  %v1003_v63 = vmax.f32 %v999_v4, 0.0 }
 0x2bb   :  { %v1013_v47 = vmul.f32 %v1001_v25, %v4739_v6 }
 0x2bc   :  { %v1012_v37 = vmul.f32 %v1000_v8, %v4739_v6  ;;  %v1014_v45 = vmul.f32 %v1002_v15, %v4739_v6  ;;  %v1015_v12 = vmul.f32 %v1003_v63, %v4739_v6 }
 0x2bd   :  { %3408 = vmatmul.mubr.f32.gmra.mrb[22].mxu0 %v983_v11  ;;  %v1017_v21 = vadd.f32 %v1013_v47, %v1009_v2 }
 0x2be   :  { %3410 = vmatprep.mubr.f32.mxu0 %v1000_v8  ;;  %v1016_v1 = vadd.f32 %v1012_v37, %v1008_v29  ;;  %v1018_v24 = vadd.f32 %v1014_v45, %v1010_v32  ;;  %v1019_v58 = vadd.f32 %v1015_v12, %v1011_v22 }
 0x2bf   :  { %v1021_v7 = vmax.f32 %v1017_v21, 0.0 }
 0x2c0   :  { %v1020_v36 = vmax.f32 %v1016_v1, 0.0  ;;  %v1022_v28 = vmax.f32 %v1018_v24, 0.0  ;;  %v1023_v38 = vmax.f32 %v1019_v58, 0.0 }
 0x2c1   :  { %3411 = vmatmul.mubr.f32.gmra.mrb[24].mxu0 %v1001_v25  ;;  %v1033_v55 = vmul.f32 %v1021_v7, %v4739_v6 }
 0x2c2   :  { %3413 = vmatprep.mubr.f32.mxu0 %v1002_v15  ;;  %v1032_v27 = vmul.f32 %v1020_v36, %v4739_v6  ;;  %v1034_v20 = vmul.f32 %v1022_v28, %v4739_v6  ;;  %v1035_v13 = vmul.f32 %v1023_v38, %v4739_v6 }
 0x2c3   :  { %v1037_v51 = vadd.f32 %v1033_v55, %v1029_v44 }
 0x2c4   :  { %v1036_v2 = vadd.f32 %v1032_v27, %v1028_v5  ;;  %v1038_v3 = vadd.f32 %v1034_v20, %v1030_v16  ;;  %v1039_v29 = vadd.f32 %v1035_v13, %v1031_v54  ;;  %v2902_v27 = vld [vmem:[%s6057_s1 + $0x1a0] sm:$0xff]  ;;  %v2903_v20 = vld [vmem:[%s6057_s1 + $0x1a8] sm:$0xff]  ;;  %v2904_v13 = vld [vmem:[%s6057_s1 + $0x1b0] sm:$0xff] }
 0x2c5   :  { %3414 = vmatmul.mubr.f32.gmra.mrb[26].mxu0 %v1003_v63  ;;  %v1041_v32 = vmax.f32 %v1037_v51, 0.0  ;;  %v3748_v51 = vpack.c.bf16 %v2903_v20, %v2902_v27 }
 0x2c6   :  { %3416 = vmatprep.mubr.f32.mxu0 %v1020_v36  ;;  %v1040_v22 = vmax.f32 %v1036_v2, 0.0  ;;  %v1042_v52 = vmax.f32 %v1038_v3, 0.0  ;;  %v1043_v11 = vmax.f32 %v1039_v29, 0.0  ;;  %v2905_v2 = vld [vmem:[%s6057_s1 + $0x1b8] sm:$0xff]  ;;  %v2906_v29 = vld [vmem:[%s6057_s1 + $0x1c0] sm:$0xff] }
 0x2c7   :  { %v1053_v9 = vmul.f32 %v1041_v32, %v4739_v6  ;;  %v3752_v3 = vpack.c.bf16 %v2905_v2, %v2904_v13 }
 0x2c8   :  { %v1052_v53 = vmul.f32 %v1040_v22, %v4739_v6  ;;  %v1054_v61 = vmul.f32 %v1042_v52, %v4739_v6  ;;  %v1055_v42 = vmul.f32 %v1043_v11, %v4739_v6 }
 0x2c9   :  { %3417 = vmatmul.mubr.f32.gmra.mrb[28].mxu0 %v1021_v7  ;;  %v1057_v19 = vadd.f32 %v1053_v9, %v1049_v0 }
 0x2ca   :  { %3419 = vmatprep.mubr.f32.mxu0 %v1022_v28  ;;  %v1056_v5 = vadd.f32 %v1052_v53, %v4806_v10  ;;  %v1058_v44 = vadd.f32 %v1054_v61, %v1050_v39  ;;  %v1059_v16 = vadd.f32 %v1055_v42, %v1051_v60  ;;  %v2900_v28 = vld [vmem:[%s6057_s1 + $0x190] sm:$0xff]  ;;  %v2910_v53 = vld [vmem:[%s6057_s1 + $0x1e0] sm:$0xff]  ;;  %v2911_v61 = vld [vmem:[%s6057_s1 + $0x1e8] sm:$0xff] }
 0x2cb   :  { %v1061_v54 = vmax.f32 %v1057_v19, 0.0  ;;  %v4915_v42 = vld [vmem:[%s6059_s2 + $0x8] sm:$0xff]  ;;  %v3764_v19 = vpack.c.bf16 %v2911_v61, %v2910_v53  ;;  %v6160_v61 = vld [vmem:[#allocation5_spill] sm:$0xff] }
 0x2cc   :  { %v1060_v56 = vmax.f32 %v1056_v5, 0.0  ;;  %v1062_v40 = vmax.f32 %v1058_v44, 0.0  ;;  %v1063_v4 = vmax.f32 %v1059_v16, 0.0  ;;  %v2912_v5 = vld [vmem:[%s6057_s1 + $0x1f0] sm:$0xff]  ;;  %v2913_v44 = vld [vmem:[%s6057_s1 + $0x1f8] sm:$0xff]  ;;  %v4925_v16 = vrot.slane %v4915_v42, %v4095_v18 }
 0x2cd   :  { %3420 = vmatmul.mubr.f32.gmra.mrb[30].mxu0 %v1023_v38  ;;  %v1073_v25 = vmul.f32 %v1061_v54, %v4739_v6  ;;  %v2901_v38 = vld [vmem:[%s6057_s1 + $0x198] sm:$0xff] }
 0x2ce   :  { %3422 = vmatprep.mubr.f32.mxu0 %v1040_v22  ;;  %v1072_v8 = vmul.f32 %v1060_v56, %v4739_v6  ;;  %v1074_v15 = vmul.f32 %v1062_v40, %v4739_v6  ;;  %v1075_v63 = vmul.f32 %v1063_v4, %v4739_v6  ;;  %v3744_v55 = vpack.c.bf16 %v2901_v38, %v2900_v28 }
 0x2cf   :  { %v1077_v0 = vadd.f32 %v1073_v25, %v4819_v30 }
 0x2d0   :  { %v1076_v10 = vadd.f32 %v1072_v8, %v4816_v43  ;;  %v1078_v39 = vadd.f32 %v1074_v15, %v4822_v31  ;;  %v1079_v60 = vadd.f32 %v1075_v63, %v4825_v49 }
 0x2d1   :  { %3423 = vmatmul.mubr.f32.gmra.mrb[32].mxu0 %v1041_v32  ;;  %v1081_v47 = vmax.f32 %v1077_v0, 0.0  ;;  %v2907_v32 = vld [vmem:[%s6057_s1 + $0x1c8] sm:$0xff] }
 0x2d2   :  { %3425 = vmatprep.mubr.f32.mxu0 %v1042_v52  ;;  %v1080_v37 = vmax.f32 %v1076_v10, 0.0  ;;  %v1082_v45 = vmax.f32 %v1078_v39, 0.0  ;;  %v1083_v12 = vmax.f32 %v1079_v60, 0.0  ;;  %v3756_v22 = vpack.c.bf16 %v2907_v32, %v2906_v29  ;;  %v2908_v52 = vld [vmem:[%s6057_s1 + $0x1d0] sm:$0xff] }
 0x2d3   :  { %v1093_v21 = vmul.f32 %v1081_v47, %v4739_v6 }
 0x2d4   :  { %v1092_v1 = vmul.f32 %v1080_v37, %v4739_v6  ;;  %v1094_v24 = vmul.f32 %v1082_v45, %v4739_v6  ;;  %v1095_v30 = vmul.f32 %v1083_v12, %v4739_v6 }
 0x2d5   :  { %3426 = vmatmul.mubr.f32.gmra.mrb[34].mxu0 %v1043_v11  ;;  %v1097_v43 = vadd.f32 %v1093_v21, %v4831_v50  ;;  %v2909_v11 = vld [vmem:[%s6057_s1 + $0x1d8] sm:$0xff] }
 0x2d6   :  { %3428 = vmatprep.mubr.f32.mxu0 %v1060_v56  ;;  %v1096_v31 = vadd.f32 %v1092_v1, %v4828_v59  ;;  %v1098_v49 = vadd.f32 %v1094_v24, %v4835_v48  ;;  %v1099_v58 = vadd.f32 %v1095_v30, %v4839_v33  ;;  %v2898_v59 = vld [vmem:[%s6057_s1 + $0x180] sm:$0xff]  ;;  %v2899_v48 = vld [vmem:[%s6057_s1 + $0x188] sm:$0xff]  ;;  %v3760_v9 = vpack.c.bf16 %v2909_v11, %v2908_v52  ;;  %v6158_v52 = vld [vmem:[#allocation4_spill] sm:$0xff] }
 0x2d7   :  { %v1101_v6 = vmax.f32 %v1097_v43, 0.0  ;;  %v3740_v33 = vpack.c.bf16 %v2899_v48, %v2898_v59 }
 0x2d8   :  { %v1100_v7 = vmax.f32 %v1096_v31, 0.0  ;;  %v1102_v36 = vmax.f32 %v1098_v49, 0.0  ;;  %v1103_v50 = vmax.f32 %v1099_v58, 0.0 }
 0x2d9   :  { %3429 = vmatmul.mubr.f32.gmra.mrb[36].mxu0 %v1061_v54  ;;  %3741 = vmatprep.subr.bf16.mxu1 %v3740_v33  ;;  %v3768_v54 = vpack.c.bf16 %v2913_v44, %v2912_v5 }
 0x2da   :  { %3431 = vmatprep.mubr.f32.mxu0 %v1062_v40  ;;  %3743 = vmatpush3.bf16.msra.mxu1 %v3740_v33 }
 0x2db   :  { %3745 = vmatprep.subr.bf16.mxu1 %v3744_v55 }
 0x2dd   :  { %3432 = vmatmul.mubr.f32.gmra.mrb[38].mxu0 %v1063_v4 }
 0x2de   :  { %3434 = vmatprep.mubr.f32.mxu0 %v1080_v37  ;;  %3747 = vmatpush3.bf16.msra.mxu1 %v3744_v55  ;;  %v6156_v55 = vld [vmem:[#allocation3_spill] sm:$0xff] }
 0x2df   :  { %3749 = vmatprep.subr.bf16.mxu1 %v3748_v51 }
 0x2e1   :  { %3435 = vmatmul.mubr.f32.gmra.mrb[40].mxu0 %v1081_v47 }
 0x2e2   :  { %3437 = vmatprep.mubr.f32.mxu0 %v1082_v45  ;;  %3751 = vmatpush3.bf16.msra.mxu1 %v3748_v51 }
 0x2e3   :  { %3753 = vmatprep.subr.bf16.mxu1 %v3752_v3 }
 0x2e5   :  { %3438 = vmatmul.mubr.f32.gmra.mrb[42].mxu0 %v1083_v12 }
 0x2e6   :  { %3440 = vmatprep.mubr.f32.mxu0 %v1100_v7  ;;  %3755 = vmatpush3.bf16.msra.mxu1 %v3752_v3 }
 0x2e7   :  { %3757 = vmatprep.subr.bf16.mxu1 %v3756_v22 }
 0x2e9   :  { %3441 = vmatmul.mubr.f32.gmra.mrb[44].mxu0 %v1101_v6 }
 0x2ea   :  { %3443 = vmatprep.mubr.f32.mxu0 %v1102_v36  ;;  %3759 = vmatpush3.bf16.msra.mxu1 %v3756_v22 }
 0x2eb   :  { %3761 = vmatprep.subr.bf16.mxu1 %v3760_v9 }
 0x2ed   :  { %3444 = vmatmul.mubr.f32.gmra.mrb[46].mxu0 %v1103_v50 }
 0x2ee   :  { %3763 = vmatpush3.bf16.msra.mxu1 %v3760_v9 }
 0x2ef   :  { %3765 = vmatprep.subr.bf16.mxu1 %v3764_v19 }
 0x2f2   :  { %3767 = vmatpush3.bf16.msra.mxu1 %v3764_v19 }
 0x2f3   :  { %3769 = vmatprep.subr.bf16.mxu1 %v3768_v54 }
 0x2f6   :  { %3771 = vmatpush3.bf16.msra.mxu1 %v3768_v54 }
 0x384   :  { %v3400_v56 = vpop.f32.mrb[16].mxu0 }
 0x385   :  { %v1197_v40 = vadd.f32 %v3400_v56, %v4925_v16  ;;  %v1191_v4 = vpop.f32.mrb[17].mxu0 }
 0x386   :  { %v1192_v25 = vadd.f32 %v1191_v4, %v4925_v16 }
 0x387   :  { %v4930_v8 = vadd.f32 %v1197_v40, %v4109_v23 }
 0x388   :  { %v4933_v15 = vadd.f32 %v1192_v25, %v4114_v26  ;;  %v3403_v63 = vpop.f32.mrb[18].mxu0 }
 0x389   :  { %v1207_v0 = vadd.f32 %v3403_v63, %v4925_v16  ;;  %v1201_v10 = vpop.f32.mrb[19].mxu0  ;;  %v1420_v39 = vmul.f32 %v4930_v8, %v4930_v8 }
 0x38a   :  { %v1419_v60 = vmul.f32 %v4933_v15, %v4933_v15  ;;  %v1202_v47 = vadd.f32 %v1201_v10, %v4925_v16  ;;  %v1382_v23 = vadd.f32 %v4930_v8, %v4933_v15 }
 0x38b   :  { %v4944_v37 = vadd.f32 %v1207_v0, %v4127_v34 }
 0x38c   :  { %v4947_v26 = vadd.f32 %v1202_v47, %v4130_v35  ;;  %v3406_v45 = vpop.f32.mrb[20].mxu0  ;;  %v1451_v1 = vadd.f32 %v1420_v39, %v1419_v60  ;;  %v6162_v39 = vld [vmem:[#allocation6_spill] sm:$0xff]  ;;  %v6164_v47 = vld [vmem:[#allocation7_spill] sm:$0xff] }
 0x38d   :  { %v1217_v12 = vadd.f32 %v3406_v45, %v4925_v16  ;;  %v1211_v21 = vpop.f32.mrb[21].mxu0  ;;  %v1422_v34 = vmul.f32 %v4944_v37, %v4944_v37 }
 0x38e   :  { %v1383_v24 = vadd.f32 %v1382_v23, %v4947_v26  ;;  %v1421_v30 = vmul.f32 %v4947_v26, %v4947_v26  ;;  %v1212_v43 = vadd.f32 %v1211_v21, %v4925_v16 }
 0x38f   :  { %v4955_v31 = vadd.f32 %v1217_v12, %v4138_v41 }
 0x390   :  { %v1452_v35 = vadd.f32 %v1451_v1, %v1421_v30  ;;  %v4960_v49 = vadd.f32 %v1212_v43, %v4145_v46  ;;  %v1384_v58 = vadd.f32 %v1383_v24, %v4944_v37  ;;  %v3409_v7 = vpop.f32.mrb[22].mxu0  ;;  %v6154_v46 = vld [vmem:[#allocation2_spill] sm:$0xff] }
 0x391   :  { %v1227_v6 = vadd.f32 %v3409_v7, %v4925_v16  ;;  %v1221_v36 = vpop.f32.mrb[23].mxu0  ;;  %v1424_v33 = vmul.f32 %v4955_v31, %v4955_v31 }
 0x392   :  { %v1385_v50 = vadd.f32 %v1384_v58, %v4960_v49  ;;  %v1423_v59 = vmul.f32 %v4960_v49, %v4960_v49  ;;  %v1453_v41 = vadd.f32 %v1452_v35, %v1422_v34  ;;  %v1222_v48 = vadd.f32 %v1221_v36, %v4925_v16  ;;  %v6166_v35 = vld [vmem:[#allocation8_spill] sm:$0xff]  ;;  %v6168_v36 = vld [vmem:[#allocation9_spill] sm:$0xff] }
 0x393   :  { %v4971_v38 = vadd.f32 %v1227_v6, %v6154_v46 }
 0x394   :  { %v1454_v28 = vadd.f32 %v1453_v41, %v1423_v59  ;;  %v4974_v27 = vadd.f32 %v1222_v48, %v6156_v55  ;;  %v1386_v20 = vadd.f32 %v1385_v50, %v4955_v31  ;;  %v3412_v13 = vpop.f32.mrb[24].mxu0 }
 0x395   :  { %6155 = vst [vmem:[#allocation2_spill] sm:$0xff] %v4971_v38  ;;  %v1237_v51 = vadd.f32 %v3412_v13, %v4925_v16  ;;  %v1231_v2 = vpop.f32.mrb[25].mxu0  ;;  %v1426_v9 = vmul.f32 %v4971_v38, %v4971_v38 }
 0x396   :  { %6157 = vst [vmem:[#allocation3_spill] sm:$0xff] %v4974_v27  ;;  %v1387_v3 = vadd.f32 %v1386_v20, %v4974_v27  ;;  %v1425_v29 = vmul.f32 %v4974_v27, %v4974_v27  ;;  %v1455_v32 = vadd.f32 %v1454_v28, %v1424_v33  ;;  %v1232_v22 = vadd.f32 %v1231_v2, %v4925_v16  ;;  %v6170_v2 = vld [vmem:[#allocation11_spill] sm:$0xff] }
 0x397   :  { %v4983_v11 = vadd.f32 %v1237_v51, %v6158_v52 }
 0x398   :  { %v1456_v53 = vadd.f32 %v1455_v32, %v1425_v29  ;;  %v4988_v19 = vadd.f32 %v1232_v22, %v6160_v61  ;;  %v1388_v5 = vadd.f32 %v1387_v3, %v4971_v38  ;;  %v3415_v44 = vpop.f32.mrb[26].mxu0  ;;  %v6172_v29 = vld [vmem:[#allocation12_spill] sm:$0xff] }
 0x399   :  { %6159 = vst [vmem:[#allocation4_spill] sm:$0xff] %v4983_v11  ;;  %v1247_v54 = vadd.f32 %v3415_v44, %v4925_v16  ;;  %v1241_v56 = vpop.f32.mrb[27].mxu0  ;;  %v1428_v0 = vmul.f32 %v4983_v11, %v4983_v11 }
 0x39a   :  { %6161 = vst [vmem:[#allocation5_spill] sm:$0xff] %v4988_v19  ;;  %v1389_v40 = vadd.f32 %v1388_v5, %v4988_v19  ;;  %v1427_v4 = vmul.f32 %v4988_v19, %v4988_v19  ;;  %v1457_v25 = vadd.f32 %v1456_v53, %v1426_v9  ;;  %v1242_v63 = vadd.f32 %v1241_v56, %v4925_v16  ;;  %v6174_v56 = vld [vmem:[#allocation13_spill] sm:$0xff] }
 0x39b   :  { %v4999_v60 = vadd.f32 %v1247_v54, %v6162_v39 }
 0x39c   :  { %v1458_v10 = vadd.f32 %v1457_v25, %v1427_v4  ;;  %v5002_v23 = vadd.f32 %v1242_v63, %v6164_v47  ;;  %v1390_v45 = vadd.f32 %v1389_v40, %v4983_v11  ;;  %v3418_v12 = vpop.f32.mrb[28].mxu0  ;;  %v6176_v63 = vld [vmem:[#allocation10_spill] sm:$0xff] }
 0x39d   :  { %6163 = vst [vmem:[#allocation6_spill] sm:$0xff] %v4999_v60  ;;  %v1257_v21 = vadd.f32 %v3418_v12, %v4925_v16  ;;  %v1251_v1 = vpop.f32.mrb[29].mxu0  ;;  %v1430_v7 = vmul.f32 %v4999_v60, %v4999_v60 }
 0x39e   :  { %6165 = vst [vmem:[#allocation7_spill] sm:$0xff] %v5002_v23  ;;  %v1391_v24 = vadd.f32 %v1390_v45, %v5002_v23  ;;  %v1429_v30 = vmul.f32 %v5002_v23, %v5002_v23  ;;  %v1459_v43 = vadd.f32 %v1458_v10, %v1428_v0  ;;  %v1252_v34 = vadd.f32 %v1251_v1, %v4925_v16 }
 0x39f   :  { %v5011_v58 = vadd.f32 %v1257_v21, %v6166_v35 }
 0x3a0   :  { %v1460_v6 = vadd.f32 %v1459_v43, %v1429_v30  ;;  %v5016_v50 = vadd.f32 %v1252_v34, %v6168_v36  ;;  %v1392_v59 = vadd.f32 %v1391_v24, %v4999_v60  ;;  %v3421_v41 = vpop.f32.mrb[30].mxu0  ;;  %v6178_v34 = vld [vmem:[#allocation15_spill] sm:$0xff] }
 0x3a1   :  { %6167 = vst [vmem:[#allocation8_spill] sm:$0xff] %v5011_v58  ;;  %v1267_v48 = vadd.f32 %v3421_v41, %v4925_v16  ;;  %v1261_v33 = vpop.f32.mrb[31].mxu0  ;;  %v1432_v13 = vmul.f32 %v5011_v58, %v5011_v58 }
 0x3a2   :  { %6169 = vst [vmem:[#allocation9_spill] sm:$0xff] %v5016_v50  ;;  %v1393_v28 = vadd.f32 %v1392_v59, %v5016_v50  ;;  %v1431_v46 = vmul.f32 %v5016_v50, %v5016_v50  ;;  %v1461_v55 = vadd.f32 %v1460_v6, %v1430_v7  ;;  %v1262_v20 = vadd.f32 %v1261_v33, %v4925_v16  ;;  %v6180_v7 = vld [vmem:[#allocation14_spill] sm:$0xff] }
 0x3a3   :  { %v5027_v3 = vadd.f32 %v1267_v48, %v6170_v2 }
 0x3a4   :  { %v1462_v51 = vadd.f32 %v1461_v55, %v1431_v46  ;;  %v5030_v32 = vadd.f32 %v1262_v20, %v6172_v29  ;;  %v1394_v22 = vadd.f32 %v1393_v28, %v5011_v58  ;;  %v3424_v52 = vpop.f32.mrb[32].mxu0  ;;  %v6182_v20 = vld [vmem:[#allocation17_spill] sm:$0xff]  ;;  %v6184_v29 = vld [vmem:[#allocation16_spill] sm:$0xff] }
 0x3a5   :  { %6171 = vst [vmem:[#allocation11_spill] sm:$0xff] %v5027_v3  ;;  %v1277_v9 = vadd.f32 %v3424_v52, %v4925_v16  ;;  %v1271_v53 = vpop.f32.mrb[33].mxu0  ;;  %v1434_v4 = vmul.f32 %v5027_v3, %v5027_v3 }
 0x3a6   :  { %6173 = vst [vmem:[#allocation12_spill] sm:$0xff] %v5030_v32  ;;  %v1395_v61 = vadd.f32 %v1394_v22, %v5030_v32  ;;  %v1433_v5 = vmul.f32 %v5030_v32, %v5030_v32  ;;  %v1463_v44 = vadd.f32 %v1462_v51, %v1432_v13  ;;  %v1272_v54 = vadd.f32 %v1271_v53, %v4925_v16 }
 0x3a7   :  { %v5039_v40 = vadd.f32 %v1277_v9, %v6174_v56 }
 0x3a8   :  { %v1464_v25 = vadd.f32 %v1463_v44, %v1433_v5  ;;  %v5044_v0 = vadd.f32 %v1272_v54, %v6176_v63  ;;  %v1396_v10 = vadd.f32 %v1395_v61, %v5027_v3  ;;  %v3427_v39 = vpop.f32.mrb[34].mxu0  ;;  %v6186_v63 = vld [vmem:[#allocation19_spill] sm:$0xff] }
 0x3a9   :  { %6175 = vst [vmem:[#allocation13_spill] sm:$0xff] %v5039_v40  ;;  %v1287_v47 = vadd.f32 %v3427_v39, %v4925_v16  ;;  %v1281_v45 = vpop.f32.mrb[35].mxu0  ;;  %v1436_v30 = vmul.f32 %v5039_v40, %v5039_v40  ;;  %v6188_v39 = vld [vmem:[#allocation18_spill] sm:$0xff] }
 0x3aa   :  { %6177 = vst [vmem:[#allocation10_spill] sm:$0xff] %v5044_v0  ;;  %v1397_v12 = vadd.f32 %v1396_v10, %v5044_v0  ;;  %v1435_v21 = vmul.f32 %v5044_v0, %v5044_v0  ;;  %v1465_v1 = vadd.f32 %v1464_v25, %v1434_v4  ;;  %v1282_v24 = vadd.f32 %v1281_v45, %v4925_v16 }
 0x3ab   :  { %v5055_v35 = vadd.f32 %v1287_v47, %v6178_v34 }
 0x3ac   :  { %v1466_v43 = vadd.f32 %v1465_v1, %v1435_v21  ;;  %v5058_v6 = vadd.f32 %v1282_v24, %v6180_v7  ;;  %v1398_v36 = vadd.f32 %v1397_v12, %v5039_v40  ;;  %v3430_v59 = vpop.f32.mrb[36].mxu0  ;;  %v6190_v7 = vld [vmem:[#allocation21_spill] sm:$0xff] }
 0x3ad   :  { %6179 = vst [vmem:[#allocation15_spill] sm:$0xff] %v5055_v35  ;;  %v1297_v41 = vadd.f32 %v3430_v59, %v4925_v16  ;;  %v1291_v48 = vpop.f32.mrb[37].mxu0  ;;  %v1438_v51 = vmul.f32 %v5055_v35, %v5055_v35 }
 0x3ae   :  { %6181 = vst [vmem:[#allocation14_spill] sm:$0xff] %v5058_v6  ;;  %v1399_v33 = vadd.f32 %v1398_v36, %v5058_v6  ;;  %v1437_v28 = vmul.f32 %v5058_v6, %v5058_v6  ;;  %v1467_v46 = vadd.f32 %v1466_v43, %v1436_v30  ;;  %v1292_v55 = vadd.f32 %v1291_v48, %v4925_v16  ;;  %v6192_v48 = vld [vmem:[#allocation20_spill] sm:$0xff] }
 0x3af   :  { %v5067_v13 = vadd.f32 %v1297_v41, %v6182_v20 }
 0x3b0   :  { %v1468_v2 = vadd.f32 %v1467_v46, %v1437_v28  ;;  %v5072_v22 = vadd.f32 %v1292_v55, %v6184_v29  ;;  %v1400_v52 = vadd.f32 %v1399_v33, %v5055_v35  ;;  %v3433_v9 = vpop.f32.mrb[38].mxu0 }
 0x3b1   :  { %6183 = vst [vmem:[#allocation17_spill] sm:$0xff] %v5067_v13  ;;  %v1307_v53 = vadd.f32 %v3433_v9, %v4925_v16  ;;  %v1301_v61 = vpop.f32.mrb[39].mxu0  ;;  %v1440_v4 = vmul.f32 %v5067_v13, %v5067_v13 }
 0x3b2   :  { %6185 = vst [vmem:[#allocation16_spill] sm:$0xff] %v5072_v22  ;;  %v1401_v5 = vadd.f32 %v1400_v52, %v5072_v22  ;;  %v1439_v44 = vmul.f32 %v5072_v22, %v5072_v22  ;;  %v1469_v54 = vadd.f32 %v1468_v2, %v1438_v51  ;;  %v1302_v56 = vadd.f32 %v1301_v61, %v4925_v16  ;;  %v6194_v61 = vld [vmem:[#allocation23_spill] sm:$0xff] }
 0x3b3   :  { %v5083_v10 = vadd.f32 %v1307_v53, %v6186_v63 }
 0x3b4   :  { %v1470_v25 = vadd.f32 %v1469_v54, %v1439_v44  ;;  %v5086_v47 = vadd.f32 %v1302_v56, %v6188_v39  ;;  %v1402_v45 = vadd.f32 %v1401_v5, %v5067_v13  ;;  %v3436_v12 = vpop.f32.mrb[40].mxu0  ;;  %v6196_v44 = vld [vmem:[#allocation22_spill] sm:$0xff] }
 0x3b5   :  { %6187 = vst [vmem:[#allocation19_spill] sm:$0xff] %v5083_v10  ;;  %v1317_v21 = vadd.f32 %v3436_v12, %v4925_v16  ;;  %v1311_v1 = vpop.f32.mrb[41].mxu0  ;;  %v1442_v59 = vmul.f32 %v5083_v10, %v5083_v10 }
 0x3b6   :  { %6189 = vst [vmem:[#allocation18_spill] sm:$0xff] %v5086_v47  ;;  %v1403_v24 = vadd.f32 %v1402_v45, %v5086_v47  ;;  %v1441_v30 = vmul.f32 %v5086_v47, %v5086_v47  ;;  %v1471_v43 = vadd.f32 %v1470_v25, %v1440_v4  ;;  %v1312_v34 = vadd.f32 %v1311_v1, %v4925_v16  ;;  %v6198_v1 = vld [vmem:[#allocation25_spill] sm:$0xff] }
 0x3b7   :  { %v5095_v36 = vadd.f32 %v1317_v21, %v6190_v7 }
 0x3b8   :  { %v1472_v41 = vadd.f32 %v1471_v43, %v1441_v30  ;;  %v5100_v33 = vadd.f32 %v1312_v34, %v6192_v48  ;;  %v1404_v28 = vadd.f32 %v1403_v24, %v5083_v10  ;;  %v3439_v46 = vpop.f32.mrb[42].mxu0  ;;  %v6200_v34 = vld [vmem:[#allocation24_spill] sm:$0xff] }
 0x3b9   :  { %6191 = vst [vmem:[#allocation21_spill] sm:$0xff] %v5095_v36  ;;  %v1327_v55 = vadd.f32 %v3439_v46, %v4925_v16  ;;  %v1321_v20 = vpop.f32.mrb[43].mxu0  ;;  %v1444_v9 = vmul.f32 %v5095_v36, %v5095_v36 }
 0x3ba   :  { %6193 = vst [vmem:[#allocation20_spill] sm:$0xff] %v5100_v33  ;;  %v1405_v51 = vadd.f32 %v1404_v28, %v5100_v33  ;;  %v1443_v2 = vmul.f32 %v5100_v33, %v5100_v33  ;;  %v1473_v29 = vadd.f32 %v1472_v41, %v1442_v59  ;;  %v1322_v52 = vadd.f32 %v1321_v20, %v4925_v16 }
 0x3bb   :  { %v5111_v5 = vadd.f32 %v1327_v55, %v6194_v61 }
 0x3bc   :  { %v1474_v53 = vadd.f32 %v1473_v29, %v1443_v2  ;;  %v5114_v54 = vadd.f32 %v1322_v52, %v6196_v44  ;;  %v1406_v56 = vadd.f32 %v1405_v51, %v5095_v36  ;;  %v3442_v4 = vpop.f32.mrb[44].mxu0  ;;  %v6202_v52 = vld [vmem:[#allocation27_spill] sm:$0xff] }
 0x3bd   :  { %6195 = vst [vmem:[#allocation23_spill] sm:$0xff] %v5111_v5  ;;  %v1337_v25 = vadd.f32 %v3442_v4, %v4925_v16  ;;  %v1331_v63 = vpop.f32.mrb[45].mxu0  ;;  %v1446_v30 = vmul.f32 %v5111_v5, %v5111_v5 }
 0x3be   :  { %6197 = vst [vmem:[#allocation22_spill] sm:$0xff] %v5114_v54  ;;  %v1407_v39 = vadd.f32 %v1406_v56, %v5114_v54  ;;  %v1445_v45 = vmul.f32 %v5114_v54, %v5114_v54  ;;  %v1475_v12 = vadd.f32 %v1474_v53, %v1444_v9  ;;  %v1332_v21 = vadd.f32 %v1331_v63, %v4925_v16  ;;  %v6204_v53 = vld [vmem:[#allocation26_spill] sm:$0xff] }
 0x3bf   :  { %v5123_v24 = vadd.f32 %v1337_v25, %v6198_v1 }
 0x3c0   :  { %v1476_v43 = vadd.f32 %v1475_v12, %v1445_v45  ;;  %v5128_v7 = vadd.f32 %v1332_v21, %v6200_v34  ;;  %v1408_v59 = vadd.f32 %v1407_v39, %v5111_v5  ;;  %v3445_v41 = vpop.f32.mrb[46].mxu0 }
 0x3c1   :  { %6199 = vst [vmem:[#allocation25_spill] sm:$0xff] %v5123_v24  ;;  %v1347_v48 = vadd.f32 %v3445_v41, %v4925_v16  ;;  %v1341_v28 = vpop.f32.mrb[47].mxu0  ;;  %v1448_v2 = vmul.f32 %v5123_v24, %v5123_v24 }
 0x3c2   :  { %6201 = vst [vmem:[#allocation24_spill] sm:$0xff] %v5128_v7  ;;  %v1409_v46 = vadd.f32 %v1408_v59, %v5128_v7  ;;  %v1447_v55 = vmul.f32 %v5128_v7, %v5128_v7  ;;  %v1477_v20 = vadd.f32 %v1476_v43, %v1446_v30  ;;  %v1342_v51 = vadd.f32 %v1341_v28, %v4925_v16 }
 0x3c3   :  { %v5139_v9 = vadd.f32 %v1347_v48, %v6202_v52 }
 0x3c4   :  { %v1478_v29 = vadd.f32 %v1477_v20, %v1447_v55  ;;  %v5142_v61 = vadd.f32 %v1342_v51, %v6204_v53  ;;  %v1410_v44 = vadd.f32 %v1409_v46, %v5123_v24 }
 0x3c5   :  { %6203 = vst [vmem:[#allocation27_spill] sm:$0xff] %v5139_v9  ;;  %v1450_v16 = vmul.f32 %v5139_v9, %v5139_v9 }
 0x3c6   :  { %6205 = vst [vmem:[#allocation26_spill] sm:$0xff] %v5142_v61  ;;  %v1411_v56 = vadd.f32 %v1410_v44, %v5142_v61  ;;  %v1449_v4 = vmul.f32 %v5142_v61, %v5142_v61  ;;  %v1479_v25 = vadd.f32 %v1478_v29, %v1448_v2 }
 0x3c8   :  { %v1412_v63 = vadd.f32 %v1411_v56, %v5139_v9  ;;  %v1480_v39 = vadd.f32 %v1479_v25, %v1449_v4  ;;  %v6206_v4 = vld [vmem:[#allocation28_spill] sm:$0xff] }
 0x3ca   :  { %v1413_v45 = vrot.slane %v1412_v63, 4  ;;  %v1481_v12 = vadd.f32 %v1480_v39, %v1450_v16 }
 0x3cc   :  { %v1414_v21 = vadd.f32 %v1413_v45, %v1412_v63  ;;  %v1482_v1 = vrot.slane %v1481_v12, 4  ;;  %v6207_v45 = vld [vmem:[#allocation29_spill] sm:$0xff] }
 0x3ce   :  { %v1415_v30 = vrot.slane %v1414_v21, 2  ;;  %v1483_v43 = vadd.f32 %v1482_v1, %v1481_v12 }
 0x3d0   :  { %v1416_v34 = vadd.f32 %v1415_v30, %v1414_v21  ;;  %v1484_v59 = vrot.slane %v1483_v43, 2 }
 0x3d2   :  { %v1417_v41 = vrot.slane %v1416_v34, 1  ;;  %v1485_v48 = vadd.f32 %v1484_v59, %v1483_v43  ;;  %v6208_v43 = vld [vmem:[#allocation30_spill] sm:$0xff] }
 0x3d4   :  { %v1418_v28 = vadd.f32 %v1417_v41, %v1416_v34  ;;  %v1486_v46 = vrot.slane %v1485_v48, 1  ;;  %v5169_v34 = vrot.slane %v4915_v42, %v6208_v43 }
 0x3d6   :  { %v1487_v55 = vadd.f32 %v1486_v46, %v1485_v48  ;;  %v1488_v20 = vmul.f32 0.00390625, %v1418_v28 }
 0x3d8   :  { %v1489_v51 = vmul.f32 0.00390625, %v1487_v55  ;;  %v1490_v2 = vmul.f32 %v1488_v20, %v1488_v20 }
 0x3da   :  { %v1491_v29 = vsub.f32 %v1489_v51, %v1490_v2 }
 0x3dc   :  { %v1492_v52 = vadd.f32 1e-05, %v1491_v29 }
 0x3de   :  { %3872 = vrsqrt.f32 %v1492_v52 }
 0x3e8   :  { %v3873_v53 = vpop.eup %3872 }
 0x3e9   :  { %v1494_v44 = vmul.f32 %v3873_v53, %v4915_v42 }
 0x3eb   :  { %v1495_v56 = vmul.f32 %v1494_v44, %v1488_v20  ;;  %v5153_v25 = vrot.slane %v1494_v44, %v6206_v4 }
 0x3ed   :  { %v1497_v16 = vrot.slane %v1495_v56, 7  ;;  %v1513_v39 = vmul.f32 %v5153_v25, %v4930_v8  ;;  %v1512_v21 = vmul.f32 %v5153_v25, %v4933_v15  ;;  %v1514_v1 = vmul.f32 %v5153_v25, %v4947_v26 }
 0x3ee   :  { %v1515_v30 = vmul.f32 %v5153_v25, %v4944_v37  ;;  %v1524_v46 = vmul.f32 %v5153_v25, %v4960_v49  ;;  %v1525_v55 = vmul.f32 %v5153_v25, %v4955_v31  ;;  %v1526_v20 = vmul.f32 %v5153_v25, %v4974_v27 }
 0x3ef   :  { %v1499_v63 = vsub.f32 %v4915_v42, %v1497_v16  ;;  %v1527_v51 = vmul.f32 %v5153_v25, %v4971_v38 }
 0x3f1   :  { %v5159_v12 = vrot.slane %v1499_v63, %v6207_v45  ;;  %v1605_v45 = vmul.f32 %v5153_v25, %v5067_v13 }
 0x3f3   :  { %v1516_v59 = vadd.f32 %v1512_v21, %v5159_v12  ;;  %v1517_v41 = vadd.f32 %v1513_v39, %v5159_v12  ;;  %v1518_v48 = vadd.f32 %v1514_v1, %v5159_v12  ;;  %v1519_v28 = vadd.f32 %v1515_v30, %v5159_v12 }
 0x3f4   :  { %v1528_v44 = vadd.f32 %v1524_v46, %v5159_v12  ;;  %v1529_v56 = vadd.f32 %v1525_v55, %v5159_v12  ;;  %v1530_v16 = vadd.f32 %v1526_v20, %v5159_v12  ;;  %v1531_v63 = vadd.f32 %v1527_v51, %v5159_v12 }
 0x3f5   :  { %v1520_v2 = vmax.f32 %v1516_v59, 0.0  ;;  %v1521_v29 = vmax.f32 %v1517_v41, 0.0  ;;  %v1522_v52 = vmax.f32 %v1518_v48, 0.0  ;;  %v1523_v53 = vmax.f32 %v1519_v28, 0.0 }
 0x3f6   :  { %v1544_v46 = vmul.f32 %v5153_v25, %v4988_v19  ;;  %v1545_v55 = vmul.f32 %v5153_v25, %v4983_v11  ;;  %v1546_v20 = vmul.f32 %v5153_v25, %v5002_v23  ;;  %v1547_v51 = vmul.f32 %v5153_v25, %v4999_v60 }
 0x3f7   :  { %v1532_v39 = vmul.f32 %v1520_v2, %v5169_v34  ;;  %3478 = vmatprep.mubr.f32.mxu1 %v1520_v2  ;;  %v1534_v21 = vmul.f32 %v1522_v52, %v5169_v34  ;;  %v1535_v1 = vmul.f32 %v1523_v53, %v5169_v34  ;;  %v1533_v30 = vmul.f32 %v1521_v29, %v5169_v34 }
 0x3f8   :  { %3479 = vmatmul.mubr.f32.vlgmr.msra.gmra.mrb[48].mxu1 %v1521_v29 }
 0x3f9   :  { %3481 = vmatprep.mubr.f32.mxu1 %v1522_v52  ;;  %v1536_v59 = vadd.f32 %v1532_v39, %v1528_v44  ;;  %v1537_v41 = vadd.f32 %v1533_v30, %v1529_v56  ;;  %v1538_v48 = vadd.f32 %v1534_v21, %v1530_v16  ;;  %v1539_v28 = vadd.f32 %v1535_v1, %v1531_v63 }
 0x3fa   :  { %v1548_v44 = vadd.f32 %v1544_v46, %v5159_v12  ;;  %v1549_v56 = vadd.f32 %v1545_v55, %v5159_v12  ;;  %v1550_v16 = vadd.f32 %v1546_v20, %v5159_v12  ;;  %v1551_v63 = vadd.f32 %v1547_v51, %v5159_v12 }
 0x3fb   :  { %v1540_v2 = vmax.f32 %v1536_v59, 0.0  ;;  %v1541_v57 = vmax.f32 %v1537_v41, 0.0  ;;  %v1542_v29 = vmax.f32 %v1538_v48, 0.0  ;;  %v1543_v52 = vmax.f32 %v1539_v28, 0.0 }
 0x3fc   :  { %3482 = vmatmul.mubr.f32.gmra.mrb[50].mxu1 %v1523_v53  ;;  %v1564_v28 = vmul.f32 %v5153_v25, %v5016_v50  ;;  %v1565_v46 = vmul.f32 %v5153_v25, %v5011_v58  ;;  %v1566_v55 = vmul.f32 %v5153_v25, %v5030_v32  ;;  %v1567_v20 = vmul.f32 %v5153_v25, %v5027_v3 }
 0x3fd   :  { %v1552_v39 = vmul.f32 %v1540_v2, %v5169_v34  ;;  %3484 = vmatprep.mubr.f32.mxu1 %v1540_v2  ;;  %v1553_v21 = vmul.f32 %v1541_v57, %v5169_v34  ;;  %v1554_v1 = vmul.f32 %v1542_v29, %v5169_v34  ;;  %v1555_v30 = vmul.f32 %v1543_v52, %v5169_v34 }
 0x3ff   :  { %v1556_v59 = vadd.f32 %v1552_v39, %v1548_v44  ;;  %v1557_v41 = vadd.f32 %v1553_v21, %v1549_v56  ;;  %v1558_v53 = vadd.f32 %v1554_v1, %v1550_v16  ;;  %v1559_v48 = vadd.f32 %v1555_v30, %v1551_v63 }
 0x400   :  { %3485 = vmatmul.mubr.f32.gmra.mrb[52].mxu1 %v1541_v57  ;;  %v1568_v16 = vadd.f32 %v1564_v28, %v5159_v12  ;;  %v1569_v57 = vadd.f32 %v1565_v46, %v5159_v12  ;;  %v1570_v63 = vadd.f32 %v1566_v55, %v5159_v12  ;;  %v1571_v39 = vadd.f32 %v1567_v20, %v5159_v12 }
 0x401   :  { %3487 = vmatprep.mubr.f32.mxu1 %v1542_v29  ;;  %v1560_v51 = vmax.f32 %v1556_v59, 0.0  ;;  %v1561_v2 = vmax.f32 %v1557_v41, 0.0  ;;  %v1562_v44 = vmax.f32 %v1558_v53, 0.0  ;;  %v1563_v56 = vmax.f32 %v1559_v48, 0.0 }
 0x402   :  { %v1584_v28 = vmul.f32 %v5153_v25, %v5044_v0  ;;  %v1585_v46 = vmul.f32 %v5153_v25, %v5039_v40  ;;  %v1586_v55 = vmul.f32 %v5153_v25, %v5058_v6  ;;  %v1587_v20 = vmul.f32 %v5153_v25, %v5055_v35 }
 0x403   :  { %v1572_v21 = vmul.f32 %v1560_v51, %v5169_v34  ;;  %v1573_v1 = vmul.f32 %v1561_v2, %v5169_v34  ;;  %v1574_v30 = vmul.f32 %v1562_v44, %v5169_v34  ;;  %v1575_v29 = vmul.f32 %v1563_v56, %v5169_v34 }
 0x404   :  { %3488 = vmatmul.mubr.f32.gmra.mrb[54].mxu1 %v1543_v52 }
 0x405   :  { %3490 = vmatprep.mubr.f32.mxu1 %v1560_v51  ;;  %v1576_v59 = vadd.f32 %v1572_v21, %v1568_v16  ;;  %v1577_v41 = vadd.f32 %v1573_v1, %v1569_v57  ;;  %v1578_v53 = vadd.f32 %v1574_v30, %v1570_v63  ;;  %v1579_v48 = vadd.f32 %v1575_v29, %v1571_v39 }
 0x406   :  { %v1588_v16 = vadd.f32 %v1584_v28, %v5159_v12  ;;  %v1589_v57 = vadd.f32 %v1585_v46, %v5159_v12  ;;  %v1590_v63 = vadd.f32 %v1586_v55, %v5159_v12  ;;  %v1591_v39 = vadd.f32 %v1587_v20, %v5159_v12 }
 0x407   :  { %v1580_v62 = vmax.f32 %v1576_v59, 0.0  ;;  %v1581_v14 = vmax.f32 %v1577_v41, 0.0  ;;  %v1582_v52 = vmax.f32 %v1578_v53, 0.0  ;;  %v1583_v51 = vmax.f32 %v1579_v48, 0.0 }
 0x408   :  { %3491 = vmatmul.mubr.f32.gmra.mrb[56].mxu1 %v1561_v2  ;;  %v1604_v48 = vmul.f32 %v5153_v25, %v5072_v22 }
 0x409   :  { %3493 = vmatprep.mubr.f32.mxu1 %v1562_v44  ;;  %v1592_v21 = vmul.f32 %v1580_v62, %v5169_v34  ;;  %v1593_v1 = vmul.f32 %v1581_v14, %v5169_v34  ;;  %v1594_v30 = vmul.f32 %v1582_v52, %v5169_v34  ;;  %v1595_v29 = vmul.f32 %v1583_v51, %v5169_v34 }
 0x40a   :  { %v1608_v20 = vadd.f32 %v1604_v48, %v5159_v12 }
 0x40b   :  { %v1596_v59 = vadd.f32 %v1592_v21, %v1588_v16  ;;  %v1597_v41 = vadd.f32 %v1593_v1, %v1589_v57  ;;  %v1598_v2 = vadd.f32 %v1594_v30, %v1590_v63  ;;  %v1599_v53 = vadd.f32 %v1595_v29, %v1591_v39 }
 0x40c   :  { %3494 = vmatmul.mubr.f32.gmra.mrb[58].mxu1 %v1563_v56  ;;  %v1606_v56 = vmul.f32 %v5153_v25, %v5086_v47  ;;  %v1607_v30 = vmul.f32 %v5153_v25, %v5083_v10 }
 0x40d   :  { %3496 = vmatprep.mubr.f32.mxu1 %v1580_v62  ;;  %v1600_v28 = vmax.f32 %v1596_v59, 0.0  ;;  %v1601_v46 = vmax.f32 %v1597_v41, 0.0  ;;  %v1602_v44 = vmax.f32 %v1598_v2, 0.0  ;;  %v1603_v55 = vmax.f32 %v1599_v53, 0.0 }
 0x40e   :  { %v1609_v62 = vadd.f32 %v1605_v45, %v5159_v12  ;;  %v1610_v39 = vadd.f32 %v1606_v56, %v5159_v12  ;;  %v1611_v41 = vadd.f32 %v1607_v30, %v5159_v12 }
 0x40f   :  { %v1612_v43 = vmul.f32 %v1600_v28, %v5169_v34  ;;  %v1613_v16 = vmul.f32 %v1601_v46, %v5169_v34  ;;  %v1614_v57 = vmul.f32 %v1602_v44, %v5169_v34  ;;  %v1615_v21 = vmul.f32 %v1603_v55, %v5169_v34 }
 0x410   :  { %3497 = vmatmul.mubr.f32.gmra.mrb[60].mxu1 %v1581_v14 }
 0x411   :  { %3499 = vmatprep.mubr.f32.mxu1 %v1582_v52  ;;  %v1616_v63 = vadd.f32 %v1612_v43, %v1608_v20  ;;  %v1617_v1 = vadd.f32 %v1613_v16, %v1609_v62  ;;  %v1618_v59 = vadd.f32 %v1614_v57, %v1610_v39  ;;  %v1619_v14 = vadd.f32 %v1615_v21, %v1611_v41 }
 0x412   :  { %v1624_v43 = vmul.f32 %v5153_v25, %v5100_v33  ;;  %v1626_v57 = vmul.f32 %v5153_v25, %v5114_v54 }
 0x413   :  { %v1620_v29 = vmax.f32 %v1616_v63, 0.0  ;;  %v1621_v2 = vmax.f32 %v1617_v1, 0.0  ;;  %v1622_v52 = vmax.f32 %v1618_v59, 0.0  ;;  %v1623_v20 = vmax.f32 %v1619_v14, 0.0 }
 0x414   :  { %3500 = vmatmul.mubr.f32.gmra.mrb[62].mxu1 %v1583_v51  ;;  %v1628_v53 = vadd.f32 %v1624_v43, %v5159_v12  ;;  %v1625_v51 = vmul.f32 %v5153_v25, %v5095_v36  ;;  %v1627_v63 = vmul.f32 %v5153_v25, %v5111_v5 }
 0x415   :  { %3502 = vmatprep.mubr.f32.mxu1 %v1600_v28  ;;  %v1632_v45 = vmul.f32 %v1620_v29, %v5169_v34  ;;  %v1633_v48 = vmul.f32 %v1621_v2, %v5169_v34  ;;  %v1634_v28 = vmul.f32 %v1622_v52, %v5169_v34 }
 0x416   :  { %v1629_v56 = vadd.f32 %v1625_v51, %v5159_v12  ;;  %v1631_v1 = vadd.f32 %v1627_v63, %v5159_v12 }
 0x417   :  { %v1636_v16 = vadd.f32 %v1632_v45, %v1628_v53 }
 0x418   :  { %3503 = vmatmul.mubr.f32.gmra.mrb[64].mxu1 %v1601_v46  ;;  %v1630_v46 = vadd.f32 %v1626_v57, %v5159_v12  ;;  %v1637_v62 = vadd.f32 %v1633_v48, %v1629_v56  ;;  %v1646_v48 = vmul.f32 %v5153_v25, %v5142_v61  ;;  %v1647_v57 = vmul.f32 %v5153_v25, %v5139_v9 }
 0x419   :  { %3505 = vmatprep.mubr.f32.mxu1 %v1602_v44  ;;  %v1635_v44 = vmul.f32 %v1623_v20, %v5169_v34  ;;  %v1640_v39 = vmax.f32 %v1636_v16, 0.0 }
 0x41a   :  { %v1638_v21 = vadd.f32 %v1634_v28, %v1630_v46  ;;  %v1641_v30 = vmax.f32 %v1637_v62, 0.0 }
 0x41b   :  { %v1639_v59 = vadd.f32 %v1635_v44, %v1631_v1  ;;  %v1651_v44 = vadd.f32 %v1647_v57, %v5159_v12 }
 0x41c   :  { %3506 = vmatmul.mubr.f32.gmra.mrb[66].mxu1 %v1603_v55  ;;  %v1652_v55 = vmul.f32 %v1640_v39, %v5169_v34  ;;  %v1642_v41 = vmax.f32 %v1638_v21, 0.0  ;;  %v1653_v45 = vmul.f32 %v1641_v30, %v5169_v34 }
 0x41d   :  { %3508 = vmatprep.mubr.f32.mxu1 %v1620_v29  ;;  %v1644_v29 = vmul.f32 %v5153_v25, %v5128_v7  ;;  %v1643_v43 = vmax.f32 %v1639_v59, 0.0 }
 0x41f   :  { %v1648_v14 = vadd.f32 %v1644_v29, %v5159_v12  ;;  %v1655_v28 = vmul.f32 %v1643_v43, %v5169_v34 }
 0x420   :  { %3509 = vmatmul.mubr.f32.gmra.mrb[68].mxu1 %v1621_v2  ;;  %v1645_v2 = vmul.f32 %v5153_v25, %v5123_v24  ;;  %v2915_v25 = vld [vmem:[%s6057_s1 + $0x208] sm:$0xff] }
 0x421   :  { %3511 = vmatprep.mubr.f32.mxu1 %v1622_v52  ;;  %v1654_v52 = vmul.f32 %v1642_v41, %v5169_v34  ;;  %v1656_v53 = vadd.f32 %v1652_v55, %v1648_v14  ;;  %v1659_v63 = vadd.f32 %v1655_v28, %v1651_v44  ;;  %v2914_v34 = vld [vmem:[%s6057_s1 + $0x200] sm:$0xff]  ;;  %v2920_v14 = vld [vmem:[%s6057_s1 + $0x230] sm:$0xff]  ;;  %v6209_v44 = vld [vmem:[#allocation31_spill] sm:$0xff] }
 0x422   :  { %v1649_v51 = vadd.f32 %v1645_v2, %v5159_v12  ;;  %v3772_v1 = vpack.c.bf16 %v2915_v25, %v2914_v34  ;;  %v2918_v55 = vld [vmem:[%s6057_s1 + $0x220] sm:$0xff] }
 0x423   :  { %v1660_v56 = vmax.f32 %v1656_v53, 0.0  ;;  %v1663_v21 = vmax.f32 %v1659_v63, 0.0  ;;  %v2926_v28 = vld [vmem:[%s6057_s1 + $0x260] sm:$0xff] }
 0x424   :  { %3512 = vmatmul.mubr.f32.gmra.mrb[70].mxu1 %v1623_v20  ;;  %v1650_v20 = vadd.f32 %v1646_v48, %v5159_v12  ;;  %v1657_v16 = vadd.f32 %v1653_v45, %v1649_v51  ;;  %3773 = vmatprep.subr.bf16.mxu0 %v3772_v1  ;;  %v2916_v12 = vld [vmem:[%s6057_s1 + $0x210] sm:$0xff]  ;;  %v2921_v45 = vld [vmem:[%s6057_s1 + $0x238] sm:$0xff] }
 0x425   :  { %3514 = vmatprep.mubr.f32.mxu1 %v1640_v39  ;;  %3775 = vmatpush3.bf16.msra.mxu0 %v3772_v1  ;;  %v3784_v2 = vpack.c.bf16 %v2921_v45, %v2920_v14  ;;  %v2924_v48 = vld [vmem:[%s6057_s1 + $0x250] sm:$0xff]  ;;  %v2925_v51 = vld [vmem:[%s6057_s1 + $0x258] sm:$0xff] }
 0x426   :  { %v1658_v46 = vadd.f32 %v1654_v52, %v1650_v20  ;;  %v1661_v62 = vmax.f32 %v1657_v16, 0.0  ;;  %v2923_v52 = vld [vmem:[%s6057_s1 + $0x248] sm:$0xff]  ;;  %v3792_v20 = vpack.c.bf16 %v2925_v51, %v2924_v48 }
 0x427   :  { %v2927_v16 = vld [vmem:[%s6057_s1 + $0x268] sm:$0xff] }
 0x428   :  { %3515 = vmatmul.mubr.f32.gmra.mrb[72].mxu1 %v1641_v30  ;;  %v1662_v39 = vmax.f32 %v1658_v46, 0.0  ;;  %v2917_v30 = vld [vmem:[%s6057_s1 + $0x218] sm:$0xff]  ;;  %v3796_v57 = vpack.c.bf16 %v2927_v16, %v2926_v28 }
 0x429   :  { %3517 = vmatprep.mubr.f32.mxu1 %v1642_v41  ;;  %v3776_v59 = vpack.c.bf16 %v2917_v30, %v2916_v12  ;;  %v2919_v41 = vld [vmem:[%s6057_s1 + $0x228] sm:$0xff]  ;;  %v2929_v46 = vld [vmem:[%s6057_s1 + $0x278] sm:$0xff] }
 0x42a   :  { %v3780_v29 = vpack.c.bf16 %v2919_v41, %v2918_v55 }
 0x42b   :  { %3777 = vmatprep.subr.bf16.mxu0 %v3776_v59 }
 0x42c   :  { %3518 = vmatmul.mubr.f32.gmra.mrb[74].mxu1 %v1643_v43  ;;  %3779 = vmatpush3.bf16.msra.mxu0 %v3776_v59  ;;  %v2922_v43 = vld [vmem:[%s6057_s1 + $0x240] sm:$0xff] }
 0x42d   :  { %3520 = vmatprep.mubr.f32.mxu1 %v1660_v56  ;;  %3781 = vmatprep.subr.bf16.mxu0 %v3780_v29  ;;  %v3788_v53 = vpack.c.bf16 %v2923_v52, %v2922_v43  ;;  %v2928_v56 = vld [vmem:[%s6057_s1 + $0x270] sm:$0xff] }
 0x42e   :  { %v3800_v63 = vpack.c.bf16 %v2929_v46, %v2928_v56 }
 0x430   :  { %3521 = vmatmul.mubr.f32.gmra.mrb[76].mxu1 %v1661_v62  ;;  %3783 = vmatpush3.bf16.msra.mxu0 %v3780_v29  ;;  %v5337_v62 = vrot.slane %v4915_v42, %v6209_v44 }
 0x431   :  { %3523 = vmatprep.mubr.f32.mxu1 %v1662_v39  ;;  %3785 = vmatprep.subr.bf16.mxu0 %v3784_v2 }
 0x434   :  { %3524 = vmatmul.mubr.f32.gmra.mrb[78].mxu1 %v1663_v21  ;;  %3787 = vmatpush3.bf16.msra.mxu0 %v3784_v2 }
 0x435   :  { %3789 = vmatprep.subr.bf16.mxu0 %v3788_v53 }
 0x438   :  { %3791 = vmatpush3.bf16.msra.mxu0 %v3788_v53 }
 0x439   :  { %3793 = vmatprep.subr.bf16.mxu0 %v3792_v20 }
 0x43c   :  { %3795 = vmatpush3.bf16.msra.mxu0 %v3792_v20 }
 0x43d   :  { %3797 = vmatprep.subr.bf16.mxu0 %v3796_v57 }
 0x440   :  { %3799 = vmatpush3.bf16.msra.mxu0 %v3796_v57 }
 0x441   :  { %3801 = vmatprep.subr.bf16.mxu0 %v3800_v63 }
 0x444   :  { %3803 = vmatpush3.bf16.msra.mxu0 %v3800_v63 }
 0x4cb   :  { %v3480_v39 = vpop.f32.mrb[48].mxu1 }
 0x4cc   :  { %v5340_v21 = vadd.f32 %v3480_v39, %v5337_v62  ;;  %v1751_v34 = vpop.f32.mrb[49].mxu1 }
 0x4cd   :  { %v5343_v25 = vadd.f32 %v1751_v34, %v5337_v62 }
 0x4ce   :  { %v1948_v1 = vmul.f32 %v5340_v21, %v5340_v21 }
 0x4cf   :  { %v1947_v42 = vmul.f32 %v5343_v25, %v5343_v25  ;;  %v3483_v12 = vpop.f32.mrb[50].mxu1  ;;  %v1910_v59 = vadd.f32 %v5340_v21, %v5343_v25 }
 0x4d0   :  { %v1761_v30 = vpop.f32.mrb[51].mxu1  ;;  %v5352_v55 = vadd.f32 %v3483_v12, %v5337_v62 }
 0x4d1   :  { %v5355_v41 = vadd.f32 %v1761_v30, %v5337_v62  ;;  %v1979_v29 = vadd.f32 %v1948_v1, %v1947_v42 }
 0x4d2   :  { %v1950_v53 = vmul.f32 %v5352_v55, %v5352_v55 }
 0x4d3   :  { %v1911_v14 = vadd.f32 %v1910_v59, %v5355_v41  ;;  %v1949_v45 = vmul.f32 %v5355_v41, %v5355_v41  ;;  %v3486_v43 = vpop.f32.mrb[52].mxu1 }
 0x4d4   :  { %v5361_v2 = vadd.f32 %v3486_v43, %v5337_v62  ;;  %v1771_v52 = vpop.f32.mrb[53].mxu1 }
 0x4d5   :  { %v1980_v48 = vadd.f32 %v1979_v29, %v1949_v45  ;;  %v5366_v51 = vadd.f32 %v1771_v52, %v5337_v62  ;;  %v1912_v20 = vadd.f32 %v1911_v14, %v5352_v55 }
 0x4d6   :  { %v1952_v46 = vmul.f32 %v5361_v2, %v5361_v2 }
 0x4d7   :  { %v1913_v28 = vadd.f32 %v1912_v20, %v5366_v51  ;;  %v1951_v16 = vmul.f32 %v5366_v51, %v5366_v51  ;;  %v1981_v57 = vadd.f32 %v1980_v48, %v1950_v53  ;;  %v3489_v56 = vpop.f32.mrb[54].mxu1 }
 0x4d8   :  { %v1781_v63 = vpop.f32.mrb[55].mxu1  ;;  %v5375_v34 = vadd.f32 %v3489_v56, %v5337_v62 }
 0x4d9   :  { %v1982_v39 = vadd.f32 %v1981_v57, %v1951_v16  ;;  %v5378_v1 = vadd.f32 %v1781_v63, %v5337_v62  ;;  %v1914_v42 = vadd.f32 %v1913_v28, %v5361_v2 }
 0x4da   :  { %v1954_v43 = vmul.f32 %v5375_v34, %v5375_v34 }
 0x4db   :  { %v1915_v12 = vadd.f32 %v1914_v42, %v5378_v1  ;;  %v1953_v30 = vmul.f32 %v5378_v1, %v5378_v1  ;;  %v1983_v59 = vadd.f32 %v1982_v39, %v1952_v46  ;;  %v3492_v29 = vpop.f32.mrb[56].mxu1 }
 0x4dc   :  { %v5385_v14 = vadd.f32 %v3492_v29, %v5337_v62  ;;  %v1791_v45 = vpop.f32.mrb[57].mxu1 }
 0x4dd   :  { %v1984_v52 = vadd.f32 %v1983_v59, %v1953_v30  ;;  %v5390_v53 = vadd.f32 %v1791_v45, %v5337_v62  ;;  %v1916_v48 = vadd.f32 %v1915_v12, %v5375_v34 }
 0x4de   :  { %v1956_v56 = vmul.f32 %v5385_v14, %v5385_v14 }
 0x4df   :  { %v1917_v20 = vadd.f32 %v1916_v48, %v5390_v53  ;;  %v1955_v28 = vmul.f32 %v5390_v53, %v5390_v53  ;;  %v1985_v16 = vadd.f32 %v1984_v52, %v1954_v43  ;;  %v3495_v57 = vpop.f32.mrb[58].mxu1 }
 0x4e0   :  { %v1801_v46 = vpop.f32.mrb[59].mxu1  ;;  %v5399_v39 = vadd.f32 %v3495_v57, %v5337_v62 }
 0x4e1   :  { %v1986_v63 = vadd.f32 %v1985_v16, %v1955_v28  ;;  %v5402_v42 = vadd.f32 %v1801_v46, %v5337_v62  ;;  %v1918_v12 = vadd.f32 %v1917_v20, %v5385_v14 }
 0x4e2   :  { %v1958_v48 = vmul.f32 %v5399_v39, %v5399_v39 }
 0x4e3   :  { %v1919_v30 = vadd.f32 %v1918_v12, %v5402_v42  ;;  %v1957_v59 = vmul.f32 %v5402_v42, %v5402_v42  ;;  %v1987_v29 = vadd.f32 %v1986_v63, %v1956_v56  ;;  %v3498_v45 = vpop.f32.mrb[60].mxu1 }
 0x4e4   :  { %v5409_v43 = vadd.f32 %v3498_v45, %v5337_v62  ;;  %v1811_v52 = vpop.f32.mrb[61].mxu1 }
 0x4e5   :  { %v1988_v28 = vadd.f32 %v1987_v29, %v1957_v59  ;;  %v5414_v16 = vadd.f32 %v1811_v52, %v5337_v62  ;;  %v1920_v20 = vadd.f32 %v1919_v30, %v5399_v39 }
 0x4e6   :  { %v1960_v12 = vmul.f32 %v5409_v43, %v5409_v43 }
 0x4e7   :  { %v1921_v57 = vadd.f32 %v1920_v20, %v5414_v16  ;;  %v1959_v46 = vmul.f32 %v5414_v16, %v5414_v16  ;;  %v1989_v56 = vadd.f32 %v1988_v28, %v1958_v48  ;;  %v3501_v63 = vpop.f32.mrb[62].mxu1 }
 0x4e8   :  { %v1821_v45 = vpop.f32.mrb[63].mxu1  ;;  %v5423_v4 = vadd.f32 %v3501_v63, %v5337_v62 }
 0x4e9   :  { %v1990_v44 = vadd.f32 %v1989_v56, %v1959_v46  ;;  %v5426_v59 = vadd.f32 %v1821_v45, %v5337_v62  ;;  %v1922_v30 = vadd.f32 %v1921_v57, %v5409_v43 }
 0x4ea   :  { %v1962_v46 = vmul.f32 %v5423_v4, %v5423_v4 }
 0x4eb   :  { %v1923_v29 = vadd.f32 %v1922_v30, %v5426_v59  ;;  %v1961_v52 = vmul.f32 %v5426_v59, %v5426_v59  ;;  %v1991_v48 = vadd.f32 %v1990_v44, %v1960_v12  ;;  %v3504_v28 = vpop.f32.mrb[64].mxu1 }
 0x4ec   :  { %v5433_v20 = vadd.f32 %v3504_v28, %v5337_v62  ;;  %v1831_v61 = vpop.f32.mrb[65].mxu1 }
 0x4ed   :  { %v1992_v56 = vadd.f32 %v1991_v48, %v1961_v52  ;;  %v5438_v63 = vadd.f32 %v1831_v61, %v5337_v62  ;;  %v1924_v57 = vadd.f32 %v1923_v29, %v5423_v4 }
 0x4ee   :  { %v1964_v28 = vmul.f32 %v5433_v20, %v5433_v20 }
 0x4ef   :  { %v1925_v45 = vadd.f32 %v1924_v57, %v5438_v63  ;;  %v1963_v30 = vmul.f32 %v5438_v63, %v5438_v63  ;;  %v1993_v44 = vadd.f32 %v1992_v56, %v1962_v46  ;;  %v3507_v12 = vpop.f32.mrb[66].mxu1 }
 0x4f0   :  { %v1841_v9 = vpop.f32.mrb[67].mxu1  ;;  %v5447_v24 = vadd.f32 %v3507_v12, %v5337_v62 }
 0x4f1   :  { %v1994_v7 = vadd.f32 %v1993_v44, %v1963_v30  ;;  %v5450_v61 = vadd.f32 %v1841_v9, %v5337_v62  ;;  %v1926_v29 = vadd.f32 %v1925_v45, %v5433_v20 }
 0x4f2   :  { %v1966_v30 = vmul.f32 %v5447_v24, %v5447_v24 }
 0x4f3   :  { %v1927_v52 = vadd.f32 %v1926_v29, %v5450_v61  ;;  %v1965_v48 = vmul.f32 %v5450_v61, %v5450_v61  ;;  %v1995_v46 = vadd.f32 %v1994_v7, %v1964_v28  ;;  %v3510_v56 = vpop.f32.mrb[68].mxu1 }
 0x4f4   :  { %v5457_v57 = vadd.f32 %v3510_v56, %v5337_v62  ;;  %v1851_v54 = vpop.f32.mrb[69].mxu1 }
 0x4f5   :  { %v1996_v44 = vadd.f32 %v1995_v46, %v1965_v48  ;;  %v5462_v9 = vadd.f32 %v1851_v54, %v5337_v62  ;;  %v1928_v45 = vadd.f32 %v1927_v52, %v5447_v24 }
 0x4f6   :  { %v1968_v56 = vmul.f32 %v5457_v57, %v5457_v57 }
 0x4f7   :  { %v1929_v12 = vadd.f32 %v1928_v45, %v5462_v9  ;;  %v1967_v29 = vmul.f32 %v5462_v9, %v5462_v9  ;;  %v1997_v7 = vadd.f32 %v1996_v44, %v1966_v30  ;;  %v3513_v28 = vpop.f32.mrb[70].mxu1 }
 0x4f8   :  { %v1861_v5 = vpop.f32.mrb[71].mxu1  ;;  %v5471_v36 = vadd.f32 %v3513_v28, %v5337_v62 }
 0x4f9   :  { %v1998_v33 = vadd.f32 %v1997_v7, %v1967_v29  ;;  %v5474_v54 = vadd.f32 %v1861_v5, %v5337_v62  ;;  %v1930_v52 = vadd.f32 %v1929_v12, %v5457_v57 }
 0x4fa   :  { %v1970_v29 = vmul.f32 %v5471_v36, %v5471_v36 }
 0x4fb   :  { %v1931_v48 = vadd.f32 %v1930_v52, %v5474_v54  ;;  %v1969_v46 = vmul.f32 %v5474_v54, %v5474_v54  ;;  %v1999_v30 = vadd.f32 %v1998_v33, %v1968_v56  ;;  %v3516_v44 = vpop.f32.mrb[72].mxu1 }
 0x4fc   :  { %v5481_v45 = vadd.f32 %v3516_v44, %v5337_v62  ;;  %v1871_v47 = vpop.f32.mrb[73].mxu1 }
 0x4fd   :  { %v2000_v7 = vadd.f32 %v1999_v30, %v1969_v46  ;;  %v5486_v5 = vadd.f32 %v1871_v47, %v5337_v62  ;;  %v1932_v12 = vadd.f32 %v1931_v48, %v5471_v36 }
 0x4fe   :  { %v1972_v44 = vmul.f32 %v5481_v45, %v5481_v45 }
 0x4ff   :  { %v1933_v28 = vadd.f32 %v1932_v12, %v5486_v5  ;;  %v1971_v52 = vmul.f32 %v5486_v5, %v5486_v5  ;;  %v2001_v33 = vadd.f32 %v2000_v7, %v1970_v29  ;;  %v3519_v56 = vpop.f32.mrb[74].mxu1 }
 0x500   :  { %v1881_v10 = vpop.f32.mrb[75].mxu1  ;;  %v5495_v13 = vadd.f32 %v3519_v56, %v5337_v62 }
 0x501   :  { %v2002_v22 = vadd.f32 %v2001_v33, %v1971_v52  ;;  %v5498_v47 = vadd.f32 %v1881_v10, %v5337_v62  ;;  %v1934_v48 = vadd.f32 %v1933_v28, %v5481_v45 }
 0x502   :  { %v1974_v52 = vmul.f32 %v5495_v13, %v5495_v13 }
 0x503   :  { %v1935_v46 = vadd.f32 %v1934_v48, %v5498_v47  ;;  %v1973_v30 = vmul.f32 %v5498_v47, %v5498_v47  ;;  %v2003_v29 = vadd.f32 %v2002_v22, %v1972_v44  ;;  %v3522_v7 = vpop.f32.mrb[76].mxu1 }
 0x504   :  { %v5505_v12 = vadd.f32 %v3522_v7, %v5337_v62  ;;  %v1891_v6 = vpop.f32.mrb[77].mxu1 }
 0x505   :  { %v2004_v33 = vadd.f32 %v2003_v29, %v1973_v30  ;;  %v5510_v10 = vadd.f32 %v1891_v6, %v5337_v62  ;;  %v1936_v28 = vadd.f32 %v1935_v46, %v5495_v13 }
 0x506   :  { %v1976_v7 = vmul.f32 %v5505_v12, %v5505_v12 }
 0x507   :  { %v1937_v56 = vadd.f32 %v1936_v28, %v5510_v10  ;;  %v1975_v48 = vmul.f32 %v5510_v10, %v5510_v10  ;;  %v2005_v22 = vadd.f32 %v2004_v33, %v1974_v52  ;;  %v3525_v44 = vpop.f32.mrb[78].mxu1 }
 0x508   :  { %v1901_v35 = vpop.f32.mrb[79].mxu1  ;;  %v5519_v40 = vadd.f32 %v3525_v44, %v5337_v62 }
 0x509   :  { %v2006_v0 = vadd.f32 %v2005_v22, %v1975_v48  ;;  %v1902_v6 = vadd.f32 %v1901_v35, %v5337_v62  ;;  %v1938_v30 = vadd.f32 %v1937_v56, %v5505_v12 }
 0x50a   :  { %v1978_v32 = vmul.f32 %v5519_v40, %v5519_v40 }
 0x50b   :  { %v1939_v46 = vadd.f32 %v1938_v30, %v1902_v6  ;;  %v1977_v29 = vmul.f32 %v1902_v6, %v1902_v6  ;;  %v2007_v28 = vadd.f32 %v2006_v0, %v1976_v7 }
 0x50d   :  { %v1940_v52 = vadd.f32 %v1939_v46, %v5519_v40  ;;  %v2008_v33 = vadd.f32 %v2007_v28, %v1977_v29 }
 0x50f   :  { %v1941_v3 = vrot.slane %v1940_v52, 4  ;;  %v2009_v50 = vadd.f32 %v2008_v33, %v1978_v32 }
 0x511   :  { %v1942_v58 = vadd.f32 %v1941_v3, %v1940_v52  ;;  %v2010_v48 = vrot.slane %v2009_v50, 4  ;;  %v3879_v3 = vld [vmem:[%s6059_s2 + $0x8] sm:$0xff] }
 0x513   :  { %v1943_v22 = vrot.slane %v1942_v58, 2  ;;  %v2011_v44 = vadd.f32 %v2010_v48, %v2009_v50 }
 0x515   :  { %v1944_v23 = vadd.f32 %v1943_v22, %v1942_v58  ;;  %v2012_v60 = vrot.slane %v2011_v44, 2  ;;  %v6210_v58 = vsub.s32 5, %v4092_v17 }
 0x517   :  { %v1945_v35 = vrot.slane %v1944_v23, 1  ;;  %v2013_v62 = vadd.f32 %v2012_v60, %v2011_v44  ;;  %v6211_v60 = vsub.s32 7, %v4092_v17 }
 0x519   :  { %v1946_v56 = vadd.f32 %v1945_v35, %v1944_v23  ;;  %v2014_v30 = vrot.slane %v2013_v62, 1  ;;  %v5533_v23 = vrot.slane %v3879_v3, %v6211_v60 }
 0x51b   :  { %v2015_v19 = vadd.f32 %v2014_v30, %v2013_v62  ;;  %v2016_v0 = vmul.f32 0.00390625, %v1946_v56 }
 0x51d   :  { %v2017_v7 = vmul.f32 0.00390625, %v2015_v19  ;;  %v2018_v11 = vmul.f32 %v2016_v0, %v2016_v0 }
 0x51f   :  { %v2019_v27 = vsub.f32 %v2017_v7, %v2018_v11 }
 0x521   :  { %v2020_v38 = vadd.f32 1e-05, %v2019_v27 }
 0x523   :  { %3874 = vrsqrt.f32 %v2020_v38 }
 0x52d   :  { %v3875_v46 = vpop.eup %3874 }
 0x52e   :  { %v2022_v32 = vmul.f32 %v3879_v3, %v3875_v46 }
 0x530   :  { %v2023_v50 = vmul.f32 %v2022_v32, %v2016_v0  ;;  %v2031_v29 = vrot.slane %v2022_v32, %v6210_v58 }
 0x532   :  { %v2025_v28 = vrot.slane %v2023_v50, 7  ;;  %v5535_v19 = vmul.f32 %v2031_v29, %v1902_v6  ;;  %v2040_v27 = vmul.f32 %v2031_v29, %v5343_v25  ;;  %v2041_v38 = vmul.f32 %v2031_v29, %v5340_v21 }
 0x533   :  { %v2042_v11 = vmul.f32 %v2031_v29, %v5355_v41  ;;  %v2043_v52 = vmul.f32 %v2031_v29, %v5352_v55  ;;  %v2052_v33 = vmul.f32 %v2031_v29, %v5366_v51  ;;  %v2053_v48 = vmul.f32 %v2031_v29, %v5361_v2 }
 0x534   :  { %v2027_v22 = vsub.f32 %v3879_v3, %v2025_v28  ;;  %v2054_v44 = vmul.f32 %v2031_v29, %v5378_v1  ;;  %v2055_v35 = vmul.f32 %v2031_v29, %v5375_v34  ;;  %v2072_v6 = vmul.f32 %v2031_v29, %v5390_v53 }
 0x535   :  { %v2073_v62 = vmul.f32 %v2031_v29, %v5385_v14  ;;  %v2074_v25 = vmul.f32 %v2031_v29, %v5402_v42  ;;  %v2075_v21 = vmul.f32 %v2031_v29, %v5399_v39  ;;  %v2092_v41 = vmul.f32 %v2031_v29, %v5414_v16 }
 0x536   :  { %v6212_v55 = vsub.s32 6, %v4092_v17  ;;  %v2093_v2 = vmul.f32 %v2031_v29, %v5409_v43  ;;  %v2094_v1 = vmul.f32 %v2031_v29, %v5426_v59  ;;  %v2095_v34 = vmul.f32 %v2031_v29, %v5423_v4 }
 0x537   :  { %v2112_v53 = vmul.f32 %v2031_v29, %v5438_v63  ;;  %v2113_v14 = vmul.f32 %v2031_v29, %v5433_v20  ;;  %v2114_v42 = vmul.f32 %v2031_v29, %v5450_v61  ;;  %v2115_v39 = vmul.f32 %v2031_v29, %v5447_v24 }
 0x538   :  { %v5552_v51 = vrot.slane %v2027_v22, %v6212_v55  ;;  %v2132_v16 = vmul.f32 %v2031_v29, %v5462_v9  ;;  %v2133_v17 = vmul.f32 %v2031_v29, %v5457_v57  ;;  %v2134_v56 = vmul.f32 %v2031_v29, %v5474_v54 }
 0x539   :  { %v2135_v43 = vmul.f32 %v2031_v29, %v5471_v36  ;;  %v2152_v59 = vmul.f32 %v2031_v29, %v5486_v5  ;;  %v2153_v4 = vmul.f32 %v2031_v29, %v5481_v45  ;;  %v2154_v63 = vmul.f32 %v2031_v29, %v5498_v47 }
 0x53a   :  { %v2155_v20 = vmul.f32 %v2031_v29, %v5495_v13  ;;  %v2172_v61 = vmul.f32 %v2031_v29, %v5510_v10  ;;  %v2173_v24 = vmul.f32 %v2031_v29, %v5505_v12  ;;  %v5572_v9 = vmul.f32 %v2031_v29, %v5519_v40 }
 0x53b   :  { %v2045_v57 = vadd.f32 %v2041_v38, %v5552_v51  ;;  %v2044_v54 = vadd.f32 %v2040_v27, %v5552_v51  ;;  %v2046_v36 = vadd.f32 %v2042_v11, %v5552_v51  ;;  %v2047_v5 = vadd.f32 %v2043_v52, %v5552_v51 }
 0x53c   :  { %v2056_v45 = vadd.f32 %v2052_v33, %v5552_v51  ;;  %v2057_v13 = vadd.f32 %v2053_v48, %v5552_v51  ;;  %v2058_v10 = vadd.f32 %v2054_v44, %v5552_v51  ;;  %v2059_v12 = vadd.f32 %v2055_v35, %v5552_v51 }
 0x53d   :  { %v2049_v47 = vmax.f32 %v2045_v57, 0.0  ;;  %v2048_v30 = vmax.f32 %v2044_v54, 0.0  ;;  %v2050_v40 = vmax.f32 %v2046_v36, 0.0  ;;  %v2051_v0 = vmax.f32 %v2047_v5, 0.0 }
 0x53e   :  { %v2076_v7 = vadd.f32 %v2072_v6, %v5552_v51  ;;  %v2077_v3 = vadd.f32 %v2073_v62, %v5552_v51  ;;  %v2078_v32 = vadd.f32 %v2074_v25, %v5552_v51  ;;  %v2079_v50 = vadd.f32 %v2075_v21, %v5552_v51 }
 0x53f   :  { %v2061_v46 = vmul.f32 %v2049_v47, %v5533_v23  ;;  %v2060_v58 = vmul.f32 %v2048_v30, %v5533_v23  ;;  %3558 = vmatprep.mubr.f32.mxu0 %v2048_v30  ;;  %v2062_v29 = vmul.f32 %v2050_v40, %v5533_v23  ;;  %v2063_v60 = vmul.f32 %v2051_v0, %v5533_v23 }
 0x540   :  { %v2096_v28 = vadd.f32 %v2092_v41, %v5552_v51  ;;  %3559 = vmatmul.mubr.f32.vlgmr.msra.gmra.mrb[48].mxu0 %v2049_v47  ;;  %v2097_v38 = vadd.f32 %v2093_v2, %v5552_v51  ;;  %v2098_v11 = vadd.f32 %v2094_v1, %v5552_v51  ;;  %v2099_v52 = vadd.f32 %v2095_v34, %v5552_v51 }
 0x541   :  { %v2065_v27 = vadd.f32 %v2061_v46, %v2057_v13  ;;  %3561 = vmatprep.mubr.f32.mxu0 %v2050_v40  ;;  %v2064_v33 = vadd.f32 %v2060_v58, %v2056_v45  ;;  %v2066_v48 = vadd.f32 %v2062_v29, %v2058_v10  ;;  %v2067_v22 = vadd.f32 %v2063_v60, %v2059_v12 }
 0x542   :  { %v2116_v44 = vadd.f32 %v2112_v53, %v5552_v51  ;;  %v2117_v6 = vadd.f32 %v2113_v14, %v5552_v51  ;;  %v2118_v62 = vadd.f32 %v2114_v42, %v5552_v51  ;;  %v2119_v25 = vadd.f32 %v2115_v39, %v5552_v51 }
 0x543   :  { %v2069_v35 = vmax.f32 %v2065_v27, 0.0  ;;  %v2068_v21 = vmax.f32 %v2064_v33, 0.0  ;;  %v2070_v41 = vmax.f32 %v2066_v48, 0.0  ;;  %v2071_v55 = vmax.f32 %v2067_v22, 0.0 }
 0x544   :  { %v5599_v2 = vadd.f32 %v2132_v16, %v5552_v51  ;;  %3562 = vmatmul.mubr.f32.gmra.mrb[50].mxu0 %v2051_v0  ;;  %v2137_v34 = vadd.f32 %v2133_v17, %v5552_v51  ;;  %v2138_v53 = vadd.f32 %v2134_v56, %v5552_v51  ;;  %v2139_v57 = vadd.f32 %v2135_v43, %v5552_v51 }
 0x545   :  { %v2081_v1 = vmul.f32 %v2069_v35, %v5533_v23  ;;  %v2080_v14 = vmul.f32 %v2068_v21, %v5533_v23  ;;  %3564 = vmatprep.mubr.f32.mxu0 %v2068_v21  ;;  %v2082_v42 = vmul.f32 %v2070_v41, %v5533_v23  ;;  %v2083_v39 = vmul.f32 %v2071_v55, %v5533_v23 }
 0x546   :  { %v5609_v54 = vadd.f32 %v2152_v59, %v5552_v51  ;;  %v5612_v36 = vadd.f32 %v2153_v4, %v5552_v51  ;;  %v5615_v17 = vadd.f32 %v2154_v63, %v5552_v51  ;;  %v5618_v56 = vadd.f32 %v2155_v20, %v5552_v51 }
 0x547   :  { %v2085_v16 = vadd.f32 %v2081_v1, %v2077_v3  ;;  %v2084_v43 = vadd.f32 %v2080_v14, %v2076_v7  ;;  %v2086_v5 = vadd.f32 %v2082_v42, %v2078_v32  ;;  %v2087_v45 = vadd.f32 %v2083_v39, %v2079_v50 }
 0x548   :  { %v5621_v47 = vadd.f32 %v2172_v61, %v5552_v51  ;;  %3565 = vmatmul.mubr.f32.gmra.mrb[52].mxu0 %v2069_v35  ;;  %v5624_v59 = vadd.f32 %v2173_v24, %v5552_v51  ;;  %v5628_v4 = vadd.f32 %v5535_v19, %v5552_v51  ;;  %v5632_v63 = vadd.f32 %v5572_v9, %v5552_v51 }
 0x549   :  { %v2089_v13 = vmax.f32 %v2085_v16, 0.0  ;;  %3567 = vmatprep.mubr.f32.mxu0 %v2070_v41  ;;  %v2088_v20 = vmax.f32 %v2084_v43, 0.0  ;;  %v2090_v10 = vmax.f32 %v2086_v5, 0.0  ;;  %v2091_v12 = vmax.f32 %v2087_v45, 0.0 }
 0x54b   :  { %v2101_v61 = vmul.f32 %v2089_v13, %v5533_v23  ;;  %v2100_v30 = vmul.f32 %v2088_v20, %v5533_v23  ;;  %v2102_v40 = vmul.f32 %v2090_v10, %v5533_v23  ;;  %v2103_v24 = vmul.f32 %v2091_v12, %v5533_v23 }
 0x54c   :  { %3568 = vmatmul.mubr.f32.gmra.mrb[54].mxu0 %v2071_v55 }
 0x54d   :  { %v2105_v0 = vadd.f32 %v2101_v61, %v2097_v38  ;;  %3570 = vmatprep.mubr.f32.mxu0 %v2088_v20  ;;  %v2104_v19 = vadd.f32 %v2100_v30, %v2096_v28  ;;  %v2106_v7 = vadd.f32 %v2102_v40, %v2098_v11  ;;  %v2107_v46 = vadd.f32 %v2103_v24, %v2099_v52 }
 0x54f   :  { %v2109_v51 = vmax.f32 %v2105_v0, 0.0  ;;  %v2108_v9 = vmax.f32 %v2104_v19, 0.0  ;;  %v2110_v3 = vmax.f32 %v2106_v7, 0.0  ;;  %v2111_v32 = vmax.f32 %v2107_v46, 0.0 }
 0x550   :  { %3571 = vmatmul.mubr.f32.gmra.mrb[56].mxu0 %v2089_v13 }
 0x551   :  { %v2121_v50 = vmul.f32 %v2109_v51, %v5533_v23  ;;  %3573 = vmatprep.mubr.f32.mxu0 %v2090_v10  ;;  %v2120_v58 = vmul.f32 %v2108_v9, %v5533_v23  ;;  %v2122_v29 = vmul.f32 %v2110_v3, %v5533_v23  ;;  %v2123_v60 = vmul.f32 %v2111_v32, %v5533_v23 }
 0x553   :  { %v2125_v27 = vadd.f32 %v2121_v50, %v2117_v6  ;;  %v2124_v38 = vadd.f32 %v2120_v58, %v2116_v44  ;;  %v2126_v33 = vadd.f32 %v2122_v29, %v2118_v62  ;;  %v2127_v28 = vadd.f32 %v2123_v60, %v2119_v25 }
 0x554   :  { %3574 = vmatmul.mubr.f32.gmra.mrb[58].mxu0 %v2091_v12 }
 0x555   :  { %v2129_v11 = vmax.f32 %v2125_v27, 0.0  ;;  %3576 = vmatprep.mubr.f32.mxu0 %v2108_v9  ;;  %v2128_v52 = vmax.f32 %v2124_v38, 0.0  ;;  %v2130_v48 = vmax.f32 %v2126_v33, 0.0  ;;  %v2131_v22 = vmax.f32 %v2127_v28, 0.0 }
 0x557   :  { %v2141_v35 = vmul.f32 %v2129_v11, %v5533_v23  ;;  %v2140_v21 = vmul.f32 %v2128_v52, %v5533_v23  ;;  %v2142_v41 = vmul.f32 %v2130_v48, %v5533_v23  ;;  %v2143_v55 = vmul.f32 %v2131_v22, %v5533_v23 }
 0x558   :  { %3577 = vmatmul.mubr.f32.gmra.mrb[60].mxu0 %v2109_v51 }
 0x559   :  { %v2145_v1 = vadd.f32 %v2141_v35, %v2137_v34  ;;  %3579 = vmatprep.mubr.f32.mxu0 %v2110_v3  ;;  %v2144_v44 = vadd.f32 %v2140_v21, %v5599_v2  ;;  %v2146_v6 = vadd.f32 %v2142_v41, %v2138_v53  ;;  %v2147_v62 = vadd.f32 %v2143_v55, %v2139_v57 }
 0x55b   :  { %v2149_v25 = vmax.f32 %v2145_v1, 0.0  ;;  %v2148_v14 = vmax.f32 %v2144_v44, 0.0  ;;  %v2150_v42 = vmax.f32 %v2146_v6, 0.0  ;;  %v2151_v39 = vmax.f32 %v2147_v62, 0.0 }
 0x55c   :  { %3580 = vmatmul.mubr.f32.gmra.mrb[62].mxu0 %v2111_v32 }
 0x55d   :  { %v2161_v16 = vmul.f32 %v2149_v25, %v5533_v23  ;;  %3582 = vmatprep.mubr.f32.mxu0 %v2128_v52  ;;  %v2160_v43 = vmul.f32 %v2148_v14, %v5533_v23  ;;  %v2162_v5 = vmul.f32 %v2150_v42, %v5533_v23  ;;  %v2163_v45 = vmul.f32 %v2151_v39, %v5533_v23 }
 0x55f   :  { %v2165_v34 = vadd.f32 %v2161_v16, %v5612_v36  ;;  %v2164_v2 = vadd.f32 %v2160_v43, %v5609_v54  ;;  %v2166_v53 = vadd.f32 %v2162_v5, %v5615_v17  ;;  %v2167_v57 = vadd.f32 %v2163_v45, %v5618_v56  ;;  %v2931_v16 = vld [vmem:[%s6057_s1 + $0x288] sm:$0xff] }
 0x560   :  { %3583 = vmatmul.mubr.f32.gmra.mrb[64].mxu0 %v2129_v11  ;;  %v6214_v5 = vld [vmem:[#allocation3_spill] sm:$0xff] }
 0x561   :  { %v2169_v13 = vmax.f32 %v2165_v34, 0.0  ;;  %3585 = vmatprep.mubr.f32.mxu0 %v2130_v48  ;;  %v2168_v20 = vmax.f32 %v2164_v2, 0.0  ;;  %v2170_v10 = vmax.f32 %v2166_v53, 0.0  ;;  %v2171_v12 = vmax.f32 %v2167_v57, 0.0 }
 0x563   :  { %v2181_v61 = vmul.f32 %v2169_v13, %v5533_v23  ;;  %v2180_v30 = vmul.f32 %v2168_v20, %v5533_v23  ;;  %v2182_v40 = vmul.f32 %v2170_v10, %v5533_v23  ;;  %v2183_v36 = vmul.f32 %v2171_v12, %v5533_v23 }
 0x564   :  { %3586 = vmatmul.mubr.f32.gmra.mrb[66].mxu0 %v2131_v22 }
 0x565   :  { %v2185_v54 = vadd.f32 %v2181_v61, %v5624_v59  ;;  %3588 = vmatprep.mubr.f32.mxu0 %v2148_v14  ;;  %v2184_v17 = vadd.f32 %v2180_v30, %v5621_v47  ;;  %v2186_v56 = vadd.f32 %v2182_v40, %v5628_v4  ;;  %v2187_v24 = vadd.f32 %v2183_v36, %v5632_v63  ;;  %v5666_v47 = vld [vmem:[%s6059_s2 + $0x10] sm:$0x1f] }
 0x566   :  { %v5670_v4 = vrot.slane %v5666_v47, %v4095_v18  ;;  %v6215_v40 = vld [vmem:[#allocation4_spill] sm:$0xff] }
 0x567   :  { %v2188_v0 = vmax.f32 %v2184_v17, 0.0  ;;  %v2189_v23 = vmax.f32 %v2185_v54, 0.0  ;;  %v2190_v19 = vmax.f32 %v2186_v56, 0.0  ;;  %v2191_v59 = vmax.f32 %v2187_v24, 0.0  ;;  %v2932_v54 = vld [vmem:[%s6057_s1 + $0x290] sm:$0xff]  ;;  %v2933_v17 = vld [vmem:[%s6057_s1 + $0x298] sm:$0xff] }
 0x568   :  { %3589 = vmatmul.mubr.f32.gmra.mrb[68].mxu0 %v2149_v25  ;;  %v6216_v24 = vld [vmem:[#allocation5_spill] sm:$0xff] }
 0x569   :  { %3591 = vmatprep.mubr.f32.mxu0 %v2150_v42  ;;  %v6213_v42 = vld [vmem:[#allocation2_spill] sm:$0xff] }
 0x56c   :  { %3592 = vmatmul.mubr.f32.gmra.mrb[70].mxu0 %v2151_v39  ;;  %v2930_v39 = vld [vmem:[%s6057_s1 + $0x280] sm:$0xff] }
 0x56d   :  { %3594 = vmatprep.mubr.f32.mxu0 %v2168_v20  ;;  %v3804_v53 = vpack.c.bf16 %v2931_v16, %v2930_v39 }
 0x56f   :  { %3805 = vmatprep.subr.bf16.mxu0 %v3804_v53  ;;  %3852 = vmatprep.subr.bf16.mxu1 %v3804_v53 }
 0x570   :  { %3595 = vmatmul.mubr.f32.gmra.mrb[72].mxu0 %v2169_v13  ;;  %3860 = vmatpush3.bf16.msra.mxu1 %v3804_v53 }
 0x571   :  { %3597 = vmatprep.mubr.f32.mxu0 %v2170_v10  ;;  %3807 = vmatpush3.bf16.msra.mxu0 %v3804_v53 }
 0x574   :  { %3598 = vmatmul.mubr.f32.gmra.mrb[74].mxu0 %v2171_v12 }
 0x575   :  { %3600 = vmatprep.mubr.f32.mxu0 %v2188_v0 }
 0x578   :  { %3601 = vmatmul.mubr.f32.gmra.mrb[76].mxu0 %v2189_v23 }
 0x579   :  { %3603 = vmatprep.mubr.f32.mxu0 %v2190_v19 }
 0x57c   :  { %3604 = vmatmul.mubr.f32.gmra.mrb[78].mxu0 %v2191_v59  ;;  %v3808_v59 = vpack.c.bf16 %v2933_v17, %v2932_v54 }
 0x57e   :  { %3809 = vmatprep.subr.bf16.mxu0 %v3808_v59  ;;  %3853 = vmatprep.subr.bf16.mxu1 %v3808_v59 }
 0x57f   :  { %3811 = vmatpush3.bf16.msra.mxu0 %v3808_v59  ;;  %3861 = vmatpush3.bf16.msra.mxu1 %v3808_v59 }
 0x613   :  { %v3560_v63 = vpop.f32.mrb[48].mxu0 }
 0x614   :  { %v2285_v7 = vadd.f32 %v3560_v63, %v5670_v4  ;;  %v2279_v46 = vpop.f32.mrb[49].mxu0 }
 0x615   :  { %v2280_v51 = vadd.f32 %v2279_v46, %v5670_v4 }
 0x616   :  { %v5675_v9 = vadd.f32 %v2285_v7, %v4930_v8 }
 0x617   :  { %v5678_v3 = vadd.f32 %v2280_v51, %v4933_v15  ;;  %v3563_v32 = vpop.f32.mrb[50].mxu0 }
 0x618   :  { %v2295_v50 = vadd.f32 %v3563_v32, %v5670_v4  ;;  %v2289_v58 = vpop.f32.mrb[51].mxu0  ;;  %v2508_v18 = vmul.f32 %v5675_v9, %v5675_v9 }
 0x619   :  { %v2507_v29 = vmul.f32 %v5678_v3, %v5678_v3  ;;  %v2290_v60 = vadd.f32 %v2289_v58, %v5670_v4  ;;  %v2470_v27 = vadd.f32 %v5675_v9, %v5678_v3 }
 0x61a   :  { %v5689_v8 = vadd.f32 %v2295_v50, %v4944_v37 }
 0x61b   :  { %v5692_v15 = vadd.f32 %v2290_v60, %v4947_v26  ;;  %v3566_v38 = vpop.f32.mrb[52].mxu0  ;;  %v2539_v11 = vadd.f32 %v2508_v18, %v2507_v29  ;;  %v6217_v18 = vld [vmem:[#allocation6_spill] sm:$0xff] }
 0x61c   :  { %v2305_v33 = vadd.f32 %v3566_v38, %v5670_v4  ;;  %v2299_v28 = vpop.f32.mrb[53].mxu0  ;;  %v2510_v37 = vmul.f32 %v5689_v8, %v5689_v8  ;;  %v2934_v60 = vld [vmem:[%s6057_s1 + $0x2a0] sm:$0xff] }
 0x61d   :  { %v2471_v52 = vadd.f32 %v2470_v27, %v5692_v15  ;;  %v2509_v48 = vmul.f32 %v5692_v15, %v5692_v15  ;;  %v2300_v22 = vadd.f32 %v2299_v28, %v5670_v4  ;;  %v2935_v27 = vld [vmem:[%s6057_s1 + $0x2a8] sm:$0xff] }
 0x61e   :  { %v5700_v35 = vadd.f32 %v2305_v33, %v4955_v31  ;;  %v6218_v33 = vld [vmem:[#allocation7_spill] sm:$0xff] }
 0x61f   :  { %v2540_v26 = vadd.f32 %v2539_v11, %v2509_v48  ;;  %v5705_v21 = vadd.f32 %v2300_v22, %v4960_v49  ;;  %v2472_v41 = vadd.f32 %v2471_v52, %v5689_v8  ;;  %v3569_v55 = vpop.f32.mrb[54].mxu0  ;;  %v3812_v48 = vpack.c.bf16 %v2935_v27, %v2934_v60 }
 0x620   :  { %v2315_v1 = vadd.f32 %v3569_v55, %v5670_v4  ;;  %v2309_v44 = vpop.f32.mrb[55].mxu0  ;;  %v2512_v14 = vmul.f32 %v5700_v35, %v5700_v35 }
 0x621   :  { %v2473_v6 = vadd.f32 %v2472_v41, %v5705_v21  ;;  %v2511_v62 = vmul.f32 %v5705_v21, %v5705_v21  ;;  %v2541_v31 = vadd.f32 %v2540_v26, %v2510_v37  ;;  %v2310_v25 = vadd.f32 %v2309_v44, %v5670_v4  ;;  %3813 = vmatprep.subr.bf16.mxu0 %v3812_v48 }
 0x622   :  { %v5716_v49 = vadd.f32 %v2315_v1, %v6213_v42  ;;  %3854 = vmatprep.subr.bf16.mxu1 %v3812_v48  ;;  %3815 = vmatpush3.bf16.msra.mxu0 %v3812_v48  ;;  %v6220_v42 = vld [vmem:[#allocation9_spill] sm:$0xff] }
 0x623   :  { %v2542_v43 = vadd.f32 %v2541_v31, %v2511_v62  ;;  %v5725_v45 = vadd.f32 %v2310_v25, %v6214_v5  ;;  %v2474_v34 = vadd.f32 %v2473_v6, %v5700_v35  ;;  %v3572_v2 = vpop.f32.mrb[56].mxu0  ;;  %v6219_v6 = vld [vmem:[#allocation8_spill] sm:$0xff]  ;;  %v2937_v25 = vld [vmem:[%s6057_s1 + $0x2b8] sm:$0xff]  ;;  %3862 = vmatpush3.bf16.msra.mxu1 %v3812_v48 }
 0x624   :  { %v2325_v57 = vadd.f32 %v3572_v2, %v5670_v4  ;;  %v2319_v13 = vpop.f32.mrb[57].mxu0  ;;  %v2514_v30 = vmul.f32 %v5716_v49, %v5716_v49  ;;  %v2936_v31 = vld [vmem:[%s6057_s1 + $0x2b0] sm:$0xff] }
 0x625   :  { %v2475_v20 = vadd.f32 %v2474_v34, %v5725_v45  ;;  %v2513_v10 = vmul.f32 %v5725_v45, %v5725_v45  ;;  %v2543_v12 = vadd.f32 %v2542_v43, %v2512_v14  ;;  %v2320_v61 = vadd.f32 %v2319_v13, %v5670_v4 }
 0x626   :  { %v5736_v36 = vadd.f32 %v2325_v57, %v6215_v40  ;;  %v3816_v5 = vpack.c.bf16 %v2937_v25, %v2936_v31  ;;  %v6221_v40 = vld [vmem:[#allocation11_spill] sm:$0xff] }
 0x627   :  { %v2544_v56 = vadd.f32 %v2543_v12, %v2513_v10  ;;  %v5745_v0 = vadd.f32 %v2320_v61, %v6216_v24  ;;  %v2476_v23 = vadd.f32 %v2475_v20, %v5716_v49  ;;  %v3575_v19 = vpop.f32.mrb[58].mxu0  ;;  %v2938_v10 = vld [vmem:[%s6057_s1 + $0x2c0] sm:$0xff]  ;;  %v2939_v12 = vld [vmem:[%s6057_s1 + $0x2c8] sm:$0xff]  ;;  %v2940_v61 = vld [vmem:[%s6057_s1 + $0x2d0] sm:$0xff] }
 0x628   :  { %v2335_v63 = vadd.f32 %v3575_v19, %v5670_v4  ;;  %v2329_v7 = vpop.f32.mrb[59].mxu0  ;;  %v2516_v58 = vmul.f32 %v5736_v36, %v5736_v36  ;;  %3817 = vmatprep.subr.bf16.mxu0 %v3816_v5  ;;  %3855 = vmatprep.subr.bf16.mxu1 %v3816_v5  ;;  %v3820_v17 = vpack.c.bf16 %v2939_v12, %v2938_v10 }
 0x629   :  { %v2477_v46 = vadd.f32 %v2476_v23, %v5745_v0  ;;  %v2515_v51 = vmul.f32 %v5745_v0, %v5745_v0  ;;  %v2545_v32 = vadd.f32 %v2544_v56, %v2514_v30  ;;  %v2330_v50 = vadd.f32 %v2329_v7, %v5670_v4  ;;  %3819 = vmatpush3.bf16.msra.mxu0 %v3816_v5  ;;  %v2941_v56 = vld [vmem:[%s6057_s1 + $0x2d8] sm:$0xff]  ;;  %v6222_v23 = vld [vmem:[#allocation12_spill] sm:$0xff] }
 0x62a   :  { %v5756_v29 = vadd.f32 %v2335_v63, %v6217_v18  ;;  %3863 = vmatpush3.bf16.msra.mxu1 %v3816_v5  ;;  %v3824_v7 = vpack.c.bf16 %v2941_v56, %v2940_v61  ;;  %3821 = vmatprep.subr.bf16.mxu0 %v3820_v17 }
 0x62b   :  { %v2546_v38 = vadd.f32 %v2545_v32, %v2515_v51  ;;  %v5765_v28 = vadd.f32 %v2330_v50, %v6218_v33  ;;  %v2478_v11 = vadd.f32 %v2477_v46, %v5736_v36  ;;  %v3578_v52 = vpop.f32.mrb[60].mxu0  ;;  %v2942_v46 = vld [vmem:[%s6057_s1 + $0x2e0] sm:$0xff]  ;;  %v2943_v51 = vld [vmem:[%s6057_s1 + $0x2e8] sm:$0xff]  ;;  %3856 = vmatprep.subr.bf16.mxu1 %v3820_v17  ;;  %v6223_v33 = vld [vmem:[#allocation13_spill] sm:$0xff] }
 0x62c   :  { %v2345_v22 = vadd.f32 %v3578_v52, %v5670_v4  ;;  %v2339_v37 = vpop.f32.mrb[61].mxu0  ;;  %v2518_v44 = vmul.f32 %v5756_v29, %v5756_v29  ;;  %v3828_v52 = vpack.c.bf16 %v2943_v51, %v2942_v46 }
 0x62d   :  { %v2479_v26 = vadd.f32 %v2478_v11, %v5765_v28  ;;  %v2517_v41 = vmul.f32 %v5765_v28, %v5765_v28  ;;  %v2547_v55 = vadd.f32 %v2546_v38, %v2516_v58  ;;  %v2340_v1 = vadd.f32 %v2339_v37, %v5670_v4  ;;  %3823 = vmatpush3.bf16.msra.mxu0 %v3820_v17 }
 0x62e   :  { %v5776_v62 = vadd.f32 %v2345_v22, %v6219_v6  ;;  %v6224_v22 = vld [vmem:[#allocation10_spill] sm:$0xff]  ;;  %3864 = vmatpush3.bf16.msra.mxu1 %v3820_v17  ;;  %3825 = vmatprep.subr.bf16.mxu0 %v3824_v7 }
 0x62f   :  { %v2548_v14 = vadd.f32 %v2547_v55, %v2517_v41  ;;  %v5785_v39 = vadd.f32 %v2340_v1, %v6220_v42  ;;  %v2480_v16 = vadd.f32 %v2479_v26, %v5756_v29  ;;  %v3581_v43 = vpop.f32.mrb[62].mxu0  ;;  %v2944_v55 = vld [vmem:[%s6057_s1 + $0x2f0] sm:$0xff]  ;;  %v2945_v1 = vld [vmem:[%s6057_s1 + $0x2f8] sm:$0xff]  ;;  %3857 = vmatprep.subr.bf16.mxu1 %v3824_v7 }
 0x630   :  { %v2355_v34 = vadd.f32 %v3581_v43, %v5670_v4  ;;  %v2349_v2 = vpop.f32.mrb[63].mxu0  ;;  %v2520_v30 = vmul.f32 %v5776_v62, %v5776_v62  ;;  %v6225_v43 = vld [vmem:[#allocation15_spill] sm:$0xff] }
 0x631   :  { %v2481_v53 = vadd.f32 %v2480_v16, %v5785_v39  ;;  %v2519_v57 = vmul.f32 %v5785_v39, %v5785_v39  ;;  %v2549_v13 = vadd.f32 %v2548_v14, %v2518_v44  ;;  %v2350_v20 = vadd.f32 %v2349_v2, %v5670_v4  ;;  %3827 = vmatpush3.bf16.msra.mxu0 %v3824_v7 }
 0x632   :  { %v5805_v54 = vadd.f32 %v2355_v34, %v6221_v40  ;;  %v3832_v34 = vpack.c.bf16 %v2945_v1, %v2944_v55  ;;  %3865 = vmatpush3.bf16.msra.mxu1 %v3824_v7  ;;  %3829 = vmatprep.subr.bf16.mxu0 %v3828_v52 }
 0x633   :  { %v2550_v24 = vadd.f32 %v2549_v13, %v2519_v57  ;;  %v5811_v19 = vadd.f32 %v2350_v20, %v6222_v23  ;;  %v2482_v59 = vadd.f32 %v2481_v53, %v5776_v62  ;;  %v3584_v63 = vpop.f32.mrb[64].mxu0  ;;  %v6226_v53 = vld [vmem:[#allocation14_spill] sm:$0xff]  ;;  %3858 = vmatprep.subr.bf16.mxu1 %v3828_v52 }
 0x634   :  { %v2365_v32 = vadd.f32 %v3584_v63, %v5670_v4  ;;  %v2359_v50 = vpop.f32.mrb[65].mxu0  ;;  %v2522_v38 = vmul.f32 %v5805_v54, %v5805_v54  ;;  %v6228_v63 = vld [vmem:[#allocation16_spill] sm:$0xff] }
 0x635   :  { %v2483_v58 = vadd.f32 %v2482_v59, %v5811_v19  ;;  %v2521_v18 = vmul.f32 %v5811_v19, %v5811_v19  ;;  %v2551_v60 = vadd.f32 %v2550_v24, %v2520_v30  ;;  %v2360_v27 = vadd.f32 %v2359_v50, %v5670_v4  ;;  %v6227_v24 = vld [vmem:[#allocation17_spill] sm:$0xff]  ;;  %3831 = vmatpush3.bf16.msra.mxu0 %v3828_v52 }
 0x636   :  { %v5828_v11 = vadd.f32 %v2365_v32, %v6223_v33  ;;  %3866 = vmatpush3.bf16.msra.mxu1 %v3828_v52  ;;  %3833 = vmatprep.subr.bf16.mxu0 %v3832_v34 }
 0x637   :  { %v2552_v48 = vadd.f32 %v2551_v60, %v2521_v18  ;;  %v5831_v37 = vadd.f32 %v2360_v27, %v6224_v22  ;;  %v2484_v26 = vadd.f32 %v2483_v58, %v5805_v54  ;;  %v3587_v41 = vpop.f32.mrb[66].mxu0  ;;  %3859 = vmatprep.subr.bf16.mxu1 %v3832_v34  ;;  %v6230_v22 = vld [vmem:[#allocation18_spill] sm:$0xff] }
 0x638   :  { %v2375_v44 = vadd.f32 %v3587_v41, %v5670_v4  ;;  %v2369_v6 = vpop.f32.mrb[67].mxu0  ;;  %v2524_v16 = vmul.f32 %v5828_v11, %v5828_v11 }
 0x639   :  { %v2485_v31 = vadd.f32 %v2484_v26, %v5831_v37  ;;  %v2523_v25 = vmul.f32 %v5831_v37, %v5831_v37  ;;  %v2553_v14 = vadd.f32 %v2552_v48, %v2522_v38  ;;  %v2370_v42 = vadd.f32 %v2369_v6, %v5670_v4  ;;  %3835 = vmatpush3.bf16.msra.mxu0 %v3832_v34  ;;  %v6229_v48 = vld [vmem:[#allocation19_spill] sm:$0xff] }
 0x63a   :  { %v5848_v5 = vadd.f32 %v2375_v44, %v6225_v43  ;;  %3867 = vmatpush3.bf16.msra.mxu1 %v3832_v34 }
 0x63b   :  { %v2554_v2 = vadd.f32 %v2553_v14, %v2523_v25  ;;  %v5851_v57 = vadd.f32 %v2370_v42, %v6226_v53  ;;  %v2486_v13 = vadd.f32 %v2485_v31, %v5828_v11  ;;  %v3590_v20 = vpop.f32.mrb[68].mxu0  ;;  %v6231_v42 = vld [vmem:[#allocation21_spill] sm:$0xff]  ;;  %v6232_v53 = vld [vmem:[#allocation20_spill] sm:$0xff] }
 0x63c   :  { %v2385_v10 = vadd.f32 %v3590_v20, %v5670_v4  ;;  %v2379_v12 = vpop.f32.mrb[69].mxu0  ;;  %v2526_v56 = vmul.f32 %v5848_v5, %v5848_v5 }
 0x63d   :  { %v2487_v61 = vadd.f32 %v2486_v13, %v5851_v57  ;;  %v2525_v30 = vmul.f32 %v5851_v57, %v5851_v57  ;;  %v2555_v40 = vadd.f32 %v2554_v2, %v2524_v16  ;;  %v2380_v17 = vadd.f32 %v2379_v12, %v5670_v4 }
 0x63e   :  { %v5862_v23 = vadd.f32 %v2385_v10, %v6227_v24 }
 0x63f   :  { %v2556_v59 = vadd.f32 %v2555_v40, %v2525_v30  ;;  %v5865_v7 = vadd.f32 %v2380_v17, %v6228_v63  ;;  %v2488_v46 = vadd.f32 %v2487_v61, %v5848_v5  ;;  %v3593_v51 = vpop.f32.mrb[70].mxu0 }
 0x640   :  { %v2395_v32 = vadd.f32 %v3593_v51, %v5670_v4  ;;  %v2389_v50 = vpop.f32.mrb[71].mxu0  ;;  %v2528_v38 = vmul.f32 %v5862_v23, %v5862_v23 }
 0x641   :  { %v2489_v58 = vadd.f32 %v2488_v46, %v5865_v7  ;;  %v2527_v18 = vmul.f32 %v5865_v7, %v5865_v7  ;;  %v2557_v60 = vadd.f32 %v2556_v59, %v2526_v56  ;;  %v2390_v27 = vadd.f32 %v2389_v50, %v5670_v4  ;;  %v6233_v59 = vld [vmem:[#allocation23_spill] sm:$0xff]  ;;  %v6234_v46 = vld [vmem:[#allocation22_spill] sm:$0xff] }
 0x642   :  { %v5876_v52 = vadd.f32 %v2395_v32, %v6229_v48  ;;  %v6235_v48 = vld [vmem:[#allocation25_spill] sm:$0xff] }
 0x643   :  { %v2558_v33 = vadd.f32 %v2557_v60, %v2527_v18  ;;  %v5879_v26 = vadd.f32 %v2390_v27, %v6230_v22  ;;  %v2490_v41 = vadd.f32 %v2489_v58, %v5862_v23  ;;  %v3596_v55 = vpop.f32.mrb[72].mxu0 }
 0x644   :  { %v2405_v1 = vadd.f32 %v3596_v55, %v5670_v4  ;;  %v2399_v44 = vpop.f32.mrb[73].mxu0  ;;  %v2530_v43 = vmul.f32 %v5876_v52, %v5876_v52 }
 0x645   :  { %v2491_v6 = vadd.f32 %v2490_v41, %v5879_v26  ;;  %v2529_v31 = vmul.f32 %v5879_v26, %v5879_v26  ;;  %v2559_v25 = vadd.f32 %v2558_v33, %v2528_v38  ;;  %v2400_v14 = vadd.f32 %v2399_v44, %v5670_v4 }
 0x646   :  { %v5888_v16 = vadd.f32 %v2405_v1, %v6231_v42  ;;  %v6236_v1 = vld [vmem:[#allocation24_spill] sm:$0xff] }
 0x647   :  { %v2560_v2 = vadd.f32 %v2559_v25, %v2529_v31  ;;  %v5893_v34 = vadd.f32 %v2400_v14, %v6232_v53  ;;  %v2492_v13 = vadd.f32 %v2491_v6, %v5876_v52  ;;  %v3599_v20 = vpop.f32.mrb[74].mxu0 }
 0x648   :  { %v2415_v10 = vadd.f32 %v3599_v20, %v5670_v4  ;;  %v2409_v12 = vpop.f32.mrb[75].mxu0  ;;  %v2532_v56 = vmul.f32 %v5888_v16, %v5888_v16 }
 0x649   :  { %v2493_v61 = vadd.f32 %v2492_v13, %v5893_v34  ;;  %v2531_v30 = vmul.f32 %v5893_v34, %v5893_v34  ;;  %v2561_v40 = vadd.f32 %v2560_v2, %v2530_v43  ;;  %v2410_v17 = vadd.f32 %v2409_v12, %v5670_v4 }
 0x64a   :  { %v5904_v63 = vadd.f32 %v2415_v10, %v6233_v59  ;;  %v6237_v10 = vld [vmem:[#allocation27_spill] sm:$0xff] }
 0x64b   :  { %v2562_v24 = vadd.f32 %v2561_v40, %v2531_v30  ;;  %v5907_v51 = vadd.f32 %v2410_v17, %v6234_v46  ;;  %v2494_v32 = vadd.f32 %v2493_v61, %v5888_v16  ;;  %v3602_v50 = vpop.f32.mrb[76].mxu0  ;;  %v6238_v61 = vld [vmem:[#allocation26_spill] sm:$0xff] }
 0x64c   :  { %v2425_v58 = vadd.f32 %v3602_v50, %v5670_v4  ;;  %v2419_v18 = vpop.f32.mrb[77].mxu0  ;;  %v2534_v41 = vmul.f32 %v5904_v63, %v5904_v63 }
 0x64d   :  { %v2495_v60 = vadd.f32 %v2494_v32, %v5907_v51  ;;  %v2533_v27 = vmul.f32 %v5907_v51, %v5907_v51  ;;  %v2563_v38 = vadd.f32 %v2562_v24, %v2532_v56  ;;  %v2420_v33 = vadd.f32 %v2419_v18, %v5670_v4 }
 0x64e   :  { %v5916_v22 = vadd.f32 %v2425_v58, %v6235_v48 }
 0x64f   :  { %v2564_v55 = vadd.f32 %v2563_v38, %v2533_v27  ;;  %v5921_v44 = vadd.f32 %v2420_v33, %v6236_v1  ;;  %v2496_v6 = vadd.f32 %v2495_v60, %v5904_v63  ;;  %v3605_v31 = vpop.f32.mrb[78].mxu0 }
 0x650   :  { %v2435_v25 = vadd.f32 %v3605_v31, %v5670_v4  ;;  %v2429_v14 = vpop.f32.mrb[79].mxu0  ;;  %v2536_v13 = vmul.f32 %v5916_v22, %v5916_v22 }
 0x651   :  { %v2497_v42 = vadd.f32 %v2496_v6, %v5921_v44  ;;  %v2535_v43 = vmul.f32 %v5921_v44, %v5921_v44  ;;  %v2565_v2 = vadd.f32 %v2564_v55, %v2534_v41  ;;  %v2430_v53 = vadd.f32 %v2429_v14, %v5670_v4 }
 0x652   :  { %v5932_v12 = vadd.f32 %v2435_v25, %v6237_v10 }
 0x653   :  { %v2566_v20 = vadd.f32 %v2565_v2, %v2535_v43  ;;  %v2468_v30 = vadd.f32 %v2430_v53, %v6238_v61  ;;  %v2498_v40 = vadd.f32 %v2497_v42, %v5916_v22  ;;  %v6240_v61 = vld [vmem:[#allocation30_spill] sm:$0xff] }
 0x654   :  { %v2538_v59 = vmul.f32 %v5932_v12, %v5932_v12 }
 0x655   :  { %v2499_v17 = vadd.f32 %v2498_v40, %v2468_v30  ;;  %v2537_v56 = vmul.f32 %v2468_v30, %v2468_v30  ;;  %v2567_v24 = vadd.f32 %v2566_v20, %v2536_v13  ;;  %v6239_v20 = vld [vmem:[#allocation28_spill] sm:$0xff]  ;;  %v5943_v40 = vrot.slane %v5666_v47, %v6240_v61 }
 0x657   :  { %v2500_v46 = vadd.f32 %v2499_v17, %v5932_v12  ;;  %v2568_v4 = vadd.f32 %v2567_v24, %v2537_v56 }
 0x659   :  { %v2501_v32 = vrot.slane %v2500_v46, 4  ;;  %v2569_v50 = vadd.f32 %v2568_v4, %v2538_v59 }
 0x65b   :  { %v2502_v58 = vadd.f32 %v2501_v32, %v2500_v46  ;;  %v2570_v18 = vrot.slane %v2569_v50, 4 }
 0x65d   :  { %v2503_v60 = vrot.slane %v2502_v58, 2  ;;  %v2571_v27 = vadd.f32 %v2570_v18, %v2569_v50 }
 0x65f   :  { %v2504_v38 = vadd.f32 %v2503_v60, %v2502_v58  ;;  %v2572_v33 = vrot.slane %v2571_v27, 2 }
 0x661   :  { %v2505_v48 = vrot.slane %v2504_v38, 1  ;;  %v2573_v41 = vadd.f32 %v2572_v33, %v2571_v27  ;;  %v6241_v27 = vld [vmem:[#allocation29_spill] sm:$0xff] }
 0x663   :  { %v2506_v55 = vadd.f32 %v2505_v48, %v2504_v38  ;;  %v2574_v1 = vrot.slane %v2573_v41, 1 }
 0x665   :  { %v2575_v6 = vadd.f32 %v2574_v1, %v2573_v41  ;;  %v2576_v31 = vmul.f32 0.00390625, %v2506_v55 }
 0x667   :  { %v2577_v25 = vmul.f32 0.00390625, %v2575_v6  ;;  %v2578_v14 = vmul.f32 %v2576_v31, %v2576_v31 }
 0x669   :  { %v2579_v42 = vsub.f32 %v2577_v25, %v2578_v14 }
 0x66b   :  { %v2580_v43 = vadd.f32 1e-05, %v2579_v42 }
 0x66d   :  { %3876 = vrsqrt.f32 %v2580_v43 }
 0x677   :  { %v3877_v2 = vpop.eup %3876 }
 0x678   :  { %v2582_v53 = vmul.f32 %v3877_v2, %v5666_v47 }
 0x67a   :  { %v2583_v13 = vmul.f32 %v2582_v53, %v2576_v31  ;;  %v2591_v10 = vrot.slane %v2582_v53, %v6239_v20 }
 0x67c   :  { %v2585_v17 = vrot.slane %v2583_v13, 7  ;;  %v5945_v56 = vmul.f32 %v2591_v10, %v2468_v30  ;;  %v2600_v24 = vmul.f32 %v2591_v10, %v5678_v3  ;;  %v2601_v59 = vmul.f32 %v2591_v10, %v5675_v9 }
 0x67d   :  { %v2602_v46 = vmul.f32 %v2591_v10, %v5692_v15  ;;  %v2603_v4 = vmul.f32 %v2591_v10, %v5689_v8  ;;  %v2612_v32 = vmul.f32 %v2591_v10, %v5705_v21  ;;  %v2613_v50 = vmul.f32 %v2591_v10, %v5700_v35 }
 0x67e   :  { %v2587_v58 = vsub.f32 %v5666_v47, %v2585_v17  ;;  %v2614_v18 = vmul.f32 %v2591_v10, %v5725_v45  ;;  %v2615_v60 = vmul.f32 %v2591_v10, %v5716_v49  ;;  %v2632_v30 = vmul.f32 %v2591_v10, %v5745_v0 }
 0x67f   :  { %v2633_v3 = vmul.f32 %v2591_v10, %v5736_v36  ;;  %v2634_v9 = vmul.f32 %v2591_v10, %v5765_v28  ;;  %v2635_v15 = vmul.f32 %v2591_v10, %v5756_v29  ;;  %v2652_v8 = vmul.f32 %v2591_v10, %v5785_v39 }
 0x680   :  { %v5962_v21 = vrot.slane %v2587_v58, %v6241_v27  ;;  %v2653_v35 = vmul.f32 %v2591_v10, %v5776_v62  ;;  %v2654_v38 = vmul.f32 %v2591_v10, %v5811_v19  ;;  %v2655_v45 = vmul.f32 %v2591_v10, %v5805_v54 }
 0x681   :  { %v2672_v49 = vmul.f32 %v2591_v10, %v5831_v37  ;;  %v2673_v0 = vmul.f32 %v2591_v10, %v5828_v11  ;;  %v2674_v36 = vmul.f32 %v2591_v10, %v5851_v57  ;;  %v2675_v28 = vmul.f32 %v2591_v10, %v5848_v5 }
 0x682   :  { %v2692_v29 = vmul.f32 %v2591_v10, %v5865_v7  ;;  %v2693_v39 = vmul.f32 %v2591_v10, %v5862_v23  ;;  %v2694_v33 = vmul.f32 %v2591_v10, %v5879_v26  ;;  %v2695_v62 = vmul.f32 %v2591_v10, %v5876_v52 }
 0x683   :  { %v2712_v19 = vmul.f32 %v2591_v10, %v5893_v34  ;;  %v2713_v54 = vmul.f32 %v2591_v10, %v5888_v16  ;;  %v2714_v37 = vmul.f32 %v2591_v10, %v5907_v51  ;;  %v2715_v11 = vmul.f32 %v2591_v10, %v5904_v63 }
 0x684   :  { %v2732_v57 = vmul.f32 %v2591_v10, %v5921_v44  ;;  %v2733_v5 = vmul.f32 %v2591_v10, %v5916_v22  ;;  %v2735_v7 = vmul.f32 %v2591_v10, %v5932_v12  ;;  %v2604_v23 = vadd.f32 %v2600_v24, %v5962_v21 }
 0x685   :  { %v2605_v26 = vadd.f32 %v2601_v59, %v5962_v21  ;;  %v2606_v52 = vadd.f32 %v2602_v46, %v5962_v21  ;;  %v2607_v34 = vadd.f32 %v2603_v4, %v5962_v21  ;;  %v2616_v16 = vadd.f32 %v2612_v32, %v5962_v21 }
 0x686   :  { %v2608_v48 = vmax.f32 %v2604_v23, 0.0  ;;  %v2617_v51 = vadd.f32 %v2613_v50, %v5962_v21  ;;  %v2618_v63 = vadd.f32 %v2614_v18, %v5962_v21  ;;  %v2619_v44 = vadd.f32 %v2615_v60, %v5962_v21 }
 0x687   :  { %v2609_v22 = vmax.f32 %v2605_v26, 0.0  ;;  %v2610_v41 = vmax.f32 %v2606_v52, 0.0  ;;  %v2611_v12 = vmax.f32 %v2607_v34, 0.0  ;;  %v2636_v55 = vadd.f32 %v2632_v30, %v5962_v21 }
 0x688   :  { %v2620_v1 = vmul.f32 %v2608_v48, %v5943_v40  ;;  %v2637_v6 = vadd.f32 %v2633_v3, %v5962_v21  ;;  %v2638_v31 = vadd.f32 %v2634_v9, %v5962_v21  ;;  %v2639_v25 = vadd.f32 %v2635_v15, %v5962_v21 }
 0x689   :  { %v2621_v14 = vmul.f32 %v2609_v22, %v5943_v40  ;;  %v2622_v42 = vmul.f32 %v2610_v41, %v5943_v40  ;;  %v2623_v43 = vmul.f32 %v2611_v12, %v5943_v40  ;;  %v2656_v2 = vadd.f32 %v2652_v8, %v5962_v21 }
 0x68a   :  { %v2624_v53 = vadd.f32 %v2620_v1, %v2616_v16  ;;  %v2657_v13 = vadd.f32 %v2653_v35, %v5962_v21  ;;  %v2658_v20 = vadd.f32 %v2654_v38, %v5962_v21  ;;  %v2659_v10 = vadd.f32 %v2655_v45, %v5962_v21 }
 0x68b   :  { %v2625_v61 = vadd.f32 %v2621_v14, %v2617_v51  ;;  %v2626_v17 = vadd.f32 %v2622_v42, %v2618_v63  ;;  %v2627_v24 = vadd.f32 %v2623_v43, %v2619_v44  ;;  %v2676_v59 = vadd.f32 %v2672_v49, %v5962_v21 }
 0x68c   :  { %v2628_v46 = vmax.f32 %v2624_v53, 0.0  ;;  %v2677_v4 = vadd.f32 %v2673_v0, %v5962_v21  ;;  %v2678_v32 = vadd.f32 %v2674_v36, %v5962_v21  ;;  %v2679_v50 = vadd.f32 %v2675_v28, %v5962_v21 }
 0x68d   :  { %v2629_v58 = vmax.f32 %v2625_v61, 0.0  ;;  %v2630_v18 = vmax.f32 %v2626_v17, 0.0  ;;  %v2631_v60 = vmax.f32 %v2627_v24, 0.0  ;;  %v2696_v30 = vadd.f32 %v2692_v29, %v5962_v21 }
 0x68e   :  { %v2640_v3 = vmul.f32 %v2628_v46, %v5943_v40  ;;  %v2697_v9 = vadd.f32 %v2693_v39, %v5962_v21  ;;  %v2698_v15 = vadd.f32 %v2694_v33, %v5962_v21  ;;  %v2699_v8 = vadd.f32 %v2695_v62, %v5962_v21 }
 0x68f   :  { %v2641_v27 = vmul.f32 %v2629_v58, %v5943_v40  ;;  %v2642_v35 = vmul.f32 %v2630_v18, %v5943_v40  ;;  %v2643_v38 = vmul.f32 %v2631_v60, %v5943_v40  ;;  %v2716_v45 = vadd.f32 %v2712_v19, %v5962_v21 }
 0x690   :  { %v2644_v49 = vadd.f32 %v2640_v3, %v2636_v55  ;;  %v2717_v0 = vadd.f32 %v2713_v54, %v5962_v21  ;;  %v2718_v36 = vadd.f32 %v2714_v37, %v5962_v21  ;;  %v2719_v28 = vadd.f32 %v2715_v11, %v5962_v21 }
 0x691   :  { %v2645_v29 = vadd.f32 %v2641_v27, %v2637_v6  ;;  %v2646_v39 = vadd.f32 %v2642_v35, %v2638_v31  ;;  %v2647_v33 = vadd.f32 %v2643_v38, %v2639_v25  ;;  %v2737_v62 = vadd.f32 %v2733_v5, %v5962_v21 }
 0x692   :  { %v2648_v23 = vmax.f32 %v2644_v49, 0.0  ;;  %v2739_v26 = vadd.f32 %v2735_v7, %v5962_v21  ;;  %v2736_v52 = vadd.f32 %v2732_v57, %v5962_v21  ;;  %v2738_v19 = vadd.f32 %v5945_v56, %v5962_v21 }
 0x693   :  { %v2649_v34 = vmax.f32 %v2645_v29, 0.0  ;;  %v2650_v16 = vmax.f32 %v2646_v39, 0.0  ;;  %v2651_v54 = vmax.f32 %v2647_v33, 0.0 }
 0x694   :  { %v2660_v37 = vmul.f32 %v2648_v23, %v5943_v40 }
 0x695   :  { %v2661_v11 = vmul.f32 %v2649_v34, %v5943_v40  ;;  %v2662_v48 = vmul.f32 %v2650_v16, %v5943_v40  ;;  %v2663_v51 = vmul.f32 %v2651_v54, %v5943_v40 }
 0x696   :  { %v2664_v5 = vadd.f32 %v2660_v37, %v2656_v2 }
 0x697   :  { %v2665_v63 = vadd.f32 %v2661_v11, %v2657_v13  ;;  %v2666_v44 = vadd.f32 %v2662_v48, %v2658_v20  ;;  %v2667_v7 = vadd.f32 %v2663_v51, %v2659_v10  ;;  %v6242_v48 = vld [vmem:[#allocation31_spill] sm:$0xff] }
 0x698   :  { %v2668_v22 = vmax.f32 %v2664_v5, 0.0  ;;  %v2772_v51 = vrot.slane %v5666_v47, %v6242_v48 }
 0x699   :  { %v2669_v57 = vmax.f32 %v2665_v63, 0.0  ;;  %v2670_v41 = vmax.f32 %v2666_v44, 0.0  ;;  %v2671_v12 = vmax.f32 %v2667_v7, 0.0 }
 0x69a   :  { %v2680_v56 = vmul.f32 %v2668_v22, %v5943_v40 }
 0x69b   :  { %v2681_v21 = vmul.f32 %v2669_v57, %v5943_v40  ;;  %v2682_v55 = vmul.f32 %v2670_v41, %v5943_v40  ;;  %v2683_v1 = vmul.f32 %v2671_v12, %v5943_v40 }
 0x69c   :  { %v2684_v6 = vadd.f32 %v2680_v56, %v2676_v59 }
 0x69d   :  { %v2685_v31 = vadd.f32 %v2681_v21, %v2677_v4  ;;  %v2686_v25 = vadd.f32 %v2682_v55, %v2678_v32  ;;  %v2687_v14 = vadd.f32 %v2683_v1, %v2679_v50 }
 0x69e   :  { %v2688_v42 = vmax.f32 %v2684_v6, 0.0 }
 0x69f   :  { %v2689_v43 = vmax.f32 %v2685_v31, 0.0  ;;  %v2690_v2 = vmax.f32 %v2686_v25, 0.0  ;;  %v2691_v53 = vmax.f32 %v2687_v14, 0.0 }
 0x6a0   :  { %v2700_v13 = vmul.f32 %v2688_v42, %v5943_v40 }
 0x6a1   :  { %v2701_v20 = vmul.f32 %v2689_v43, %v5943_v40  ;;  %v2702_v10 = vmul.f32 %v2690_v2, %v5943_v40  ;;  %v2703_v61 = vmul.f32 %v2691_v53, %v5943_v40 }
 0x6a2   :  { %v2704_v17 = vadd.f32 %v2700_v13, %v2696_v30 }
 0x6a3   :  { %v2705_v24 = vadd.f32 %v2701_v20, %v2697_v9  ;;  %v2706_v46 = vadd.f32 %v2702_v10, %v2698_v15  ;;  %v2707_v58 = vadd.f32 %v2703_v61, %v2699_v8 }
 0x6a4   :  { %v2708_v59 = vmax.f32 %v2704_v17, 0.0 }
 0x6a5   :  { %v2709_v4 = vmax.f32 %v2705_v24, 0.0  ;;  %v2710_v32 = vmax.f32 %v2706_v46, 0.0  ;;  %v2711_v50 = vmax.f32 %v2707_v58, 0.0 }
 0x6a6   :  { %v2720_v18 = vmul.f32 %v2708_v59, %v5943_v40 }
 0x6a7   :  { %v2721_v60 = vmul.f32 %v2709_v4, %v5943_v40  ;;  %v2723_v3 = vmul.f32 %v2711_v50, %v5943_v40  ;;  %v2722_v27 = vmul.f32 %v2710_v32, %v5943_v40 }
 0x6a8   :  { %v2724_v35 = vadd.f32 %v2720_v18, %v2716_v45 }
 0x6a9   :  { %v2725_v38 = vadd.f32 %v2721_v60, %v2717_v0  ;;  %v2727_v49 = vadd.f32 %v2723_v3, %v2719_v28  ;;  %v2726_v29 = vadd.f32 %v2722_v27, %v2718_v36 }
 0x6aa   :  { %v2728_v30 = vmax.f32 %v2724_v35, 0.0 }
 0x6ab   :  { %v2729_v9 = vmax.f32 %v2725_v38, 0.0  ;;  %v2731_v15 = vmax.f32 %v2727_v49, 0.0  ;;  %v2730_v8 = vmax.f32 %v2726_v29, 0.0 }
 0x6ac   :  { %v2740_v39 = vmul.f32 %v2728_v30, %v5943_v40 }
 0x6ad   :  { %v2741_v33 = vmul.f32 %v2729_v9, %v5943_v40  ;;  %v2743_v23 = vmul.f32 %v2731_v15, %v5943_v40  ;;  %v2742_v34 = vmul.f32 %v2730_v8, %v5943_v40 }
 0x6ae   :  { %v2744_v16 = vadd.f32 %v2740_v39, %v2736_v52 }
 0x6af   :  { %v2745_v54 = vadd.f32 %v2741_v33, %v2737_v62  ;;  %v2747_v37 = vadd.f32 %v2743_v23, %v2739_v26  ;;  %v2746_v11 = vadd.f32 %v2742_v34, %v2738_v19 }
 0x6b0   :  { %v2748_v45 = vmax.f32 %v2744_v16, 0.0 }
 0x6b1   :  { %v2749_v0 = vmax.f32 %v2745_v54, 0.0  ;;  %v2751_v28 = vmax.f32 %v2747_v37, 0.0  ;;  %v2750_v36 = vmax.f32 %v2746_v11, 0.0 }
 0x6b2   :  { %3638 = vmatprep.mubr.f32.mxu0 %v2748_v45 }
 0x6b3   :  { %3641 = vmatprep.mubr.f32.mxu1 %v2750_v36  ;;  %3639 = vmatmul.mubr.f32.vlgmr.msra.gmra.mrb[80].mxu0 %v2749_v0 }
 0x6b4   :  { %3642 = vmatmul.mubr.f32.vlgmr.msra.gmra.mrb[80].mxu1 %v2751_v28 }
 0x786   :  { %v3640_v5 = vpop.f32.mrb[80].mxu0 }
 0x787   :  { %v2845_v63 = vadd.f32 %v3640_v5, %v2772_v51  ;;  %v3643_v44 = vpop.f32.mrb[80].mxu1  ;;  %v2839_v7 = vpop.f32.mrb[81].mxu0 }
 0x788   :  { %v2855_v40 = vadd.f32 %v3643_v44, %v2772_v51  ;;  %v2840_v52 = vadd.f32 %v2839_v7, %v2772_v51  ;;  %v2849_v62 = vpop.f32.mrb[81].mxu1 }
 0x789   :  { %2859 = vst [vmem:[%s6060_s3 + $0x8] sm:$0xff] %v2845_v63  ;;  %v2850_v26 = vadd.f32 %v2849_v62, %v2772_v51 }
 0x78a   :  { %2861 = vst [vmem:[%s6060_s3 + $0x18] sm:$0xff] %v2855_v40  ;;  %2858 = vst [vmem:[%s6060_s3] sm:$0xff] %v2840_v52 }
 0x78b   :  { %2860 = vst [vmem:[%s6060_s3 + $0x10] sm:$0xff] %v2850_v26 }

</bundles_post_ra>
